<compile_context>
chip_gen: v7x
topology: tpu7x:2x2x1
jax: 0.10.0
libtpu: 0.0.40
codegen_flags: <defaults>
</compile_context>

<pallas_src>
import functools

import jax
import jax.numpy as jnp
from jax.experimental import pallas as pl
from jax.experimental.pallas import tpu as pltpu


def _detect_kernel(mul_ref, x_ref, out_ref, *, grid_size, fused):
    """mul_ref: (rows, 1) f32 per-row output scale (stride / anchor*stride / 1).
       x_ref  : (rows, GG) f32, rows ordered (batch, anchor, channel), GG=G*G.
       out_ref: fused  -> (rows//4, GG*4) channel-interleaved
                !fused -> (rows, GG)      channel-major."""
    G = grid_size
    rows, GG = x_ref.shape
    x = x_ref[...]

    # Channel id per sublane row.  Block row offsets are always multiples of
    # num_anchors*4, so the in-block row index mod 4 is the true channel.
    row = jax.lax.broadcasted_iota(jnp.int32, (rows, 1), 0)
    ch = row & 3

    # Grid-cell coords from a lane iota: flat pixel p = gy*G + gx.
    # floor((p + 0.5)/G) == p // G exactly for the sizes asserted in the
    # wrapper (f32 iota/floor trick).
    p = jax.lax.broadcasted_iota(jnp.int32, (rows, GG), 1).astype(jnp.float32)
    gy = jnp.floor((p + 0.5) * (1.0 / G))
    gx = p - gy * G

    # Full-tile transforms: one sigmoid + one exp over the whole block (the
    # extra EUP work rides an otherwise idle slot); the unused branch of each
    # elementwise select is simply discarded.
    sig = jax.nn.sigmoid(x)
    base = jnp.where(ch == 2, jnp.exp(x), sig)
    offs = jnp.where(ch == 0, gx, 0.0) + jnp.where(ch == 1, gy, 0.0)
    y = (base + offs) * mul_ref[...]            # (rows, GG), one dense pass

    if fused:
        # Fused channel-last interleave: rows come in groups of 4 channels per
        # (batch, anchor); emit (b*a, GG*4) so the wrapper reshape to
        # (B, A*GG, 4) is free and the store stays fully lane-dense.
        r4 = rows // 4
        y3 = y.reshape(r4, 4, GG)
        out_ref[...] = jnp.swapaxes(y3, -1, -2).reshape(r4, 4 * GG)
    else:
        out_ref[...] = y


def _row_multipliers(scaled_anchors, stride, batch):
    """(B*A*4, 1) f32: per-row scale applied after sigmoid/exp.
       channel 0/1 -> stride, channel 2 -> anchor radius (scaled*stride),
       channel 3 -> 1.0."""
    A = int(scaled_anchors.shape[0])
    idx = jnp.arange(A * 4, dtype=jnp.int32)
    ch = idx % 4
    anc = scaled_anchors[idx // 4] * stride      # anchor radius in pixels
    mul = jnp.where(ch == 2, anc, jnp.where(ch == 3, 1.0, stride))
    return jnp.tile(mul.astype(jnp.float32), batch).reshape(batch * A * 4, 1)


def _forward(x, anchors, image_size, grid_size, *, fused):
    B = x.shape[0]
    G = int(grid_size)
    GG = G * G
    A = int(anchors.shape[0])
    assert x.shape == (B, A * 4, G, G)
    # f32 iota/floor cell-coordinate trick stays exact well past this bound.
    assert GG < (1 << 22), "grid too large for the f32 cell-coordinate trick"

    stride = float(image_size) / float(grid_size)
    scaled_anchors = jnp.asarray(anchors, jnp.float32) / stride     # (A,)

    x2 = jnp.asarray(x, jnp.float32).reshape(B * A * 4, GG)  # free reshape
    row_mul = _row_multipliers(scaled_anchors, stride, B)    # (B*A*4, 1)

    # Batch tiling: one full-array block when small (zero pipeline overhead);
    # otherwise blocks of a multiple of 8 batches (keeps every BlockSpec's
    # sublane dim 8-aligned) and a cdiv grid with a ragged last block.
    # VMEM per step ~= 2 buffers * (in + out) block ~= 4 * target, well under
    # the 32 MiB scoped default on all generations.
    per_b_bytes = A * 4 * GG * 4
    target = 2 * 1024 * 1024
    bblk = (target // per_b_bytes) // 8 * 8
    if bblk <= 0 or bblk >= B:
        bblk, nb = B, 1
    else:
        nb = pl.cdiv(B, bblk)
    rows_blk = bblk * A * 4

    if fused:
        out_shape = jax.ShapeDtypeStruct((B * A, 4 * GG), jnp.float32)
        out_spec = pl.BlockSpec((bblk * A, 4 * GG), lambda i: (i, 0))
    else:
        out_shape = jax.ShapeDtypeStruct((B * A * 4, GG), jnp.float32)
        out_spec = pl.BlockSpec((rows_blk, GG), lambda i: (i, 0))

    n = B * A * 4 * GG
    out = pl.pallas_call(
        functools.partial(_detect_kernel, grid_size=G, fused=fused),
        out_shape=out_shape,
        grid=(nb,),
        in_specs=[
            pl.BlockSpec((rows_blk, 1), lambda i: (i, 0)),    # per-row scale
            pl.BlockSpec((rows_blk, GG), lambda i: (i, 0)),   # x (lane-dense)
        ],
        out_specs=out_spec,
        compiler_params=pltpu.CompilerParams(
            dimension_semantics=("parallel",)),   # batch axis: megacore on v7x
        cost_estimate=pl.CostEstimate(
            flops=6 * n, transcendentals=2 * n, bytes_accessed=2 * n * 4),
    )(row_mul, x2)

    if fused:
        output = out.reshape(B, A * GG, 4)                    # free reshape
    else:
        output = jnp.transpose(out.reshape(B, A, 4, GG),
                               (0, 1, 3, 2)).reshape(B, A * GG, 4)
    return output, 0


def detection_circle_forward(x, anchors, image_size, grid_size):
    """DetectionCircle.forward(x, targets=None) -> (output, 0)."""
    try:
        out, loss = _forward(x, anchors, image_size, grid_size, fused=True)
        return jax.block_until_ready(out), loss
    except Exception:
        # Fallback if this Mosaic build cannot lower the in-kernel minor-dim
        # transpose+reshape: channel-major kernel output plus one fused XLA
        # transpose on the (tiny) result.
        return _forward(x, anchors, image_size, grid_size, fused=False)


def _reference_forward(x, anchors, image_size, grid_size):
    """Pure-JAX replica of the torch forward (targets=None) for validation."""
    B = x.shape[0]
    G = grid_size
    A = anchors.shape[0]
    stride = image_size / grid_size
    scaled_anchors = anchors / stride
    pred = jnp.transpose(x.reshape(B, A, 4, G, G), (0, 1, 3, 4, 2))
    sx = jax.nn.sigmoid(pred[..., 0])
    sy = jax.nn.sigmoid(pred[..., 1])
    tr = pred[..., 2]
    conf = jax.nn.sigmoid(pred[..., 3])
    cx = jnp.arange(G, dtype=jnp.float32)[None, None, None, :]
    cy = jnp.arange(G, dtype=jnp.float32)[None, None, :, None]
    pr = scaled_anchors.reshape(1, A, 1, 1)
    bx = (sx + cx) / G
    by = (sy + cy) / G
    br = (pr * jnp.exp(tr)) / G
    boxes = jnp.stack([bx, by, br], axis=-1).reshape(B, -1, 3) * image_size
    return jnp.concatenate([boxes, conf.reshape(B, -1, 1)], axis=-1)


if __name__ == "__main__":
    # small, deterministic config
    B, G, image_size = 2, 16, 64
    anchors = jnp.array([10.0, 24.0, 58.0], dtype=jnp.float32)  # circle radii
    A = anchors.shape[0]

    key = jax.random.PRNGKey(0)
    x = jax.random.normal(key, (B, A * 4, G, G), dtype=jnp.float32)

    output, loss = detection_circle_forward(x, anchors, image_size, G)
    output = jax.block_until_ready(output)

    ref = _reference_forward(x, anchors, image_size, G)
    assert output.shape == (B, A * G * G, 4)
    assert jnp.allclose(output, ref, atol=1e-4, rtol=1e-4)
    assert loss == 0

    print("KERNEL_OK")
</pallas_src>

<mosaic_0001>
module attributes {stable_mosaic.version = 11 : i64} {
  func.func @_detect_kernel(%arg0: i32, %arg1: memref<24x1xf32, #tpu.memory_space<vmem>>, %arg2: memref<24x256xf32, #tpu.memory_space<vmem>>, %arg3: memref<6x1024xf32, #tpu.memory_space<vmem>>) attributes {dimension_semantics = [#tpu.dimension_semantics<parallel>], iteration_bounds = array<i64: 1>, scalar_prefetch = 0 : i64, scratch_operands = 0 : i64, tpu.core_type = #tpu.core_type<tc>, window_params = [{transform_indices = @transform_0, window_bounds = array<i64: 24, 1>}, {transform_indices = @transform_1, window_bounds = array<i64: 24, 256>}, {transform_indices = @transform_2, window_bounds = array<i64: 6, 1024>}]} {
    %c0 = arith.constant 0 : index
    %c0_0 = arith.constant 0 : index
    %0 = vector.load %arg2[%c0, %c0_0] : memref<24x256xf32, #tpu.memory_space<vmem>>, vector<24x256xf32>
    %1 = tpu.iota {dimensions = array<i32: 0>} : vector<24x1xi32>
    %c3_i32 = arith.constant 3 : i32
    %2 = vector.broadcast %c3_i32 : i32 to vector<24x1xi32>
    %3 = arith.andi %1, %2 : vector<24x1xi32>
    %4 = tpu.iota {dimensions = array<i32: 1>} : vector<24x256xi32>
    %5 = arith.sitofp %4 : vector<24x256xi32> to vector<24x256xf32>
    %cst = arith.constant 5.000000e-01 : f32
    %6 = vector.broadcast %cst : f32 to vector<24x256xf32>
    %7 = arith.addf %5, %6 : vector<24x256xf32>
    %cst_1 = arith.constant 6.250000e-02 : f32
    %8 = vector.broadcast %cst_1 : f32 to vector<24x256xf32>
    %9 = arith.mulf %7, %8 : vector<24x256xf32>
    %10 = math.floor %9 : vector<24x256xf32>
    %cst_2 = arith.constant 1.600000e+01 : f32
    %11 = vector.broadcast %cst_2 : f32 to vector<24x256xf32>
    %12 = arith.mulf %10, %11 : vector<24x256xf32>
    %13 = arith.subf %5, %12 : vector<24x256xf32>
    %14 = arith.negf %0 : vector<24x256xf32>
    %15 = math.exp %14 : vector<24x256xf32>
    %cst_3 = arith.constant 1.000000e+00 : f32
    %16 = vector.broadcast %cst_3 : f32 to vector<24x256xf32>
    %17 = arith.addf %16, %15 : vector<24x256xf32>
    %18 = arith.divf %16, %17 : vector<24x256xf32>
    %c2_i32 = arith.constant 2 : i32
    %19 = vector.broadcast %c2_i32 : i32 to vector<24x1xi32>
    %20 = arith.cmpi eq, %3, %19 : vector<24x1xi32>
    %21 = math.exp %0 : vector<24x256xf32>
    %22 = vector.shape_cast %20 : vector<24x1xi1> to vector<24x1xi1>
    %23 = vector.broadcast %22 : vector<24x1xi1> to vector<24x256xi1>
    %24 = arith.select %23, %21, %18 : vector<24x256xi1>, vector<24x256xf32>
    %c0_i32 = arith.constant 0 : i32
    %25 = vector.broadcast %c0_i32 : i32 to vector<24x1xi32>
    %26 = arith.cmpi eq, %3, %25 : vector<24x1xi32>
    %cst_4 = arith.constant 0.000000e+00 : f32
    %27 = vector.shape_cast %26 : vector<24x1xi1> to vector<24x1xi1>
    %28 = vector.broadcast %27 : vector<24x1xi1> to vector<24x256xi1>
    %29 = vector.broadcast %cst_4 : f32 to vector<24x256xf32>
    %30 = arith.select %28, %13, %29 : vector<24x256xi1>, vector<24x256xf32>
    %c1_i32 = arith.constant 1 : i32
    %31 = vector.broadcast %c1_i32 : i32 to vector<24x1xi32>
    %32 = arith.cmpi eq, %3, %31 : vector<24x1xi32>
    %cst_5 = arith.constant 0.000000e+00 : f32
    %33 = vector.shape_cast %32 : vector<24x1xi1> to vector<24x1xi1>
    %34 = vector.broadcast %33 : vector<24x1xi1> to vector<24x256xi1>
    %35 = vector.broadcast %cst_5 : f32 to vector<24x256xf32>
    %36 = arith.select %34, %10, %35 : vector<24x256xi1>, vector<24x256xf32>
    %37 = arith.addf %30, %36 : vector<24x256xf32>
    %38 = arith.addf %24, %37 : vector<24x256xf32>
    %c0_6 = arith.constant 0 : index
    %c0_7 = arith.constant 0 : index
    %39 = vector.load %arg1[%c0_6, %c0_7] : memref<24x1xf32, #tpu.memory_space<vmem>>, vector<24x1xf32>
    %40 = vector.broadcast %39 : vector<24x1xf32> to vector<24x256xf32>
    %41 = arith.mulf %38, %40 : vector<24x256xf32>
    %42 = vector.shape_cast %41 : vector<24x256xf32> to vector<6x4x256xf32>
    %43 = tpu.transpose %42, [0, 2, 1] : vector<6x4x256xf32> -> vector<6x256x4xf32>
    %44 = vector.shape_cast %43 : vector<6x256x4xf32> to vector<6x1024xf32>
    %c0_8 = arith.constant 0 : index
    %c0_9 = arith.constant 0 : index
    %45 = vector.load %arg3[%c0_8, %c0_9] : memref<6x1024xf32, #tpu.memory_space<vmem>>, vector<6x1024xf32>
    tpu.vector_store %arg3[%c0_8, %c0_9], %44 {strides = array<i32>} : memref<6x1024xf32, #tpu.memory_space<vmem>>, vector<6x1024xf32>,
    return
  }
  func.func @transform_0(%arg0: i32) -> (i32, i32) {
    %c0_i32 = arith.constant 0 : i32
    %c0_i32_0 = arith.constant 0 : i32
    return %arg0, %c0_i32 : i32, i32
  }
  func.func @transform_1(%arg0: i32) -> (i32, i32) {
    %c0_i32 = arith.constant 0 : i32
    %c0_i32_0 = arith.constant 0 : i32
    return %arg0, %c0_i32 : i32, i32
  }
  func.func @transform_2(%arg0: i32) -> (i32, i32) {
    %c0_i32 = arith.constant 0 : i32
    %c0_i32_0 = arith.constant 0 : i32
    return %arg0, %c0_i32 : i32, i32
  }
}

module attributes {stable_mosaic.version = 11 : i64} {
  func.func @_detect_kernel(%arg0: i32, %arg1: memref<24x1xf32, #tpu.memory_space<vmem>>, %arg2: memref<24x256xf32, #tpu.memory_space<vmem>>, %arg3: memref<24x256xf32, #tpu.memory_space<vmem>>) attributes {dimension_semantics = [#tpu.dimension_semantics<parallel>], iteration_bounds = array<i64: 1>, scalar_prefetch = 0 : i64, scratch_operands = 0 : i64, tpu.core_type = #tpu.core_type<tc>, window_params = [{transform_indices = @transform_0, window_bounds = array<i64: 24, 1>}, {transform_indices = @transform_1, window_bounds = array<i64: 24, 256>}, {transform_indices = @transform_2, window_bounds = array<i64: 24, 256>}]} {
    %c0 = arith.constant 0 : index
    %c0_0 = arith.constant 0 : index
    %0 = vector.load %arg2[%c0, %c0_0] : memref<24x256xf32, #tpu.memory_space<vmem>>, vector<24x256xf32>
    %1 = tpu.iota {dimensions = array<i32: 0>} : vector<24x1xi32>
    %c3_i32 = arith.constant 3 : i32
    %2 = vector.broadcast %c3_i32 : i32 to vector<24x1xi32>
    %3 = arith.andi %1, %2 : vector<24x1xi32>
    %4 = tpu.iota {dimensions = array<i32: 1>} : vector<24x256xi32>
    %5 = arith.sitofp %4 : vector<24x256xi32> to vector<24x256xf32>
    %cst = arith.constant 5.000000e-01 : f32
    %6 = vector.broadcast %cst : f32 to vector<24x256xf32>
    %7 = arith.addf %5, %6 : vector<24x256xf32>
    %cst_1 = arith.constant 6.250000e-02 : f32
    %8 = vector.broadcast %cst_1 : f32 to vector<24x256xf32>
    %9 = arith.mulf %7, %8 : vector<24x256xf32>
    %10 = math.floor %9 : vector<24x256xf32>
    %cst_2 = arith.constant 1.600000e+01 : f32
    %11 = vector.broadcast %cst_2 : f32 to vector<24x256xf32>
    %12 = arith.mulf %10, %11 : vector<24x256xf32>
    %13 = arith.subf %5, %12 : vector<24x256xf32>
    %14 = arith.negf %0 : vector<24x256xf32>
    %15 = math.exp %14 : vector<24x256xf32>
    %cst_3 = arith.constant 1.000000e+00 : f32
    %16 = vector.broadcast %cst_3 : f32 to vector<24x256xf32>
    %17 = arith.addf %16, %15 : vector<24x256xf32>
    %18 = arith.divf %16, %17 : vector<24x256xf32>
    %c2_i32 = arith.constant 2 : i32
    %19 = vector.broadcast %c2_i32 : i32 to vector<24x1xi32>
    %20 = arith.cmpi eq, %3, %19 : vector<24x1xi32>
    %21 = math.exp %0 : vector<24x256xf32>
    %22 = vector.shape_cast %20 : vector<24x1xi1> to vector<24x1xi1>
    %23 = vector.broadcast %22 : vector<24x1xi1> to vector<24x256xi1>
    %24 = arith.select %23, %21, %18 : vector<24x256xi1>, vector<24x256xf32>
    %c0_i32 = arith.constant 0 : i32
    %25 = vector.broadcast %c0_i32 : i32 to vector<24x1xi32>
    %26 = arith.cmpi eq, %3, %25 : vector<24x1xi32>
    %cst_4 = arith.constant 0.000000e+00 : f32
    %27 = vector.shape_cast %26 : vector<24x1xi1> to vector<24x1xi1>
    %28 = vector.broadcast %27 : vector<24x1xi1> to vector<24x256xi1>
    %29 = vector.broadcast %cst_4 : f32 to vector<24x256xf32>
    %30 = arith.select %28, %13, %29 : vector<24x256xi1>, vector<24x256xf32>
    %c1_i32 = arith.constant 1 : i32
    %31 = vector.broadcast %c1_i32 : i32 to vector<24x1xi32>
    %32 = arith.cmpi eq, %3, %31 : vector<24x1xi32>
    %cst_5 = arith.constant 0.000000e+00 : f32
    %33 = vector.shape_cast %32 : vector<24x1xi1> to vector<24x1xi1>
    %34 = vector.broadcast %33 : vector<24x1xi1> to vector<24x256xi1>
    %35 = vector.broadcast %cst_5 : f32 to vector<24x256xf32>
    %36 = arith.select %34, %10, %35 : vector<24x256xi1>, vector<24x256xf32>
    %37 = arith.addf %30, %36 : vector<24x256xf32>
    %38 = arith.addf %24, %37 : vector<24x256xf32>
    %c0_6 = arith.constant 0 : index
    %c0_7 = arith.constant 0 : index
    %39 = vector.load %arg1[%c0_6, %c0_7] : memref<24x1xf32, #tpu.memory_space<vmem>>, vector<24x1xf32>
    %40 = vector.broadcast %39 : vector<24x1xf32> to vector<24x256xf32>
    %41 = arith.mulf %38, %40 : vector<24x256xf32>
    %c0_8 = arith.constant 0 : index
    %c0_9 = arith.constant 0 : index
    %42 = vector.load %arg3[%c0_8, %c0_9] : memref<24x256xf32, #tpu.memory_space<vmem>>, vector<24x256xf32>
    tpu.vector_store %arg3[%c0_8, %c0_9], %41 {strides = array<i32>} : memref<24x256xf32, #tpu.memory_space<vmem>>, vector<24x256xf32>,
    return
  }
  func.func @transform_0(%arg0: i32) -> (i32, i32) {
    %c0_i32 = arith.constant 0 : i32
    %c0_i32_0 = arith.constant 0 : i32
    return %arg0, %c0_i32 : i32, i32
  }
  func.func @transform_1(%arg0: i32) -> (i32, i32) {
    %c0_i32 = arith.constant 0 : i32
    %c0_i32_0 = arith.constant 0 : i32
    return %arg0, %c0_i32 : i32, i32
  }
  func.func @transform_2(%arg0: i32) -> (i32, i32) {
    %c0_i32 = arith.constant 0 : i32
    %c0_i32_0 = arith.constant 0 : i32
    return %arg0, %c0_i32 : i32, i32
  }
}

</mosaic_0001>

<bundles_post_ra>
// kernel: tpu_custom_call.1
= control target key start
LH: loop header
LB: loop body
LE: loop exit
PB: predicated region body
PF: predicated region fallthrough
CT: control target
= control target key end

     0   :  { %7 = vsyncpa [#allocation3], 0  ;;  %s8562_s0 = inlined_call_operand.vmem [shape: f32[24,1], index: 0, kind: input, shape index: {}]   ;;  %s8563_s1 = inlined_call_operand.hbm [shape: f32[24,256], index: 1, kind: input, shape index: {}]   ;;  %s8564_s2 = inlined_call_operand.hbm [shape: f32[6,1024], index: 2, kind: output, shape index: {}]  }
   0x1   :  { %8 = vsyncpa [#allocation4], 0  ;;  %s6315_s9 = smov [#allocation2]   ;;  %s6267_s13 = scalar_lea.hbm %s8563_s1, 768 }
   0x2   :  { %s16_s10 = sshll.u32 %s6315_s9, 4  ;;  %p6268_p0 = scmp.ne.s32.totalorder %s8563_s1, %s6267_s13  ;;  %s17_s10 = int_to_ptr.vmem [resolvable:$true] %s16_s10 }
   0x3   :  { %p6271_p1 = scmp.lt.u32.totalorder %s6267_s13, %s8563_s1 }
   0x5   :  { %p6273_p2 = pnand %p6271_p1, %p6268_p0 }
   0x7   :  { %6276 = shalt.err (!%p6273_p2)
}
   0x8   :  { %s6277_s18 = scalar_lea.vmem %s17_s10, 768  ;;  %p6282_p4 = scmp.lt.s32.totalorder %s17_s10, %s17_s10 }
   0x9   :  { %p6278_p3 = scmp.ne.s32.totalorder %s17_s10, %s6277_s18  ;;  %p6283_p5 = scmp.lt.s32.totalorder %s6277_s18, %s6277_s18 }
   0xb   :  { %p6284_p6 = por %p6283_p5, %p6282_p4 }
   0xd   :  { %p6285_p7 = pnand %p6284_p6, %p6278_p3 }
   0xf   :  { %6288 = shalt.err (!%p6285_p7)
}
  0x10   :  { %s6316_s19 = smov 256   ;;  %s6317_s20 = smov 16  }
  0x11   :  { %22 = dma.hbm_to_vmem [thread:$0]  %s8563_s1, 768, %s17_s10, [#allocation3], %s6316_s19, %s6316_s19, %s6317_s20  }
  0x12   :  { %6311 = dma.done.wait [#allocation3], 768  }
  0x13   :  { %6312 = vsyncadd [#allocation3], 4294966528  ;;  %v6318_v0 = vmov 0   ;;  %v159_v1 = vld [vmem:[%s8562_s0] sm:$0xff]  ;;  %v161_v2 = vld [vmem:[%s8562_s0 + $0x10] sm:$0xff]  ;;  %v32_v4 = vlaneseq  ;;  %s6323_s1 = smov 8  }
  0x14   :  { %6229 = vset.pattern.permute.xlu0 %v6318_v0  ;;  %6230 = vset.pattern.permute.xlu1 %v6318_v0  ;;  %v160_v3 = vld [vmem:[%s8562_s0 + $0x8] sm:$0xff]  ;;  %v26_v5 = vld [vmem:[#allocation2] sm:$0xff]  ;;  %s6322_s0 = smov 4   ;;  %s6324_s29 = smov 12   ;;  %vm5877_vm9 = vcmask 31744   ;;  %vm5879_vm10 = vcmask 64512  }
  0x15   :  { %164 = vperm.xlu0 %6229, %v159_v1   ;;  %174 = vperm.xlu1 %6230, %v161_v2   ;;  %v27_v6 = vld [vmem:[#allocation2 + $0x8] sm:$0xff]  ;;  %v40_v7 = vand.u32 127, %v32_v4  ;;  %v6179_v8 = vmul.f32 -1.442695, %v26_v5  ;;  %v93_v19 = vmul.f32 1.442695, %v26_v5 }
  0x16   :  { %v6180_v9 = vmul.f32 -1.442695, %v27_v6  ;;  %v95_v20 = vmul.f32 1.442695, %v27_v6  ;;  %v6390_v23 = vshrl.u32 %v32_v4, 7  ;;  %v30_v35 = vld [vmem:[#allocation2 + $0x20] sm:$0xff] }
  0x17   :  { %v41_v10 = vadd.s32 128, %v40_v7  ;;  %6231 = vpow2.f32 %v6179_v8  ;;  %v42_v11 = vcvt.s32.f32 %v40_v7  ;;  %v31_v36 = vld [vmem:[#allocation2 + $0x28] sm:$0xff]  ;;  %v6183_v40 = vmul.f32 -1.442695, %v30_v35  ;;  %s6325_s30 = smov 20   ;;  %s6326_s3 = smov 24  }
  0x18   :  { %6233 = vpow2.f32 %v6180_v9  ;;  %v36_v26 = vand.u32 3, %v6390_v23  ;;  %v6184_v41 = vmul.f32 -1.442695, %v31_v36  ;;  %v35_v50 = vadd.s32 16, %v6390_v23  ;;  %s6327_s4 = smov 28   ;;  %s6328_s5 = smov 32  }
  0x19   :  { %169 = vperm.xlu0 %6229, %v160_v3   ;;  %v43_v12 = vcvt.s32.f32 %v41_v10  ;;  %v44_v13 = vadd.f32 0.5, %v42_v11  ;;  %6235 = vpow2.f32 %v93_v19  ;;  %v101_v51 = vmul.f32 1.442695, %v30_v35  ;;  %v29_v19 = vld [vmem:[#allocation2 + $0x18] sm:$0xff]  ;;  %s6329_s6 = smov 40   ;;  %s6330_s7 = smov 36  }
  0x1a   :  { %6237 = vpow2.f32 %v95_v20  ;;  %vm132_vm0 = vcmp.eq.s32.totalorder %v36_v26, 1  ;;  %vm117_vm1 = vcmp.eq.s32.totalorder %v36_v26, 0  ;;  %vm90_vm2 = vcmp.eq.s32.totalorder %v36_v26, 2  ;;  %s6331_s8 = smov 44   ;;  %s6332_s9 = smov 48  }
  0x1b   :  { %v45_v14 = vadd.f32 0.5, %v43_v12  ;;  %v46_v17 = vmul.f32 0.0625, %v44_v13  ;;  %v103_v54 = vmul.f32 1.442695, %v31_v36  ;;  %v38_v59 = vand.u32 3, %v35_v50  ;;  %s6333_s10 = smov 52  }
  0x1c   :  { %s6334_s11 = smov 56   ;;  %s6335_s12 = smov 60   ;;  %vm5881_vm11 = vcmask 97280   ;;  %vm5883_vm12 = vcmask 130048   ;;  %vm5885_vm13 = vcmask 162816   ;;  %vm5887_vm14 = vcmask 195584  }
  0x1d   :  { %v47_v18 = vmul.f32 0.0625, %v45_v14  ;;  %v6392_v24 = vfloor.f32 %v46_v17  ;;  %vm119_vm3 = vcmp.eq.s32.totalorder %v38_v59, 0  ;;  %vm134_vm4 = vcmp.eq.s32.totalorder %v38_v59, 1  ;;  %s6336_s13 = smov 64   ;;  %s6337_s14 = smov 68  }
  0x1e   :  { %vm92_vm5 = vcmp.eq.s32.totalorder %v38_v59, 2  ;;  %s6338_s15 = smov 72   ;;  %s8746_s16 = smov 76   ;;  %vm5889_vm15 = vcmask 228352  }
  0x1f   :  { %v6394_v25 = vfloor.f32 %v47_v18  ;;  %v50_v27 = vmul.f32 16.0, %v6392_v24  ;;  %v141_v33 = vsel %vm132_vm0, %v6392_v24, 0.0  ;;  %v145_v63 = vsel %vm134_vm4, %v6392_v24, 0.0  ;;  %v28_v18 = vld [vmem:[#allocation2 + $0x10] sm:$0xff]  ;;  %s6340_s17 = smov 80   ;;  %s8744_s18 = smov 84  }
  0x20   :  { %v6181_v20 = vmul.f32 -1.442695, %v28_v18  ;;  %s6342_s19 = smov 88   ;;  %s8742_s21 = smov 96  }
  0x21   :  { %v6232_v15 = vpop.eup %6231  ;;  %v51_v28 = vmul.f32 16.0, %v6394_v25  ;;  %v6399_v29 = vsub.f32 %v42_v11, %v50_v27  ;;  %v142_v34 = vsel %vm132_vm0, %v6394_v25, 0.0  ;;  %v146_v1 = vsel %vm134_vm4, %v6394_v25, 0.0  ;;  %s6344_s22 = smov 92   ;;  %s8738_s23 = smov 104  }
  0x22   :  { %v6234_v16 = vpop.eup %6233  ;;  %v72_v21 = vadd.f32 1.0, %v6232_v15  ;;  %v97_v27 = vmul.f32 1.442695, %v28_v18  ;;  %s6346_s24 = smov 100   ;;  %s8714_s25 = smov 108   ;;  %vm5891_vm0 = vcmask 261120  }
  0x23   :  { %v73_v22 = vadd.f32 1.0, %v6234_v16  ;;  %v6401_v30 = vsub.f32 %v43_v12, %v51_v28  ;;  %v6236_v31 = vpop.eup %6235  ;;  %v126_v38 = vsel %vm117_vm1, %v6399_v29, 0.0  ;;  %v130_v62 = vsel %vm119_vm3, %v6399_v29, 0.0  ;;  %s6348_s26 = smov 112   ;;  %s8683_s27 = smov 116  }
  0x24   :  { %6239 = vrcp.f32 %v72_v21  ;;  %v6238_v32 = vpop.eup %6237  ;;  %v147_v43 = vadd.f32 %v141_v33, %v126_v38  ;;  %v151_v3 = vadd.f32 %v145_v63, %v130_v62  ;;  %v6182_v21 = vmul.f32 -1.442695, %v29_v19  ;;  %s6350_s28 = smov 120  }
  0x25   :  { %6241 = vrcp.f32 %v73_v22  ;;  %v127_v39 = vsel %vm117_vm1, %v6401_v30, 0.0  ;;  %v131_v0 = vsel %vm119_vm3, %v6401_v30, 0.0  ;;  %v99_v28 = vmul.f32 1.442695, %v29_v19 }
  0x26   :  { %6243 = vpow2.f32 %v6183_v40  ;;  %v148_v44 = vadd.f32 %v142_v34, %v127_v39  ;;  %v152_v6 = vadd.f32 %v146_v1, %v131_v0  ;;  %v34_v33 = vadd.s32 8, %v6390_v23 }
  0x27   :  { %6245 = vpow2.f32 %v6184_v41  ;;  %vm5893_vm1 = vcmask 293888   ;;  %vm8740_vm3 = vcmask 359424   ;;  %vm8741_vm4 = vcmask 392192  }
  0x28   :  { %6247 = vpow2.f32 %v101_v51  ;;  %v37_v34 = vand.u32 3, %v34_v33 }
  0x29   :  { %6249 = vpow2.f32 %v103_v54 }
  0x2a   :  { %vm118_vm6 = vcmp.eq.s32.totalorder %v37_v34, 0  ;;  %vm133_vm7 = vcmp.eq.s32.totalorder %v37_v34, 1  ;;  %vm91_vm8 = vcmp.eq.s32.totalorder %v37_v34, 2 }
  0x2b   :  { %v128_v38 = vsel %vm118_vm6, %v6399_v29, 0.0  ;;  %v129_v39 = vsel %vm118_vm6, %v6401_v30, 0.0  ;;  %v143_v40 = vsel %vm133_vm7, %v6392_v24, 0.0  ;;  %v144_v41 = vsel %vm133_vm7, %v6394_v25, 0.0 }
  0x2c   :  { %vm8725_vm6 = vcmask 457728   ;;  %vm8724_vm7 = vcmask 490496  }
  0x2e   :  { %v6240_v37 = vpop.eup %6239 }
  0x2f   :  { %v6242_v42 = vpop.eup %6241  ;;  %v111_v45 = vsel %vm90_vm2, %v6236_v31, %v6240_v37 }
  0x30   :  { %v112_v46 = vsel %vm90_vm2, %v6238_v32, %v6242_v42  ;;  %v153_v47 = vadd.f32 %v147_v43, %v111_v45  ;;  %v6244_v55 = vpop.eup %6243  ;;  %v149_v43 = vadd.f32 %v143_v40, %v128_v38  ;;  %vm8748_vm2 = vcmask 326656  }
  0x31   :  { %v154_v48 = vadd.f32 %v148_v44, %v112_v46  ;;  %v6246_v56 = vpop.eup %6245  ;;  %v76_v60 = vadd.f32 1.0, %v6244_v55  ;;  %v150_v44 = vadd.f32 %v144_v41, %v129_v39 }
  0x32   :  { %v77_v61 = vadd.f32 1.0, %v6246_v56  ;;  %v6248_v2 = vpop.eup %6247 }
  0x33   :  { %6251 = vrcp.f32 %v76_v60  ;;  %v6250_v4 = vpop.eup %6249 }
  0x34   :  { %6253 = vrcp.f32 %v77_v61 }
  0x35   :  { %6255 = vpow2.f32 %v6181_v20 }
  0x36   :  { %6257 = vpow2.f32 %v6182_v21 }
  0x37   :  { %6259 = vpow2.f32 %v97_v27 }
  0x38   :  { %6261 = vpow2.f32 %v99_v28 }
  0x3d   :  { %v6252_v5 = vpop.eup %6251 }
  0x3e   :  { %v115_v7 = vsel %vm92_vm5, %v6248_v2, %v6252_v5  ;;  %v6254_v8 = vpop.eup %6253 }
  0x3f   :  { %v157_v9 = vadd.f32 %v151_v3, %v115_v7  ;;  %v116_v11 = vsel %vm92_vm5, %v6250_v4, %v6254_v8  ;;  %v6256_v22 = vpop.eup %6255  ;;  %vm8723_vm5 = vcmask 424960  }
  0x40   :  { %v158_v12 = vadd.f32 %v152_v6, %v116_v11  ;;  %v6258_v26 = vpop.eup %6257  ;;  %v74_v31 = vadd.f32 1.0, %v6256_v22 }
  0x41   :  { %v75_v32 = vadd.f32 1.0, %v6258_v26  ;;  %v6260_v35 = vpop.eup %6259 }
  0x42   :  { %6263 = vrcp.f32 %v74_v31  ;;  %v6262_v36 = vpop.eup %6261 }
  0x43   :  { %6265 = vrcp.f32 %v75_v32 }
  0x4c   :  { %v6264_v37 = vpop.eup %6263 }
  0x4d   :  { %v6266_v42 = vpop.eup %6265  ;;  %v113_v45 = vsel %vm91_vm8, %v6260_v35, %v6264_v37 }
  0x4e   :  { %v114_v46 = vsel %vm91_vm8, %v6262_v36, %v6266_v42  ;;  %vm8727_vm8 = vcmask 523264  }
  0x94   :  { %v165_v49 = vpop.permute.xlu0 %164  ;;  %v175_v10 = vpop.permute.xlu1 %174 }
  0x95   :  { %v177_v52 = vmul.f32 %v165_v49, %v153_v47  ;;  %v178_v53 = vmul.f32 %v165_v49, %v154_v48  ;;  %v6412_v13 = vmul.f32 %v175_v10, %v157_v9  ;;  %v6414_v14 = vmul.f32 %v175_v10, %v158_v12 }
  0x96   :  { %v155_v47 = vadd.f32 %v149_v43, %v113_v45  ;;  %v156_v48 = vadd.f32 %v150_v44, %v114_v46 }
  0x97   :  { %v6185_v57 = vcombine.low %v178_v53, %v178_v53  ;;  %v189_v58 = vcombine.low %v177_v52, %v178_v53  ;;  %v190_v16 = vcombine.high %v177_v52, %v178_v53  ;;  %v6186_v17 = vcombine.high %v178_v53, %v178_v53 }
  0x98   :  { %v170_v49 = vpop.permute.xlu0 %169  ;;  %v193_v15 = vcombine.low %v6412_v13, %v6414_v14 }
  0x99   :  { %245 = vxpose.xlu0.b32.start.end [1/1] (short) %v6185_v57, 128  ;;  %213 = vxpose.xlu1.b32.start.end [1/1] (short) %v189_v58, 128  ;;  %v179_v50 = vmul.f32 %v170_v49, %v155_v47  ;;  %v180_v51 = vmul.f32 %v170_v49, %v156_v48 }
  0x9b   :  { %v191_v52 = vcombine.low %v179_v50, %v180_v51  ;;  %v6187_v53 = vcombine.low %v180_v51, %v180_v51  ;;  %v6188_v18 = vcombine.high %v180_v51, %v180_v51 }
  0xd6   :  { %277 = vxpose.xlu0.b32.start.end [1/1] (short) %v190_v16, 128  ;;  %309 = vxpose.xlu1.b32.start.end [1/1] (short) %v6186_v17, 128  ;;  %v192_v17 = vcombine.high %v179_v50, %v180_v51 }
 0x113   :  { %341 = vxpose.xlu0.b32.start.end [1/1] (short) %v191_v52, 128  ;;  %373 = vxpose.xlu1.b32.start.end [1/1] (short) %v6187_v53, 128 }
 0x119   :  { %v6423_v29 = vpop.trf.xlu0  ;;  %v6425_v24 = vpop.trf.xlu1 }
 0x11a   :  { %8753 = vst [vmem:[#allocation8_spill] sm:$0xff] %v6423_v29 }
 0x11d   :  { %v6427_v25 = vpop.trf.xlu0  ;;  %v6429_v30 = vpop.trf.xlu1 }
 0x11e   :  { %8754 = vst [vmem:[#allocation9_spill] sm:$0xff] %v6427_v25 }
 0x121   :  { %v6431_v54 = vpop.trf.xlu0  ;;  %v6433_v55 = vpop.trf.xlu1 }
 0x122   :  { %8755 = vst [vmem:[#allocation10_spill] sm:$0xff] %v6431_v54 }
 0x125   :  { %v6435_v56 = vpop.trf.xlu0  ;;  %v6437_v57 = vpop.trf.xlu1 }
 0x126   :  { %8756 = vst [vmem:[#allocation11_spill] sm:$0xff] %v6435_v56 }
 0x129   :  { %v6439_v58 = vpop.trf.xlu0  ;;  %v6441_v59 = vpop.trf.xlu1 }
 0x12a   :  { %8757 = vst [vmem:[#allocation12_spill] sm:$0xff] %v6439_v58 }
 0x12d   :  { %v6443_v60 = vpop.trf.xlu0  ;;  %v6445_v61 = vpop.trf.xlu1 }
 0x12e   :  { %8758 = vst [vmem:[#allocation13_spill] sm:$0xff] %v6443_v60 }
 0x131   :  { %v6447_v62 = vpop.trf.xlu0  ;;  %v6449_v63 = vpop.trf.xlu1 }
 0x132   :  { %8759 = vst [vmem:[#allocation14_spill] sm:$0xff] %v6447_v62 }
 0x135   :  { %v6451_v0 = vpop.trf.xlu0  ;;  %v6453_v1 = vpop.trf.xlu1 }
 0x136   :  { %8760 = vst [vmem:[#allocation15_spill] sm:$0xff] %v6451_v0  ;;  %8761 = vst [vmem:[#allocation16_spill] sm:$0xff] %v6453_v1 }
 0x139   :  { %v6455_v2 = vpop.trf.xlu0  ;;  %v6457_v3 = vpop.trf.xlu1 }
 0x13a   :  { %8762 = vst [vmem:[#allocation17_spill] sm:$0xff] %v6455_v2 }
 0x13d   :  { %v6459_v4 = vpop.trf.xlu0  ;;  %v6461_v5 = vpop.trf.xlu1 }
 0x13e   :  { %8763 = vst [vmem:[#allocation18_spill] sm:$0xff] %v6459_v4  ;;  %8764 = vst [vmem:[#allocation19_spill] sm:$0xff] %v6461_v5 }
 0x141   :  { %v6463_v6 = vpop.trf.xlu0  ;;  %v6465_v7 = vpop.trf.xlu1 }
 0x142   :  { %8765 = vst [vmem:[#allocation20_spill] sm:$0xff] %v6463_v6  ;;  %8766 = vst [vmem:[#allocation21_spill] sm:$0xff] %v6465_v7 }
 0x145   :  { %v6467_v8 = vpop.trf.xlu0  ;;  %v6469_v9 = vpop.trf.xlu1 }
 0x146   :  { %8767 = vst [vmem:[#allocation22_spill] sm:$0xff] %v6467_v8  ;;  %8768 = vst [vmem:[#allocation23_spill] sm:$0xff] %v6469_v9 }
 0x149   :  { %v6471_v10 = vpop.trf.xlu0  ;;  %v6473_v11 = vpop.trf.xlu1 }
 0x14a   :  { %8769 = vst [vmem:[#allocation24_spill] sm:$0xff] %v6471_v10 }
 0x14d   :  { %v6475_v12 = vpop.trf.xlu0  ;;  %v6477_v16 = vpop.trf.xlu1 }
 0x14e   :  { %8770 = vst [vmem:[#allocation25_spill] sm:$0xff] %v6475_v12  ;;  %8771 = vst [vmem:[#allocation26_spill] sm:$0xff] %v6477_v16 }
 0x151   :  { %v6479_v19 = vpop.trf.xlu0  ;;  %405 = vxpose.xlu0.b32.start.end [1/1] (short) %v192_v17, 128  ;;  %v6481_v20 = vpop.trf.xlu1  ;;  %437 = vxpose.xlu1.b32.start.end [1/1] (short) %v6188_v18, 128 }
 0x152   :  { %8772 = vst [vmem:[#allocation27_spill] sm:$0xff] %v6479_v19  ;;  %8773 = vst [vmem:[#allocation28_spill] sm:$0xff] %v6481_v20 }
 0x155   :  { %v6483_v21 = vpop.trf.xlu0  ;;  %v6485_v22 = vpop.trf.xlu1 }
 0x156   :  { %8774 = vst [vmem:[#allocation29_spill] sm:$0xff] %v6483_v21  ;;  %8775 = vst [vmem:[#allocation30_spill] sm:$0xff] %v6485_v22  ;;  %v6189_v21 = vcombine.low %v6414_v14, %v6414_v14 }
 0x159   :  { %v6487_v26 = vpop.trf.xlu0  ;;  %v6489_v27 = vpop.trf.xlu1 }
 0x15a   :  { %8776 = vst [vmem:[#allocation31_spill] sm:$0xff] %v6489_v27 }
 0x15d   :  { %v6491_v28 = vpop.trf.xlu0  ;;  %v6493_v31 = vpop.trf.xlu1 }
 0x15e   :  { %8777 = vst [vmem:[#allocation32_spill] sm:$0xff] %v6493_v31 }
 0x161   :  { %v6495_v32 = vpop.trf.xlu0  ;;  %v6497_v33 = vpop.trf.xlu1 }
 0x162   :  { %8778 = vst [vmem:[#allocation33_spill] sm:$0xff] %v6497_v33 }
 0x165   :  { %v6499_v34 = vpop.trf.xlu0  ;;  %v6501_v35 = vpop.trf.xlu1 }
 0x166   :  { %8779 = vst [vmem:[#allocation34_spill] sm:$0xff] %v6501_v35 }
 0x169   :  { %v6503_v36 = vpop.trf.xlu0  ;;  %v6505_v37 = vpop.trf.xlu1 }
 0x16a   :  { %8780 = vst [vmem:[#allocation35_spill] sm:$0xff] %v6505_v37 }
 0x16d   :  { %v6507_v38 = vpop.trf.xlu0  ;;  %v6509_v39 = vpop.trf.xlu1 }
 0x16e   :  { %8781 = vst [vmem:[#allocation36_spill] sm:$0xff] %v6509_v39 }
 0x171   :  { %v6511_v40 = vpop.trf.xlu0  ;;  %v6513_v41 = vpop.trf.xlu1 }
 0x172   :  { %8782 = vst [vmem:[#allocation37_spill] sm:$0xff] %v6513_v41 }
 0x175   :  { %v6515_v42 = vpop.trf.xlu0  ;;  %v6517_v43 = vpop.trf.xlu1 }
 0x176   :  { %8783 = vst [vmem:[#allocation38_spill] sm:$0xff] %v6515_v42  ;;  %8784 = vst [vmem:[#allocation39_spill] sm:$0xff] %v6517_v43 }
 0x179   :  { %v6519_v44 = vpop.trf.xlu0  ;;  %v6521_v45 = vpop.trf.xlu1 }
 0x17a   :  { %8785 = vst [vmem:[#allocation40_spill] sm:$0xff] %v6521_v45 }
 0x17d   :  { %v6523_v46 = vpop.trf.xlu0  ;;  %v6525_v47 = vpop.trf.xlu1 }
 0x17e   :  { %8786 = vst [vmem:[#allocation41_spill] sm:$0xff] %v6523_v46  ;;  %8787 = vst [vmem:[#allocation42_spill] sm:$0xff] %v6525_v47 }
 0x181   :  { %v6527_v48 = vpop.trf.xlu0  ;;  %v6529_v49 = vpop.trf.xlu1 }
 0x182   :  { %8788 = vst [vmem:[#allocation43_spill] sm:$0xff] %v6527_v48  ;;  %8789 = vst [vmem:[#allocation44_spill] sm:$0xff] %v6529_v49 }
 0x185   :  { %v6531_v50 = vpop.trf.xlu0  ;;  %v6533_v51 = vpop.trf.xlu1 }
 0x186   :  { %8790 = vst [vmem:[#allocation45_spill] sm:$0xff] %v6531_v50  ;;  %8791 = vst [vmem:[#allocation46_spill] sm:$0xff] %v6533_v51 }
 0x189   :  { %v6535_v52 = vpop.trf.xlu0  ;;  %v6537_v53 = vpop.trf.xlu1 }
 0x18a   :  { %8792 = vst [vmem:[#allocation47_spill] sm:$0xff] %v6537_v53 }
 0x18d   :  { %v6539_v17 = vpop.trf.xlu0  ;;  %v6541_v18 = vpop.trf.xlu1 }
 0x18e   :  { %8793 = vst [vmem:[#allocation48_spill] sm:$0xff] %v6539_v17  ;;  %8794 = vst [vmem:[#allocation49_spill] sm:$0xff] %v6541_v18 }
 0x191   :  { %v6547_v8 = vpop.trf.xlu0  ;;  %469 = vxpose.xlu0.b32.start.end [1/1] (short) %v193_v15, 128  ;;  %v6549_v19 = vpop.trf.xlu1  ;;  %501 = vxpose.xlu1.b32.start.end [1/1] (short) %v6189_v21, 128 }
 0x192   :  { %8795 = vst [vmem:[#allocation50_spill] sm:$0xff] %v6547_v8  ;;  %8796 = vst [vmem:[#allocation51_spill] sm:$0xff] %v6549_v19 }
 0x195   :  { %v6551_v51 = vpop.trf.xlu0  ;;  %v6553_v12 = vpop.trf.xlu1 }
 0x196   :  { %8797 = vst [vmem:[#allocation52_spill] sm:$0xff] %v6551_v51  ;;  %8798 = vst [vmem:[#allocation53_spill] sm:$0xff] %v6553_v12  ;;  %v6190_v51 = vcombine.high %v6414_v14, %v6414_v14 }
 0x199   :  { %v6555_v6 = vpop.trf.xlu0  ;;  %v6557_v49 = vpop.trf.xlu1 }
 0x19a   :  { %8799 = vst [vmem:[#allocation54_spill] sm:$0xff] %v6557_v49 }
 0x19d   :  { %v6559_v18 = vpop.trf.xlu0  ;;  %v6561_v4 = vpop.trf.xlu1 }
 0x19e   :  { %8800 = vst [vmem:[#allocation55_spill] sm:$0xff] %v6561_v4 }
 0x1a1   :  { %v6563_v47 = vpop.trf.xlu0  ;;  %v6565_v0 = vpop.trf.xlu1 }
 0x1a2   :  { %8801 = vst [vmem:[#allocation56_spill] sm:$0xff] %v6565_v0 }
 0x1a5   :  { %v6567_v15 = vpop.trf.xlu0  ;;  %v6569_v19 = vpop.trf.xlu1 }
 0x1a6   :  { %8802 = vst [vmem:[#allocation57_spill] sm:$0xff] %v6569_v19 }
 0x1a9   :  { %v6571_v21 = vpop.trf.xlu0  ;;  %v6573_v43 = vpop.trf.xlu1 }
 0x1aa   :  { %8803 = vst [vmem:[#allocation58_spill] sm:$0xff] %v6573_v43 }
 0x1ad   :  { %v6575_v12 = vpop.trf.xlu0  ;;  %v6577_v62 = vpop.trf.xlu1 }
 0x1ae   :  { %8804 = vst [vmem:[#allocation59_spill] sm:$0xff] %v6577_v62 }
 0x1b1   :  { %v6579_v41 = vpop.trf.xlu0  ;;  %v6581_v60 = vpop.trf.xlu1 }
 0x1b2   :  { %8805 = vst [vmem:[#allocation60_spill] sm:$0xff] %v6581_v60 }
 0x1b5   :  { %v6583_v39 = vpop.trf.xlu0  ;;  %v6585_v56 = vpop.trf.xlu1 }
 0x1b6   :  { %8806 = vst [vmem:[#allocation61_spill] sm:$0xff] %v6583_v39  ;;  %8807 = vst [vmem:[#allocation62_spill] sm:$0xff] %v6585_v56 }
 0x1b9   :  { %v6587_v35 = vpop.trf.xlu0  ;;  %v6589_v54 = vpop.trf.xlu1 }
 0x1ba   :  { %8808 = vst [vmem:[#allocation63_spill] sm:$0xff] %v6589_v54 }
 0x1bd   :  { %v6591_v19 = vpop.trf.xlu0  ;;  %v6593_v0 = vpop.trf.xlu1 }
 0x1be   :  { %8809 = vst [vmem:[#allocation64_spill] sm:$0xff] %v6591_v19  ;;  %8810 = vst [vmem:[#allocation65_spill] sm:$0xff] %v6593_v0 }
 0x1c1   :  { %v6595_v33 = vpop.trf.xlu0  ;;  %v6597_v25 = vpop.trf.xlu1 }
 0x1c2   :  { %8811 = vst [vmem:[#allocation66_spill] sm:$0xff] %v6595_v33  ;;  %8812 = vst [vmem:[#allocation67_spill] sm:$0xff] %v6597_v25  ;;  %v8819_v25 = vcombine.high %v6412_v13, %v6414_v14 }
 0x1c5   :  { %v6599_v62 = vpop.trf.xlu0  ;;  %v6601_v4 = vpop.trf.xlu1 }
 0x1c6   :  { %8813 = vst [vmem:[#allocation68_spill] sm:$0xff] %v6599_v62  ;;  %8814 = vst [vmem:[#allocation69_spill] sm:$0xff] %v6601_v4 }
 0x1c9   :  { %v6603_v60 = vpop.trf.xlu0  ;;  %v6605_v31 = vpop.trf.xlu1 }
 0x1ca   :  { %8815 = vst [vmem:[#allocation70_spill] sm:$0xff] %v6605_v31 }
 0x1cd   :  { %v6607_v56 = vpop.trf.xlu0  ;;  %v6609_v22 = vpop.trf.xlu1 }
 0x1ce   :  { %8816 = vst [vmem:[#allocation71_spill] sm:$0xff] %v6607_v56  ;;  %8817 = vst [vmem:[#allocation72_spill] sm:$0xff] %v6609_v22 }
 0x1d1   :  { %v6613_v0 = vpop.trf.xlu0  ;;  %533 = vxpose.xlu0.b32.start.end [1/1] (short) %v8819_v25, 128  ;;  %v6618_v20 = vpop.trf.xlu1  ;;  %565 = vxpose.xlu1.b32.start.end [1/1] (short) %v6190_v51, 128 }
 0x1d2   :  { %8818 = vst [vmem:[#allocation73_spill] sm:$0xff] %v6613_v0  ;;  %8820 = vst [vmem:[#allocation74_spill] sm:$0xff] %v6618_v20 }
 0x1d5   :  { %v6620_v4 = vpop.trf.xlu0  ;;  %v6622_v8 = vpop.trf.xlu1 }
 0x1d6   :  { %8821 = vst [vmem:[#allocation75_spill] sm:$0xff] %v6620_v4  ;;  %8822 = vst [vmem:[#allocation76_spill] sm:$0xff] %v6622_v8 }
 0x1d9   :  { %v6624_v16 = vpop.trf.xlu0  ;;  %v6626_v56 = vpop.trf.xlu1 }
 0x1da   :  { %8823 = vst [vmem:[#allocation77_spill] sm:$0xff] %v6626_v56 }
 0x1dd   :  { %v6628_v22 = vpop.trf.xlu0  ;;  %v6630_v17 = vpop.trf.xlu1 }
 0x1de   :  { %8824 = vst [vmem:[#allocation78_spill] sm:$0xff] %v6630_v17 }
 0x1e1   :  { %v6632_v0 = vpop.trf.xlu0  ;;  %v6634_v50 = vpop.trf.xlu1 }
 0x1e2   :  { %8825 = vst [vmem:[#allocation79_spill] sm:$0xff] %v6634_v50 }
 0x1e5   :  { %v6636_v13 = vpop.trf.xlu0  ;;  %v6638_v14 = vpop.trf.xlu1 }
 0x1e6   :  { %8826 = vst [vmem:[#allocation80_spill] sm:$0xff] %v6638_v14 }
 0x1e9   :  { %v6640_v25 = vpop.trf.xlu0  ;;  %v6642_v51 = vpop.trf.xlu1 }
 0x1ea   :  { %8827 = vst [vmem:[#allocation81_spill] sm:$0xff] %v6642_v51 }
 0x1ed   :  { %v6644_v8 = vpop.trf.xlu0  ;;  %v6646_v20 = vpop.trf.xlu1 }
 0x1ee   :  { %8828 = vst [vmem:[#allocation82_spill] sm:$0xff] %v6646_v20 }
 0x1f1   :  { %v6648_v4 = vpop.trf.xlu0  ;;  %v6650_v9 = vpop.trf.xlu1 }
 0x1f2   :  { %8829 = vst [vmem:[#allocation83_spill] sm:$0xff] %v6650_v9 }
 0x1f5   :  { %v6652_v17 = vpop.trf.xlu0  ;;  %v6654_v62 = vpop.trf.xlu1 }
 0x1f6   :  { %8830 = vst [vmem:[#allocation84_spill] sm:$0xff] %v6652_v17  ;;  %8831 = vst [vmem:[#allocation85_spill] sm:$0xff] %v6654_v62 }
 0x1f9   :  { %v6656_v50 = vpop.trf.xlu0  ;;  %v6658_v48 = vpop.trf.xlu1 }
 0x1fa   :  { %8832 = vst [vmem:[#allocation86_spill] sm:$0xff] %v6658_v48 }
 0x1fd   :  { %v6660_v14 = vpop.trf.xlu0  ;;  %v6662_v7 = vpop.trf.xlu1 }
 0x1fe   :  { %8833 = vst [vmem:[#allocation87_spill] sm:$0xff] %v6660_v14  ;;  %8834 = vst [vmem:[#allocation88_spill] sm:$0xff] %v6662_v7 }
 0x201   :  { %v6664_v33 = vpop.trf.xlu0  ;;  %v6666_v53 = vpop.trf.xlu1 }
 0x202   :  { %8835 = vst [vmem:[#allocation89_spill] sm:$0xff] %v6664_v33  ;;  %8836 = vst [vmem:[#allocation90_spill] sm:$0xff] %v6666_v53 }
 0x205   :  { %v6668_v20 = vpop.trf.xlu0  ;;  %v6670_v46 = vpop.trf.xlu1 }
 0x206   :  { %8837 = vst [vmem:[#allocation91_spill] sm:$0xff] %v6668_v20  ;;  %8838 = vst [vmem:[#allocation92_spill] sm:$0xff] %v6670_v46 }
 0x209   :  { %v6672_v9 = vpop.trf.xlu0  ;;  %v6674_v45 = vpop.trf.xlu1 }
 0x20a   :  { %8839 = vst [vmem:[#allocation93_spill] sm:$0xff] %v6674_v45 }
 0x20d   :  { %v6676_v62 = vpop.trf.xlu0  ;;  %v6678_v10 = vpop.trf.xlu1 }
 0x20e   :  { %8840 = vst [vmem:[#allocation94_spill] sm:$0xff] %v6676_v62  ;;  %8841 = vst [vmem:[#allocation95_spill] sm:$0xff] %v6678_v10 }
 0x211   :  { %v6680_v48 = vpop.trf.xlu0  ;;  %v6682_v14 = vpop.trf.xlu1 }
 0x212   :  { %8842 = vst [vmem:[#allocation96_spill] sm:$0xff] %v6680_v48  ;;  %8843 = vst [vmem:[#allocation97_spill] sm:$0xff] %v6682_v14 }
 0x215   :  { %v6684_v7 = vpop.trf.xlu0  ;;  %v6686_v33 = vpop.trf.xlu1 }
 0x216   :  { %8844 = vst [vmem:[#allocation98_spill] sm:$0xff] %v6684_v7  ;;  %8845 = vst [vmem:[#allocation99_spill] sm:$0xff] %v6686_v33 }
 0x219   :  { %v485_v53 = vpop.trf.xlu0  ;;  %v6688_v20 = vpop.trf.xlu1 }
 0x21a   :  { %8846 = vst [vmem:[#allocation100_spill] sm:$0xff] %v6688_v20 }
 0x21d   :  { %v6690_v46 = vpop.trf.xlu0  ;;  %v6692_v31 = vpop.trf.xlu1 }
 0x21e   :  { %8847 = vst [vmem:[#allocation101_spill] sm:$0xff] %v6692_v31 }
 0x221   :  { %v6694_v45 = vpop.trf.xlu0  ;;  %v6698_v10 = vpop.trf.xlu1 }
 0x222   :  { %8848 = vst [vmem:[#allocation102_spill] sm:$0xff] %v6698_v10 }
 0x225   :  { %v6696_v62 = vpop.trf.xlu0  ;;  %v6702_v14 = vpop.trf.xlu1 }
 0x226   :  { %8849 = vst [vmem:[#allocation103_spill] sm:$0xff] %v6702_v14 }
 0x229   :  { %v6700_v48 = vpop.trf.xlu0  ;;  %v6708_v5 = vpop.trf.xlu1 }
 0x22a   :  { %8850 = vst [vmem:[#allocation104_spill] sm:$0xff] %v6708_v5  ;;  %v6319_v5 = vmov 1983009808  }
 0x22d   :  { %v6704_v7 = vpop.trf.xlu0  ;;  %v6712_v37 = vpop.trf.xlu1 }
 0x22e   :  { %8852 = vst [vmem:[#allocation106_spill] sm:$0xff] %v6712_v37 }
 0x231   :  { %v6706_v33 = vpop.trf.xlu0  ;;  %v6718_v2 = vpop.trf.xlu1 }
 0x232   :  { %8854 = vst [vmem:[#allocation108_spill] sm:$0xff] %v6718_v2  ;;  %v6320_v2 = vmov 1934713408  }
 0x233   :  { %v662_v43 = vunpack.c.l.s4 %v6320_v2 }
 0x235   :  { %v6710_v19 = vpop.trf.xlu0  ;;  %v6722_v54 = vpop.trf.xlu1 }
 0x236   :  { %8851 = vst [vmem:[#allocation105_spill] sm:$0xff] %v6710_v19  ;;  %8856 = vst [vmem:[#allocation110_spill] sm:$0xff] %v6722_v54  ;;  %v600_v19 = vunpack.c.l.s4 %v6319_v5  ;;  %v613_v54 = vcombine.low %v6487_v26, %v6624_v16  ;;  %v663_v5 = vunpack.c.0.s8 %v662_v43  ;;  %v8675_v43 = vmov 0.0  }
 0x238   :  { %v601_v37 = vunpack.c.0.s8 %v600_v19 }
 0x239   :  { %v6714_v31 = vpop.trf.xlu0  ;;  %v6728_v27 = vpop.trf.xlu1 }
 0x23a   :  { %8858 = vst [vmem:[#allocation112_spill] sm:$0xff] %v6728_v27 }
 0x23d   :  { %v6716_v51 = vpop.trf.xlu0  ;;  %v6732_v58 = vpop.trf.xlu1 }
 0x23e   :  { %8853 = vst [vmem:[#allocation107_spill] sm:$0xff] %v6716_v51  ;;  %8860 = vst [vmem:[#allocation114_spill] sm:$0xff] %v6732_v58 }
 0x241   :  { %v6720_v10 = vpop.trf.xlu0 }
 0x242   :  { %8855 = vst [vmem:[#allocation109_spill] sm:$0xff] %v6720_v10  ;;  %v597_v10 = vcombine.low %v6425_v24, %v6555_v6 }
 0x245   :  { %v6724_v14 = vpop.trf.xlu0 }
 0x246   :  { %8857 = vst [vmem:[#allocation111_spill] sm:$0xff] %v6724_v14  ;;  %v6739_v14 = vsub.s32 %v601_v37, %v6390_v23  ;;  %v6752_v37 = vsub.s32 %v663_v5, %v6390_v23 }
 0x248   :  { %v621_v19 = vrot.slane %v613_v54, %v6739_v14  ;;  %v605_v58 = vrot.slane %v597_v10, %v6739_v14  ;;  %v636_v2 = vrot.slane %v485_v53, %v6739_v14 }
 0x249   :  { %v6726_v20 = vpop.trf.xlu0 }
 0x24a   :  { %v659_v39 = vcombine.low %v605_v58, %v621_v19  ;;  %v660_v42 = vcombine.high %v605_v58, %v621_v19  ;;  %v614_v58 = vcombine.high %v6487_v26, %v6624_v16 }
 0x24c   :  { %v6762_v49 = vrot.slane %v659_v39, %v6752_v37  ;;  %v674_v23 = vrot.slane %v660_v42, %v6752_v37  ;;  %v628_v39 = vrot.slane %v614_v58, %v6739_v14  ;;  %v731_v58 = vcombine.low %v6429_v30, %v6559_v18 }
 0x24d   :  { %v6730_v56 = vpop.trf.xlu0 }
 0x24e   :  { %8859 = vst [vmem:[#allocation113_spill] sm:$0xff] %v6730_v56  ;;  %v6746_v56 = vpop.trf.xlu1  ;;  %8866 = vst [vmem:[#allocation120_spill] sm:$0xff] %v6762_v49 }
 0x24f   :  { %8863 = vst [vmem:[#allocation117_spill] sm:$0xff] %v6746_v56 }
 0x251   :  { %v6734_v51 = vpop.trf.xlu0 }
 0x252   :  { %8861 = vst [vmem:[#allocation115_spill] sm:$0xff] %v6734_v51 }
 0x255   :  { %v6743_v27 = vpop.trf.xlu0 }
 0x256   :  { %8862 = vst [vmem:[#allocation116_spill] sm:$0xff] %v6743_v27  ;;  %v6754_v27 = vpop.trf.xlu1 }
 0x257   :  { %8864 = vst [vmem:[#allocation118_spill] sm:$0xff] %v6754_v27 }
 0x259   :  { %v549_v51 = vpop.trf.xlu0 }
 0x25a   :  { %v651_v1 = vrot.slane %v549_v51, %v6739_v14  ;;  %v644_v54 = vcombine.high %v549_v51, %v8675_v43 }
 0x25c   :  { %v691_v17 = vcombine.low %v636_v2, %v651_v1  ;;  %v692_v29 = vcombine.high %v636_v2, %v651_v1  ;;  %v629_v1 = vcombine.high %v485_v53, %v8675_v43  ;;  %v658_v51 = vrot.slane %v644_v54, %v6739_v14 }
 0x25d   :  { %v550_v2 = vpop.trf.xlu0 }
 0x25e   :  { %v6758_v56 = vrot.slane %v691_v17, %v6752_v37  ;;  %v706_v10 = vrot.slane %v692_v29, %v6752_v37  ;;  %v598_v17 = vcombine.high %v6425_v24, %v6555_v6  ;;  %v6773_v29 = vpop.trf.xlu1  ;;  %v643_v16 = vrot.slane %v629_v1, %v6739_v14 }
 0x25f   :  { %8867 = vst [vmem:[#allocation121_spill] sm:$0xff] %v6773_v29  ;;  %v747_v6 = vcombine.low %v6491_v28, %v6628_v22  ;;  %v785_v1 = vrot.slane %v550_v2, %v6739_v14 }
 0x260   :  { %8865 = vst [vmem:[#allocation119_spill] sm:$0xff] %v6758_v56  ;;  %v724_v5 = vcombine.high %v6762_v49, %v6758_v56  ;;  %v725_v19 = vcombine.low %v674_v23, %v706_v10  ;;  %v612_v26 = vrot.slane %v598_v17, %v6739_v14  ;;  %v707_v42 = vcombine.low %v643_v16, %v658_v51 }
 0x261   :  { %v726_v53 = vcombine.high %v674_v23, %v706_v10  ;;  %v755_v10 = vrot.slane %v747_v6, %v6739_v14  ;;  %v770_v23 = vrot.slane %v6690_v46, %v6739_v14 }
 0x262   :  { %4886 = vrot.lane.b32.xlu0 %v724_v5, %s6322_s0  ;;  %4890 = vrot.lane.b32.xlu1 %v725_v19, %s6323_s1  ;;  %v675_v24 = vcombine.low %v612_v26, %v628_v39  ;;  %v6783_v54 = vpop.trf.xlu1  ;;  %v715_v5 = vrot.slane %v707_v42, %v6752_v37  ;;  %v708_v19 = vcombine.high %v643_v16, %v658_v51 }
 0x263   :  { %8868 = vst [vmem:[#allocation122_spill] sm:$0xff] %v6783_v54  ;;  %v676_v17 = vcombine.high %v612_v26, %v628_v39  ;;  %v825_v27 = vcombine.low %v770_v23, %v785_v1  ;;  %v826_v42 = vcombine.high %v770_v23, %v785_v1 }
 0x264   :  { %v683_v43 = vrot.slane %v675_v24, %v6752_v37  ;;  %v722_v49 = vrot.slane %v708_v19, %v6752_v37  ;;  %v8871_v19 = vmov 0.0  }
 0x265   :  { %v690_v51 = vrot.slane %v676_v17, %v6752_v37  ;;  %v833_v16 = vrot.slane %v825_v27, %v6752_v37  ;;  %v763_v1 = vcombine.high %v6690_v46, %v8871_v19 }
 0x266   :  { %4894 = vrot.lane.b32.xlu1 %v726_v53, %s6324_s29  ;;  %v739_v53 = vrot.slane %v731_v58, %v6739_v14  ;;  %v727_v54 = vcombine.low %v683_v43, %v715_v5  ;;  %v6794_v29 = vpop.trf.xlu1  ;;  %v728_v39 = vcombine.high %v683_v43, %v715_v5  ;;  %v748_v43 = vcombine.high %v6491_v28, %v6628_v22 }
 0x267   :  { %8869 = vst [vmem:[#allocation123_spill] sm:$0xff] %v6794_v29  ;;  %v729_v26 = vcombine.low %v690_v51, %v722_v49  ;;  %v730_v29 = vcombine.high %v690_v51, %v722_v49  ;;  %v840_v5 = vrot.slane %v826_v42, %v6752_v37  ;;  %v777_v28 = vrot.slane %v763_v1, %v6739_v14 }
 0x268   :  { %v793_v56 = vcombine.low %v739_v53, %v755_v10  ;;  %4898 = vrot.lane.b32.xlu0 %v727_v54, %s6317_s20  ;;  %v794_v6 = vcombine.high %v739_v53, %v755_v10  ;;  %v778_v54 = vcombine.high %v550_v2, %v8871_v19  ;;  %v762_v22 = vrot.slane %v748_v43, %v6739_v14  ;;  %v551_v53 = vpop.trf.xlu0 }
 0x269   :  { %v865_v51 = vcombine.low %v6433_v55, %v6563_v47 }
 0x26a   :  { %4902 = vrot.lane.b32.xlu1 %v728_v39, %s6325_s30  ;;  %v801_v24 = vrot.slane %v793_v56, %v6752_v37  ;;  %v6803_v58 = vpop.trf.xlu1  ;;  %v732_v56 = vcombine.high %v6429_v30, %v6559_v18  ;;  %v792_v49 = vrot.slane %v778_v54, %v6739_v14  ;;  %v808_v2 = vrot.slane %v794_v6, %v6752_v37 }
 0x26b   :  { %8870 = vst [vmem:[#allocation124_spill] sm:$0xff] %v6803_v58  ;;  %v881_v18 = vcombine.low %v6495_v32, %v6632_v0  ;;  %v919_v39 = vrot.slane %v551_v53, %v6739_v14  ;;  %v904_v54 = vrot.slane %v6694_v45, %v6739_v14  ;;  %v873_v1 = vrot.slane %v865_v51, %v6739_v14 }
 0x26c   :  { %4906 = vrot.lane.b32.xlu0 %v729_v26, %s6326_s3  ;;  %v857_v27 = vcombine.low %v801_v24, %v833_v16  ;;  %v859_v17 = vcombine.low %v808_v2, %v840_v5  ;;  %v858_v10 = vcombine.high %v801_v24, %v833_v16  ;;  %v841_v23 = vcombine.low %v777_v28, %v792_v49 }
 0x26d   :  { %v842_v26 = vcombine.high %v777_v28, %v792_v49  ;;  %v889_v6 = vrot.slane %v881_v18, %v6739_v14  ;;  %v912_v18 = vcombine.high %v551_v53, %v8871_v19 }
 0x26e   :  { %4910 = vrot.lane.b32.xlu1 %v730_v29, %s6327_s4  ;;  %v6819_v46 = vpop.trf.xlu1  ;;  %v746_v29 = vrot.slane %v732_v56, %v6739_v14  ;;  %v849_v24 = vrot.slane %v841_v23, %v6752_v37  ;;  %v959_v56 = vcombine.low %v904_v54, %v919_v39  ;;  %v960_v23 = vcombine.high %v904_v54, %v919_v39 }
 0x26f   :  { %8872 = vst [vmem:[#allocation125_spill] sm:$0xff] %v6819_v46  ;;  %v856_v49 = vrot.slane %v842_v26, %v6752_v37  ;;  %v928_v51 = vcombine.high %v873_v1, %v889_v6  ;;  %v866_v39 = vcombine.high %v6433_v55, %v6563_v47  ;;  %v897_v26 = vcombine.high %v6694_v45, %v8871_v19 }
 0x270   :  { %4914 = vrot.lane.b32.xlu0 %v857_v27, %s6328_s5  ;;  %v809_v30 = vcombine.low %v746_v29, %v762_v22  ;;  %v810_v16 = vcombine.high %v746_v29, %v762_v22  ;;  %v860_v27 = vcombine.high %v808_v2, %v840_v5  ;;  %v927_v22 = vcombine.low %v873_v1, %v889_v6 }
 0x271   :  { %v967_v5 = vrot.slane %v959_v56, %v6752_v37  ;;  %v974_v54 = vrot.slane %v960_v23, %v6752_v37  ;;  %v942_v55 = vrot.slane %v928_v51, %v6752_v37  ;;  %v880_v45 = vrot.slane %v866_v39, %v6739_v14 }
 0x272   :  { %4918 = vrot.lane.b32.xlu1 %v858_v10, %s6330_s7  ;;  %v6829_v42 = vpop.trf.xlu1  ;;  %v817_v43 = vrot.slane %v809_v30, %v6752_v37  ;;  %v824_v28 = vrot.slane %v810_v16, %v6752_v37  ;;  %v882_v30 = vcombine.high %v6495_v32, %v6632_v0  ;;  %v935_v16 = vrot.slane %v927_v22, %v6752_v37 }
 0x273   :  { %8873 = vst [vmem:[#allocation126_spill] sm:$0xff] %v6829_v42  ;;  %v926_v32 = vrot.slane %v912_v18, %v6739_v14  ;;  %v911_v47 = vrot.slane %v897_v26, %v6739_v14  ;;  %v993_v1 = vcombine.low %v942_v55, %v974_v54  ;;  %v1015_v22 = vcombine.low %v6499_v34, %v6636_v13 }
 0x274   :  { %4922 = vrot.lane.b32.xlu0 %v859_v17, %s6329_s6  ;;  %v861_v17 = vcombine.low %v817_v43, %v849_v24  ;;  %v862_v10 = vcombine.high %v817_v43, %v849_v24  ;;  %v863_v2 = vcombine.low %v824_v28, %v856_v49  ;;  %v864_v24 = vcombine.high %v824_v28, %v856_v49 }
 0x275   :  { %v991_v43 = vcombine.low %v935_v16, %v967_v5  ;;  %v896_v0 = vrot.slane %v882_v30, %v6739_v14  ;;  %v992_v6 = vcombine.high %v935_v16, %v967_v5  ;;  %v994_v23 = vcombine.high %v942_v55, %v974_v54 }
 0x276   :  { %4926 = vrot.lane.b32.xlu1 %v860_v27, %s6331_s8  ;;  %v6841_v29 = vpop.trf.xlu1  ;;  %v552_v27 = vpop.trf.xlu0  ;;  %v999_v5 = vcombine.low %v6437_v57, %v6567_v15  ;;  %v1023_v16 = vrot.slane %v1015_v22, %v6739_v14  ;;  %v1038_v39 = vrot.slane %v6696_v62, %v6739_v14  ;;  %v976_v26 = vcombine.high %v911_v47, %v926_v32 }
 0x277   :  { %8874 = vst [vmem:[#allocation127_spill] sm:$0xff] %v6841_v29  ;;  %v943_v56 = vcombine.low %v880_v45, %v896_v0  ;;  %v944_v51 = vcombine.high %v880_v45, %v896_v0 }
 0x278   :  { %4930 = vrot.lane.b32.xlu0 %v861_v17, %s6332_s9  ;;  %v975_v17 = vcombine.low %v911_v47, %v926_v32  ;;  %v1007_v54 = vrot.slane %v999_v5, %v6739_v14  ;;  %v990_v0 = vrot.slane %v976_v26, %v6752_v37  ;;  %v1046_v32 = vcombine.high %v552_v27, %v8871_v19 }
 0x279   :  { %v951_v28 = vrot.slane %v943_v56, %v6752_v37  ;;  %v1016_v56 = vcombine.high %v6499_v34, %v6636_v13  ;;  %v1031_v5 = vcombine.high %v6696_v62, %v8871_v19  ;;  %v1149_v26 = vcombine.low %v6503_v36, %v6640_v25 }
 0x27a   :  { %4934 = vrot.lane.b32.xlu1 %v862_v10, %s6333_s10  ;;  %v6857_v53 = vpop.trf.xlu1  ;;  %v983_v10 = vrot.slane %v975_v17, %v6752_v37  ;;  %v6875_v30 = vpop.trf.xlu0  ;;  %v1061_v55 = vcombine.low %v1007_v54, %v1023_v16 }
 0x27b   :  { %8875 = vst [vmem:[#allocation128_spill] sm:$0xff] %v6857_v53  ;;  %v1030_v13 = vrot.slane %v1016_v56, %v6739_v14 }
 0x27c   :  { %4938 = vrot.lane.b32.xlu0 %v863_v2, %s6334_s11  ;;  %v1053_v2 = vrot.slane %v552_v27, %v6739_v14  ;;  %v995_v18 = vcombine.low %v951_v28, %v983_v10  ;;  %v996_v45 = vcombine.high %v951_v28, %v983_v10  ;;  %v1062_v28 = vcombine.high %v1007_v54, %v1023_v16 }
 0x27d   :  { %v1069_v34 = vrot.slane %v1061_v55, %v6752_v37  ;;  %v1060_v27 = vrot.slane %v1046_v32, %v6739_v14 }
 0x27e   :  { %4942 = vrot.lane.b32.xlu1 %v864_v24, %s6335_s12  ;;  %v6866_v49 = vpop.trf.xlu1  ;;  %v1094_v47 = vcombine.high %v1038_v39, %v1053_v2  ;;  %v1076_v16 = vrot.slane %v1062_v28, %v6752_v37  ;;  %v1180_v28 = vcombine.high %v6875_v30, %v8871_v19 }
 0x27f   :  { %8876 = vst [vmem:[#allocation129_spill] sm:$0xff] %v6866_v49 }
 0x280   :  { %4946 = vrot.lane.b32.xlu0 %v991_v43, %s6336_s13  ;;  %v1093_v43 = vcombine.low %v1038_v39, %v1053_v2  ;;  %v1108_v10 = vrot.slane %v1094_v47, %v6752_v37 }
 0x282   :  { %4950 = vrot.lane.b32.xlu1 %v992_v6, %s6337_s14  ;;  %v6881_v24 = vpop.trf.xlu1  ;;  %v6885_v6 = vpop.trf.xlu0  ;;  %v1101_v17 = vrot.slane %v1093_v43, %v6752_v37  ;;  %v1127_v55 = vcombine.low %v1076_v16, %v1108_v10 }
 0x283   :  { %8877 = vst [vmem:[#allocation130_spill] sm:$0xff] %v6881_v24  ;;  %v8896_v24 = vld [vmem:[#allocation16_spill] sm:$0xff] }
 0x284   :  { %4954 = vrot.lane.b32.xlu0 %v993_v1, %s6338_s15  ;;  %v958_v1 = vrot.slane %v944_v51, %v6752_v37  ;;  %v1045_v51 = vrot.slane %v1031_v5, %v6739_v14 }
 0x286   :  { %4958 = vrot.lane.b32.xlu1 %v994_v23, %s8746_s16  ;;  %v997_v22 = vcombine.low %v958_v1, %v990_v0  ;;  %v1000_v23 = vcombine.high %v6437_v57, %v6567_v15  ;;  %v6905_v2 = vpop.trf.xlu0  ;;  %v1125_v57 = vcombine.low %v1069_v34, %v1101_v17  ;;  %v998_v15 = vcombine.high %v958_v1, %v990_v0 }
 0x287   :  { %v1109_v54 = vcombine.low %v1045_v51, %v1060_v27  ;;  %v1126_v1 = vcombine.high %v1069_v34, %v1101_v17  ;;  %v1133_v0 = vcombine.low %v6441_v59, %v6571_v21  ;;  %v1110_v32 = vcombine.high %v1045_v51, %v1060_v27 }
 0x288   :  { %4962 = vrot.lane.b32.xlu0 %v995_v18, %s6340_s17  ;;  %v6898_v18 = vpop.trf.xlu1  ;;  %v1014_v62 = vrot.slane %v1000_v23, %v6739_v14  ;;  %v1172_v17 = vrot.slane %v6700_v48, %v6739_v14  ;;  %v1128_v34 = vcombine.high %v1076_v16, %v1108_v10  ;;  %v1165_v51 = vcombine.high %v6700_v48, %v8871_v19 }
 0x289   :  { %8878 = vst [vmem:[#allocation131_spill] sm:$0xff] %v6898_v18  ;;  %v1117_v5 = vrot.slane %v1109_v54, %v6752_v37  ;;  %v1134_v10 = vcombine.high %v6441_v59, %v6571_v21  ;;  %v1194_v16 = vrot.slane %v1180_v28, %v6739_v14  ;;  %v1283_v28 = vcombine.low %v6507_v38, %v6644_v8  ;;  %v8895_v18 = vld [vmem:[#allocation61_spill] sm:$0xff] }
 0x28a   :  { %4966 = vrot.lane.b32.xlu1 %v996_v45, %s8744_s18  ;;  %v1077_v39 = vcombine.low %v1014_v62, %v1030_v13  ;;  %v1187_v45 = vrot.slane %v6875_v30, %v6739_v14  ;;  %v1078_v56 = vcombine.high %v1014_v62, %v1030_v13  ;;  %v6920_v47 = vpop.trf.xlu0  ;;  %v1141_v13 = vrot.slane %v1133_v0, %v6739_v14 }
 0x28b   :  { %v1150_v62 = vcombine.high %v6503_v36, %v6640_v25  ;;  %v1148_v21 = vrot.slane %v1134_v10, %v6739_v14  ;;  %v1535_v53 = vcombine.low %v8896_v24, %v8895_v18 }
 0x28c   :  { %4970 = vrot.lane.b32.xlu0 %v997_v22, %s6342_s19  ;;  %v6914_v43 = vpop.trf.xlu1  ;;  %v1157_v22 = vrot.slane %v1149_v26, %v6739_v14  ;;  %v1085_v23 = vrot.slane %v1077_v39, %v6752_v37  ;;  %v1227_v27 = vcombine.low %v1172_v17, %v1187_v45  ;;  %v1124_v39 = vrot.slane %v1110_v32, %v6752_v37 }
 0x28d   :  { %8879 = vst [vmem:[#allocation132_spill] sm:$0xff] %v6914_v43  ;;  %v1092_v30 = vrot.slane %v1078_v56, %v6752_v37  ;;  %v1228_v36 = vcombine.high %v1172_v17, %v1187_v45  ;;  %v1179_v32 = vrot.slane %v1165_v51, %v6739_v14  ;;  %v8893_v43 = vld [vmem:[#allocation38_spill] sm:$0xff] }
 0x28e   :  { %4974 = vrot.lane.b32.xlu1 %v998_v15, %s6344_s22  ;;  %v1129_v15 = vcombine.low %v1085_v23, %v1117_v5  ;;  %v1195_v26 = vcombine.low %v1141_v13, %v1157_v22  ;;  %v6945_v25 = vpop.trf.xlu0  ;;  %v1130_v48 = vcombine.high %v1085_v23, %v1117_v5  ;;  %v6948_v54 = vrot.slane %v1227_v27, %v6752_v37 }
 0x28f   :  { %v1196_v0 = vcombine.high %v1141_v13, %v1157_v22  ;;  %v1242_v45 = vrot.slane %v1228_v36, %v6752_v37  ;;  %v1243_v17 = vcombine.low %v1179_v32, %v1194_v16  ;;  %v1132_v23 = vcombine.high %v1092_v30, %v1124_v39 }
 0x290   :  { %4978 = vrot.lane.b32.xlu0 %v1125_v57, %s8742_s21  ;;  %v6932_v57 = vpop.trf.xlu1  ;;  %v6957_v59 = vrot.slane %v1195_v26, %v6752_v37  ;;  %v1267_v27 = vcombine.low %v6445_v61, %v6575_v12  ;;  %v1291_v36 = vrot.slane %v1283_v28, %v6739_v14 }
 0x291   :  { %v1210_v13 = vrot.slane %v1196_v0, %v6752_v37  ;;  %v1314_v0 = vcombine.high %v6885_v6, %v8871_v19 }
 0x292   :  { %4982 = vrot.lane.b32.xlu1 %v1126_v1, %s6346_s24  ;;  %v1164_v1 = vrot.slane %v1150_v62, %v6739_v14  ;;  %v1260_v22 = vcombine.high %v6957_v59, %v6948_v54  ;;  %v1321_v62 = vrot.slane %v6885_v6, %v6739_v14  ;;  %v1268_v6 = vcombine.high %v6445_v61, %v6575_v12 }
 0x293   :  { %v1261_v51 = vcombine.low %v1210_v13, %v1242_v45  ;;  %v1685_v12 = vcombine.low %v6519_v44, %v6656_v50 }
 0x294   :  { %4986 = vrot.lane.b32.xlu0 %v1127_v55, %s8738_s23  ;;  %v1131_v55 = vcombine.low %v1092_v30, %v1124_v39  ;;  %v6953_v56 = vpop.trf.xlu1  ;;  %v1211_v5 = vcombine.low %v1148_v21, %v1164_v1  ;;  %v1251_v39 = vrot.slane %v1243_v17, %v6752_v37  ;;  %v1262_v30 = vcombine.high %v1210_v13, %v1242_v45 }
 0x295   :  { %8880 = vst [vmem:[#allocation133_spill] sm:$0xff] %v6953_v56  ;;  %v1212_v10 = vcombine.high %v1148_v21, %v1164_v1  ;;  %v8892_v56 = vld [vmem:[#allocation84_spill] sm:$0xff] }
 0x296   :  { %4990 = vrot.lane.b32.xlu1 %v1128_v34, %s8714_s25  ;;  %v6965_v34 = vpop.trf.xlu0 }
 0x297   :  { %v1226_v28 = vrot.slane %v1212_v10, %v6752_v37 }
 0x298   :  { %4994 = vrot.lane.b32.xlu0 %v1129_v15, %s6348_s26  ;;  %v1244_v15 = vcombine.high %v1179_v32, %v1194_v16  ;;  %v6975_v26 = vpop.trf.xlu1  ;;  %v1275_v16 = vrot.slane %v1267_v27, %v6739_v14  ;;  %v1328_v27 = vrot.slane %v1314_v0, %v6739_v14 }
 0x299   :  { %8881 = vst [vmem:[#allocation134_spill] sm:$0xff] %v6975_v26 }
 0x29a   :  { %4998 = vrot.lane.b32.xlu1 %v1130_v48, %s8683_s27  ;;  %s6351_s27 = smov 124   ;;  %v1306_v48 = vrot.slane %v6704_v7, %v6739_v14  ;;  %v6986_v17 = vpop.trf.xlu0  ;;  %v1258_v21 = vrot.slane %v1244_v15, %v6752_v37 }
 0x29c   :  { %5002 = vrot.lane.b32.xlu0 %v1131_v55, %s6350_s28  ;;  %v1219_v55 = vrot.slane %v1211_v5, %v6752_v37  ;;  %v1361_v32 = vcombine.low %v1306_v48, %v1321_v62  ;;  %v1299_v5 = vcombine.high %v6704_v7, %v8871_v19  ;;  %v6997_v13 = vpop.trf.xlu1  ;;  %v1362_v15 = vcombine.high %v1306_v48, %v1321_v62 }
 0x29d   :  { %8882 = vst [vmem:[#allocation135_spill] sm:$0xff] %v6997_v13  ;;  %v1282_v62 = vrot.slane %v1268_v6, %v6739_v14  ;;  %v1455_v6 = vrot.slane %v6905_v2, %v6739_v14  ;;  %v1440_v13 = vrot.slane %v6706_v33, %v6739_v14 }
 0x29e   :  { %5006 = vrot.lane.b32.xlu1 %v1132_v23, %s6351_s27  ;;  %v1263_v1 = vcombine.low %v1219_v55, %v1251_v39  ;;  %v1264_v45 = vcombine.high %v1219_v55, %v1251_v39  ;;  %v1284_v23 = vcombine.high %v6507_v38, %v6644_v8  ;;  %v1369_v8 = vrot.slane %v1361_v32, %v6752_v37  ;;  %v7004_v10 = vpop.trf.xlu0 }
 0x29f   :  { %v1265_v38 = vcombine.low %v1226_v28, %v1258_v21  ;;  %v1330_v39 = vcombine.high %v1275_v16, %v1291_v36  ;;  %v1376_v48 = vrot.slane %v1362_v15, %v6752_v37 }
 0x2a0   :  { %5010 = vrot.lane.b32.xlu0 %v1260_v22, %s6322_s0  ;;  %v1329_v22 = vcombine.low %v1275_v16, %v1291_v36  ;;  %v1298_v7 = vrot.slane %v1284_v23, %v6739_v14  ;;  %v1669_v36 = vcombine.low %v6457_v3, %v6587_v35  ;;  %v7015_v16 = vpop.trf.xlu1 }
 0x2a1   :  { %8883 = vst [vmem:[#allocation136_spill] sm:$0xff] %v7015_v16  ;;  %v1344_v23 = vrot.slane %v1330_v39, %v6752_v37 }
 0x2a2   :  { %5014 = vrot.lane.b32.xlu1 %v1261_v51, %s6323_s1  ;;  %v1266_v51 = vcombine.high %v1226_v28, %v1258_v21  ;;  %v1337_v61 = vrot.slane %v1329_v22, %v6752_v37  ;;  %v1417_v21 = vcombine.low %v6511_v40, %v6648_v4  ;;  %v1401_v22 = vcombine.low %v6449_v63, %v6579_v41 }
 0x2a3   :  { %v7032_v28 = vrot.slane %v6714_v31, %v6739_v14 }
 0x2a4   :  { %5018 = vrot.lane.b32.xlu0 %v1262_v30, %s6324_s29  ;;  %v1313_v30 = vrot.slane %v1299_v5, %v6739_v14  ;;  %v1393_v0 = vcombine.low %v1337_v61, %v1369_v8  ;;  %v1394_v32 = vcombine.high %v1337_v61, %v1369_v8  ;;  %v7028_v5 = vrot.slane %v1685_v12, %v6739_v14  ;;  %v7037_v8 = vpop.trf.xlu0 }
 0x2a5   :  { %v7043_v61 = vrot.slane %v1669_v36, %v6739_v14  ;;  %v1346_v12 = vcombine.high %v1282_v62, %v1298_v7  ;;  %v1425_v58 = vrot.slane %v1417_v21, %v6739_v14  ;;  %v1448_v36 = vcombine.high %v6905_v2, %v8871_v19 }
 0x2a6   :  { %5022 = vrot.lane.b32.xlu1 %v1263_v1, %s6317_s20  ;;  %v1377_v55 = vcombine.low %v1313_v30, %v1328_v27  ;;  %v1345_v1 = vcombine.low %v1282_v62, %v1298_v7  ;;  %v1378_v15 = vcombine.high %v1313_v30, %v1328_v27  ;;  %v7056_v7 = vpop.trf.xlu1  ;;  %v1409_v62 = vrot.slane %v1401_v22, %v6739_v14 }
 0x2a7   :  { %8884 = vst [vmem:[#allocation137_spill] sm:$0xff] %v7056_v7  ;;  %v1433_v2 = vcombine.high %v6706_v33, %v8871_v19  ;;  %v1360_v22 = vrot.slane %v1346_v12, %v6752_v37 }
 0x2a8   :  { %5026 = vrot.lane.b32.xlu0 %v1264_v45, %s6325_s30  ;;  %v7021_v45 = vrot.slane %v6945_v25, %v6739_v14  ;;  %v1353_v30 = vrot.slane %v1345_v1, %v6752_v37  ;;  %v1392_v21 = vrot.slane %v1378_v15, %v6752_v37  ;;  %v2221_v1 = vcombine.low %v6535_v52, %v6672_v9 }
 0x2a9   :  { %v1463_v39 = vcombine.low %v1409_v62, %v1425_v58  ;;  %v1462_v15 = vrot.slane %v1448_v36, %v6739_v14 }
 0x2aa   :  { %5030 = vrot.lane.b32.xlu1 %v1265_v38, %s6326_s3  ;;  %v1395_v38 = vcombine.low %v1344_v23, %v1376_v48  ;;  %v1763_v27 = vcombine.low %v7032_v28, %v7021_v45  ;;  %v1399_v12 = vcombine.low %v1360_v22, %v1392_v21  ;;  %v7094_v36 = vpop.trf.xlu1 }
 0x2ab   :  { %8887 = vst [vmem:[#allocation140_spill] sm:$0xff] %v7094_v36 }
 0x2ac   :  { %5034 = vrot.lane.b32.xlu0 %v1266_v51, %s6327_s4  ;;  %v1385_v51 = vrot.slane %v1377_v55, %v6752_v37  ;;  %v1731_v55 = vcombine.low %v7043_v61, %v7028_v5  ;;  %v7068_v7 = vrot.slane %v1763_v27, %v6752_v37 }
 0x2ae   :  { %5038 = vrot.lane.b32.xlu1 %v1393_v0, %s6328_s5  ;;  %v1396_v0 = vcombine.high %v1344_v23, %v1376_v48  ;;  %v1495_v48 = vcombine.low %v1440_v13, %v1455_v6  ;;  %v1418_v23 = vcombine.high %v6511_v40, %v6648_v4  ;;  %v1402_v4 = vcombine.high %v6449_v63, %v6579_v41 }
 0x2af   :  { %v2205_v40 = vcombine.low %v6473_v11, %v6603_v60  ;;  %v7081_v33 = vrot.slane %v1731_v55, %v6752_v37  ;;  %v1464_v41 = vcombine.high %v1409_v62, %v1425_v58  ;;  %v1447_v55 = vrot.slane %v1433_v2, %v6739_v14  ;;  %v8888_v58 = vld [vmem:[#allocation54_spill] sm:$0xff]  ;;  %v8889_v62 = vld [vmem:[#allocation8_spill] sm:$0xff] }
 0x2b0   :  { %5042 = vrot.lane.b32.xlu0 %v1394_v32, %s6330_s7  ;;  %v1397_v32 = vcombine.low %v1353_v30, %v1385_v51  ;;  %v1503_v27 = vrot.slane %v1495_v48, %v6752_v37  ;;  %v7089_v63 = vrot.slane %v1418_v23, %v6739_v14  ;;  %v2741_v23 = vcombine.low %v8889_v62, %v8888_v58  ;;  %v8898_v62 = vld [vmem:[#allocation58_spill] sm:$0xff] }
 0x2b1   :  { %v1512_v29 = vcombine.high %v1447_v55, %v1462_v15 }
 0x2b2   :  { %5046 = vrot.lane.b32.xlu1 %v1395_v38, %s6329_s6  ;;  %v1398_v38 = vcombine.high %v1353_v30, %v1385_v51  ;;  %v1496_v51 = vcombine.high %v1440_v13, %v1455_v6  ;;  %v7086_v30 = vrot.slane %v7037_v8, %v6739_v14  ;;  %v7099_v13 = vrot.slane %v6726_v20, %v6739_v14 }
 0x2b3   :  { %v1471_v6 = vrot.slane %v1463_v39, %v6752_v37 }
 0x2b4   :  { %5050 = vrot.lane.b32.xlu0 %v1396_v0, %s6331_s8  ;;  %v7070_v0 = vpop.trf.xlu0  ;;  %v1510_v2 = vrot.slane %v1496_v51, %v6752_v37  ;;  %v1478_v51 = vrot.slane %v1464_v41, %v6752_v37 }
 0x2b5   :  { %8885 = vst [vmem:[#allocation138_spill] sm:$0xff] %v7070_v0  ;;  %v1527_v36 = vcombine.low %v1471_v6, %v1503_v27  ;;  %v1528_v48 = vcombine.high %v1471_v6, %v1503_v27  ;;  %v7129_v27 = vpop.trf.xlu1  ;;  %v1589_v6 = vrot.slane %v6920_v47, %v6739_v14  ;;  %v8901_v0 = vld [vmem:[#allocation31_spill] sm:$0xff] }
 0x2b6   :  { %5054 = vrot.lane.b32.xlu1 %v1397_v32, %s6332_s9  ;;  %v7092_v32 = vrot.slane %v2221_v1, %v6739_v14  ;;  %v1416_v1 = vrot.slane %v1402_v4, %v6739_v14  ;;  %v1551_v4 = vcombine.low %v8893_v43, %v8892_v56  ;;  %8897 = vst [vmem:[#allocation38_spill] sm:$0xff] %v7129_v27  ;;  %v8902_v27 = vld [vmem:[#allocation105_spill] sm:$0xff] }
 0x2b8   :  { %5058 = vrot.lane.b32.xlu0 %v1398_v38, %s6333_s10  ;;  %8886 = vst [vmem:[#allocation139_spill] sm:$0xff] %v7092_v32  ;;  %v1400_v38 = vcombine.high %v1360_v22, %v1392_v21  ;;  %v7109_v21 = vrot.slane %v2205_v40, %v6739_v14  ;;  %v1511_v22 = vcombine.low %v1447_v55, %v1462_v15  ;;  %v7115_v39 = vpop.trf.xlu0 }
 0x2b9   :  { %8891 = vst [vmem:[#allocation142_spill] sm:$0xff] %v7115_v39  ;;  %v1479_v26 = vcombine.low %v1416_v1, %v7089_v63  ;;  %v8900_v39 = vld [vmem:[#allocation77_spill] sm:$0xff]  ;;  %v1480_v15 = vcombine.high %v1416_v1, %v7089_v63  ;;  %v1530_v55 = vcombine.high %v1478_v51, %v1510_v2  ;;  %v1543_v63 = vrot.slane %v1535_v53, %v6739_v14 }
 0x2ba   :  { %5062 = vrot.lane.b32.xlu1 %v1399_v12, %s6334_s11  ;;  %8890 = vst [vmem:[#allocation141_spill] sm:$0xff] %v7109_v21  ;;  %v2299_v12 = vcombine.low %v7099_v13, %v7086_v30  ;;  %v2267_v40 = vcombine.low %v7109_v21, %v7092_v32  ;;  %v1519_v41 = vrot.slane %v1511_v22, %v6752_v37 }
 0x2bb   :  { %v2757_v21 = vcombine.low %v8901_v0, %v8900_v39  ;;  %v1574_v32 = vrot.slane %v8902_v27, %v6739_v14  ;;  %v1487_v22 = vrot.slane %v1479_v26, %v6752_v37  ;;  %v7160_v1 = vrot.slane %v6819_v46, %v6739_v14  ;;  %v8912_v46 = vld [vmem:[#allocation35_spill] sm:$0xff] }
 0x2bc   :  { %5066 = vrot.lane.b32.xlu0 %v1400_v38, %s6335_s12  ;;  %v7125_v38 = vrot.slane %v2741_v23, %v6739_v14  ;;  %v7135_v42 = vrot.slane %v2299_v12, %v6752_v37  ;;  %v8899_v23 = vld [vmem:[#allocation12_spill] sm:$0xff]  ;;  %v7148_v12 = vpop.trf.xlu0  ;;  %v1670_v53 = vcombine.high %v6457_v3, %v6587_v35  ;;  %v1552_v0 = vcombine.high %v8893_v43, %v8892_v56 }
 0x2bd   :  { %v3277_v58 = vcombine.low %v8899_v23, %v8898_v62  ;;  %8903 = vst [vmem:[#allocation61_spill] sm:$0xff] %v7148_v12  ;;  %v7153_v23 = vrot.slane %v2267_v40, %v6752_v37  ;;  %v1536_v62 = vcombine.high %v8896_v24, %v8895_v18  ;;  %v1629_v26 = vcombine.low %v1574_v32, %v1589_v6  ;;  %v8909_v24 = vld [vmem:[#allocation63_spill] sm:$0xff] }
 0x2be   :  { %5070 = vrot.lane.b32.xlu1 %v1527_v36, %s6336_s13  ;;  %8894 = vst [vmem:[#allocation84_spill] sm:$0xff] %v7125_v38  ;;  %v1529_v36 = vcombine.low %v1478_v51, %v1510_v2  ;;  %v1582_v2 = vcombine.high %v6920_v47, %v8871_v19  ;;  %v1531_v51 = vcombine.low %v1487_v22, %v1519_v41 }
 0x2bf   :  { %8904 = vst [vmem:[#allocation16_spill] sm:$0xff] %v7153_v23  ;;  %v1526_v40 = vrot.slane %v1512_v29, %v6752_v37  ;;  %v7173_v18 = vrot.slane %v2757_v21, %v6739_v14  ;;  %v1567_v29 = vcombine.high %v8902_v27, %v8871_v19  ;;  %v1494_v3 = vrot.slane %v1480_v15, %v6752_v37 }
 0x2c0   :  { %5074 = vrot.lane.b32.xlu0 %v1528_v48, %s6337_s14  ;;  %v7144_v48 = vrot.slane %v1551_v4, %v6739_v14  ;;  %v7189_v21 = vrot.slane %v3277_v58, %v6739_v14  ;;  %v1596_v27 = vrot.slane %v1582_v2, %v6739_v14  ;;  %v1637_v15 = vrot.slane %v1629_v26, %v6752_v37  ;;  %v8914_v26 = vld [vmem:[#allocation64_spill] sm:$0xff] }
 0x2c1   :  { %8905 = vst [vmem:[#allocation105_spill] sm:$0xff] %v7173_v18  ;;  %v1533_v12 = vcombine.low %v1494_v3, %v1526_v40  ;;  %v7201_v58 = vrot.slane %v1536_v62, %v6739_v14  ;;  %v7204_v23 = vrot.slane %v1670_v53, %v6739_v14  ;;  %v8915_v53 = vld [vmem:[#allocation19_spill] sm:$0xff] }
 0x2c2   :  { %5078 = vrot.lane.b32.xlu1 %v1529_v36, %s6338_s15  ;;  %v8906_v36 = vld [vmem:[#allocation100_spill] sm:$0xff]  ;;  %v1597_v39 = vcombine.low %v1543_v63, %v7144_v48  ;;  %8908 = vst [vmem:[#allocation144_spill] sm:$0xff] %v7189_v21 }
 0x2c3   :  { %v7177_v47 = vrot.slane %v8906_v36, %v6739_v14  ;;  %v8910_v36 = vld [vmem:[#allocation17_spill] sm:$0xff] }
 0x2c4   :  { %5082 = vrot.lane.b32.xlu0 %v1530_v55, %s8746_s16  ;;  %v1532_v55 = vcombine.high %v1487_v22, %v1519_v41  ;;  %v3813_v41 = vcombine.low %v8910_v36, %v8909_v24  ;;  %v8911_v22 = vld [vmem:[#allocation81_spill] sm:$0xff]  ;;  %v2803_v36 = vcombine.low %v7125_v38, %v7173_v18  ;;  %v1534_v24 = vcombine.high %v1494_v3, %v1526_v40  ;;  %v8916_v40 = vld [vmem:[#allocation70_spill] sm:$0xff]  ;;  %v8917_v3 = vld [vmem:[#allocation24_spill] sm:$0xff] }
 0x2c5   :  { %8907 = vst [vmem:[#allocation143_spill] sm:$0xff] %v7177_v47  ;;  %v3293_v43 = vcombine.low %v8912_v46, %v8911_v22  ;;  %v2835_v56 = vcombine.low %v7177_v47, %v7160_v1  ;;  %v1605_v62 = vrot.slane %v1597_v39, %v6752_v37  ;;  %v1803_v22 = vcombine.low %v8915_v53, %v8914_v26 }
 0x2c6   :  { %5086 = vrot.lane.b32.xlu1 %v1531_v51, %s6340_s17  ;;  %v1630_v51 = vcombine.high %v1574_v32, %v1589_v6  ;;  %v1598_v32 = vcombine.high %v1543_v63, %v7144_v48  ;;  %v1581_v6 = vrot.slane %v1567_v29, %v6739_v14  ;;  %v7218_v2 = vrot.slane %v3813_v41, %v6739_v14 }
 0x2c7   :  { %v4349_v38 = vcombine.low %v8917_v3, %v8916_v40  ;;  %v7229_v48 = vrot.slane %v2835_v56, %v6752_v37  ;;  %v1661_v63 = vcombine.low %v1605_v62, %v1637_v15  ;;  %v1686_v3 = vcombine.high %v6519_v44, %v6656_v50  ;;  %v8919_v40 = vld [vmem:[#allocation86_spill] sm:$0xff] }
 0x2c8   :  { %5090 = vrot.lane.b32.xlu0 %v1532_v55, %s8744_s18  ;;  %v7211_v55 = vrot.slane %v1552_v0, %v6739_v14  ;;  %8913 = vst [vmem:[#allocation145_spill] sm:$0xff] %v7218_v2  ;;  %v7225_v0 = vrot.slane %v3293_v43, %v6739_v14  ;;  %v1645_v39 = vcombine.low %v1581_v6, %v1596_v27  ;;  %v8920_v43 = vld [vmem:[#allocation40_spill] sm:$0xff] }
 0x2c9   :  { %v3829_v18 = vcombine.low %v8920_v43, %v8919_v40  ;;  %v1662_v47 = vcombine.high %v1605_v62, %v1637_v15  ;;  %v7244_v56 = vrot.slane %v6866_v49, %v6739_v14  ;;  %v7249_v41 = vrot.slane %v2803_v36, %v6752_v37  ;;  %v8923_v62 = vld [vmem:[#allocation104_spill] sm:$0xff] }
 0x2ca   :  { %5094 = vrot.lane.b32.xlu1 %v1533_v12, %s6342_s19  ;;  %8918 = vst [vmem:[#allocation64_spill] sm:$0xff] %v7225_v0  ;;  %v1644_v12 = vrot.slane %v1630_v51, %v6752_v37  ;;  %v1612_v51 = vrot.slane %v1598_v32, %v6752_v37  ;;  %v7252_v44 = vrot.slane %v1803_v22, %v6739_v14 }
 0x2cb   :  { %8921 = vst [vmem:[#allocation19_spill] sm:$0xff] %v7244_v56  ;;  %v7255_v50 = vrot.slane %v4349_v38, %v6739_v14  ;;  %v3339_v15 = vcombine.low %v7189_v21, %v7225_v0  ;;  %v7261_v43 = vrot.slane %v8923_v62, %v6739_v14  ;;  %v1646_v32 = vcombine.high %v1581_v6, %v1596_v27  ;;  %v8926_v38 = vld [vmem:[#allocation87_spill] sm:$0xff] }
 0x2cc   :  { %5098 = vrot.lane.b32.xlu0 %v1534_v24, %s6344_s22  ;;  %v1613_v24 = vcombine.low %v7201_v58, %v7211_v55  ;;  %v1663_v36 = vcombine.low %v1612_v51, %v1644_v12  ;;  %v1653_v40 = vrot.slane %v1645_v39, %v6752_v37  ;;  %v1614_v21 = vcombine.high %v7201_v58, %v7211_v55  ;;  %v8927_v58 = vld [vmem:[#allocation41_spill] sm:$0xff] }
 0x2cd   :  { %8922 = vst [vmem:[#allocation146_spill] sm:$0xff] %v7255_v50  ;;  %8924 = vst [vmem:[#allocation147_spill] sm:$0xff] %v7261_v43  ;;  %v7274_v0 = vrot.slane %v1686_v3, %v6739_v14  ;;  %v1664_v62 = vcombine.high %v1612_v51, %v1644_v12  ;;  %v7279_v27 = vrot.slane %v3829_v18, %v6739_v14  ;;  %v8928_v18 = vld [vmem:[#allocation119_spill] sm:$0xff]  ;;  %v8929_v12 = vld [vmem:[#allocation120_spill] sm:$0xff] }
 0x2ce   :  { %5102 = vrot.lane.b32.xlu1 %v1661_v63, %s8742_s21  ;;  %v3371_v6 = vcombine.low %v7261_v43, %v7244_v56  ;;  %v1621_v39 = vrot.slane %v1613_v24, %v6752_v37  ;;  %v1819_v55 = vcombine.low %v8927_v58, %v8926_v38  ;;  %v723_v51 = vcombine.low %v8929_v12, %v8928_v18 }
 0x2cf   :  { %8925 = vst [vmem:[#allocation148_spill] sm:$0xff] %v7279_v27  ;;  %v1764_v24 = vcombine.high %v7032_v28, %v7021_v45  ;;  %v1660_v56 = vrot.slane %v1646_v32, %v6752_v37  ;;  %v1747_v18 = vcombine.low %v7204_v23, %v7274_v0  ;;  %v1628_v45 = vrot.slane %v1614_v21, %v6752_v37 }
 0x2d0   :  { %5106 = vrot.lane.b32.xlu0 %v1662_v47, %s6346_s24  ;;  %v1716_v47 = vcombine.high %v6945_v25, %v8871_v19  ;;  %v1701_v25 = vcombine.high %v6714_v31, %v8871_v19  ;;  %v1665_v43 = vcombine.low %v1621_v39, %v1653_v40  ;;  %v7305_v12 = vrot.slane %v3371_v6, %v6752_v37 }
 0x2d1   :  { %v1748_v28 = vcombine.high %v7204_v23, %v7274_v0  ;;  %v7323_v21 = vrot.slane %v6932_v57, %v6739_v14  ;;  %v1667_v23 = vcombine.low %v1628_v45, %v1660_v56 }
 0x2d2   :  { %5110 = vrot.lane.b32.xlu1 %v1663_v36, %s8738_s23  ;;  %v1732_v36 = vcombine.high %v7043_v61, %v7028_v5  ;;  %v1730_v3 = vrot.slane %v1716_v47, %v6739_v14  ;;  %v8930_v61 = vld [vmem:[#allocation93_spill] sm:$0xff]  ;;  %v7318_v47 = vrot.slane %v3339_v15, %v6752_v37 }
 0x2d4   :  { %v7165_v4 = vpop.permute.xlu1 %4890  ;;  %v7186_v35 = vpop.permute.xlu0 %4886  ;;  %5114 = vrot.lane.b32.xlu0 %v1664_v62, %s8714_s25  ;;  %v1666_v62 = vcombine.high %v1621_v39, %v1653_v40  ;;  %v1715_v40 = vrot.slane %v1701_v25, %v6739_v14  ;;  %s8932_s25 = smov 116   ;;  %v1668_v25 = vcombine.high %v1628_v45, %v1660_v56 }
 0x2d5   :  { %v5878_v31 = vsel %vm5877_vm9, %v723_v51, %v7186_v35  ;;  %v8931_v35 = vld [vmem:[#allocation47_spill] sm:$0xff]  ;;  %v8933_v51 = vld [vmem:[#allocation112_spill] sm:$0xff] }
 0x2d6   :  { %5118 = vrot.lane.b32.xlu1 %v1665_v43, %s6348_s26  ;;  %v4365_v32 = vcombine.low %v8931_v35, %v8930_v61  ;;  %v1778_v43 = vrot.slane %v1764_v24, %v6752_v37  ;;  %v5880_v6 = vsel %vm5879_vm10, %v5878_v31, %v7165_v4  ;;  %v1779_v0 = vcombine.low %v1715_v40, %v1730_v3 }
 0x2d7   :  { %v7331_v15 = vrot.slane %v8933_v51, %v6739_v14  ;;  %v7335_v24 = vrot.slane %v7015_v16, %v6739_v14  ;;  %v1780_v45 = vcombine.high %v1715_v40, %v1730_v3  ;;  %v1857_v35 = vrot.slane %v6965_v34, %v6739_v14 }
 0x2d8   :  { %v7208_v46 = vpop.permute.xlu1 %4894  ;;  %5122 = vrot.lane.b32.xlu0 %v1666_v62, %s8932_s25  ;;  %v7341_v31 = vrot.slane %v4365_v32, %v6739_v14  ;;  %v1796_v32 = vcombine.high %v7081_v33, %v7068_v7 }
 0x2d9   :  { %v5882_v39 = vsel %vm5881_vm11, %v5880_v6, %v7208_v46  ;;  %8934 = vst [vmem:[#allocation87_spill] sm:$0xff] %v7331_v15  ;;  %8935 = vst [vmem:[#allocation41_spill] sm:$0xff] %v7335_v24  ;;  %v8936_v46 = vld [vmem:[#allocation121_spill] sm:$0xff]  ;;  %v1746_v6 = vrot.slane %v1732_v36, %v6752_v37  ;;  %v1787_v36 = vrot.slane %v1779_v0, %v6752_v37 }
 0x2da   :  { %v7232_v29 = vpop.permute.xlu0 %4898  ;;  %5126 = vrot.lane.b32.xlu1 %v1667_v23, %s6350_s28  ;;  %v7345_v56 = vrot.slane %v8936_v46, %v6739_v14  ;;  %v3907_v23 = vcombine.low %v7331_v15, %v7323_v21  ;;  %v8938_v46 = vld [vmem:[#allocation107_spill] sm:$0xff]  ;;  %v1850_v0 = vcombine.high %v6965_v34, %v8871_v19 }
 0x2db   :  { %v5884_v4 = vsel %vm5883_vm12, %v5882_v39, %v7232_v29  ;;  %v1797_v40 = vcombine.low %v1746_v6, %v1778_v43  ;;  %v1842_v16 = vrot.slane %v8938_v46, %v6739_v14  ;;  %v3875_v39 = vcombine.low %v7218_v2, %v7279_v27 }
 0x2dc   :  { %v7264_v63 = vpop.permute.xlu1 %4902  ;;  %8937 = vst [vmem:[#allocation119_spill] sm:$0xff] %v7345_v56  ;;  %5130 = vrot.lane.b32.xlu0 %v1668_v25, %s6351_s27  ;;  %v7361_v25 = vrot.slane %v1819_v55, %v6739_v14  ;;  %v4443_v29 = vcombine.low %v7345_v56, %v7335_v24  ;;  %v1755_v55 = vrot.slane %v1747_v18, %v6752_v37 }
 0x2dd   :  { %v5886_v3 = vsel %vm5885_vm13, %v5884_v4, %v7264_v63  ;;  %v4411_v63 = vcombine.low %v7255_v50, %v7341_v31  ;;  %v7377_v4 = vrot.slane %v3907_v23, %v6752_v37  ;;  %v1897_v56 = vcombine.low %v1842_v16, %v1857_v35 }
 0x2de   :  { %v7267_v22 = vpop.permute.xlu0 %4906  ;;  %5134 = vrot.lane.b32.xlu1 %v1796_v32, %s6322_s0  ;;  %v1798_v24 = vcombine.high %v1746_v6, %v1778_v43  ;;  %v1799_v27 = vcombine.low %v1755_v55, %v1787_v36  ;;  %v1794_v50 = vrot.slane %v1780_v45, %v6752_v37  ;;  %v1865_v34 = vcombine.low %v7252_v44, %v7361_v25 }
 0x2df   :  { %v5888_v32 = vsel %vm5887_vm14, %v5886_v3, %v7267_v22  ;;  %v7386_v18 = vrot.slane %v4443_v29, %v6752_v37  ;;  %v1762_v23 = vrot.slane %v1748_v28, %v6752_v37  ;;  %v1835_v43 = vcombine.high %v8938_v46, %v8871_v19 }
 0x2e0   :  { %v4911_v49 = vpop.permute.xlu1 %4910  ;;  %5138 = vrot.lane.b32.xlu0 %v1797_v40, %s6323_s1  ;;  %v7397_v45 = vrot.slane %v3875_v39, %v6752_v37  ;;  %v7400_v6 = vrot.slane %v4411_v63, %v6752_v37  ;;  %v1898_v3 = vcombine.high %v1842_v16, %v1857_v35  ;;  %v1800_v40 = vcombine.high %v1755_v55, %v1787_v36  ;;  %v8945_v16 = vld [vmem:[#allocation109_spill] sm:$0xff] }
 0x2e1   :  { %v5890_v2 = vsel %vm5889_vm15, %v5888_v32, %v4911_v49  ;;  %v7393_v49 = vrot.slane %v1850_v0, %v6739_v14  ;;  %v1801_v0 = vcombine.low %v1762_v23, %v1794_v50  ;;  %v1866_v35 = vcombine.high %v7252_v44, %v7361_v25 }
 0x2e2   :  { %v7309_v5 = vpop.permute.xlu0 %4914  ;;  %5142 = vrot.lane.b32.xlu1 %v1798_v24, %s6324_s29  ;;  %v1905_v24 = vrot.slane %v1897_v56, %v6752_v37  ;;  %v1873_v56 = vrot.slane %v1865_v34, %v6752_v37  ;;  %v8940_v36 = vcombine.high %v8915_v53, %v8914_v26  ;;  %v1912_v55 = vrot.slane %v1898_v3, %v6752_v37  ;;  %v8944_v3 = vld [vmem:[#allocation43_spill] sm:$0xff] }
 0x2e3   :  { %v5892_v28 = vsel %vm5891_vm0, %v5890_v2, %v7309_v5  ;;  %v8939_v2 = vcombine.high %v8927_v58, %v8926_v38  ;;  %v1802_v38 = vcombine.high %v1762_v23, %v1794_v50  ;;  %v1880_v50 = vrot.slane %v1866_v35, %v6752_v37 }
 0x2e4   :  { %v4919_v62 = vpop.permute.xlu1 %4918  ;;  %5146 = vrot.lane.b32.xlu0 %v1799_v27, %s6317_s20  ;;  %v1818_v63 = vrot.slane %v8940_v36, %v6739_v14  ;;  %v1929_v25 = vcombine.low %v1873_v56, %v1905_v24  ;;  %v1976_v27 = vrot.slane %v8945_v16, %v6739_v14 }
 0x2e5   :  { %v5894_v46 = vsel %vm5893_vm1, %v5892_v28, %v4919_v62  ;;  %v1834_v5 = vrot.slane %v8939_v2, %v6739_v14  ;;  %v1849_v62 = vrot.slane %v1835_v43, %v6739_v14  ;;  %v8941_v28 = vld [vmem:[#allocation66_spill] sm:$0xff] }
 0x2e6   :  { %v4923_v61 = vpop.permute.xlu0 %4922  ;;  %5150 = vrot.lane.b32.xlu1 %v1800_v40, %s6325_s30  ;;  %v8942_v40 = vld [vmem:[#allocation21_spill] sm:$0xff] }
 0x2e7   :  { %v5896_v32 = vsel %vm8748_vm2, %v5894_v46, %v4923_v61  ;;  %v1913_v58 = vcombine.low %v1849_v62, %v7393_v49  ;;  %v1937_v26 = vcombine.low %v8942_v40, %v8941_v28  ;;  %v1881_v53 = vcombine.low %v1818_v63, %v1834_v5 }
 0x2e8   :  { %v4927_v15 = vpop.permute.xlu1 %4926  ;;  %5154 = vrot.lane.b32.xlu0 %v1801_v0, %s6326_s3  ;;  %v8943_v0 = vld [vmem:[#allocation89_spill] sm:$0xff]  ;;  %v1914_v61 = vcombine.high %v1849_v62, %v7393_v49  ;;  %v1930_v46 = vcombine.high %v1873_v56, %v1905_v24  ;;  %v1882_v62 = vcombine.high %v1818_v63, %v1834_v5  ;;  %v1984_v24 = vcombine.high %v6986_v17, %v8871_v19 }
 0x2e9   :  { %v5898_v44 = vsel %vm8740_vm3, %v5896_v32, %v4927_v15  ;;  %v1953_v2 = vcombine.low %v8944_v3, %v8943_v0  ;;  %v1991_v15 = vrot.slane %v6986_v17, %v6739_v14  ;;  %v1931_v32 = vcombine.low %v1880_v50, %v1912_v55 }
 0x2ea   :  { %v4931_v22 = vpop.permute.xlu0 %4930  ;;  %5158 = vrot.lane.b32.xlu1 %v1802_v38, %s6327_s4  ;;  %v1921_v38 = vrot.slane %v1913_v58, %v6752_v37  ;;  %v1945_v49 = vrot.slane %v1937_v26, %v6739_v14  ;;  %v1932_v58 = vcombine.high %v1880_v50, %v1912_v55  ;;  %v1928_v5 = vrot.slane %v1914_v61, %v6752_v37 }
 0x2eb   :  { %v5900_v23 = vsel %vm8741_vm4, %v5898_v44, %v4931_v22  ;;  %v1889_v22 = vrot.slane %v1881_v53, %v6752_v37  ;;  %v1969_v63 = vcombine.high %v8945_v16, %v8871_v19  ;;  %v1938_v17 = vcombine.high %v8942_v40, %v8941_v28 }
 0x2ec   :  { %v4935_v29 = vpop.permute.xlu1 %4934  ;;  %5162 = vrot.lane.b32.xlu0 %v1929_v25, %s6328_s5  ;;  %v1961_v25 = vrot.slane %v1953_v2, %v6739_v14  ;;  %v1998_v26 = vrot.slane %v1984_v24, %v6739_v14  ;;  %v2032_v53 = vcombine.high %v1976_v27, %v1991_v15 }
 0x2ed   :  { %v5902_v36 = vsel %vm8723_vm5, %v5900_v23, %v4935_v29  ;;  %v2031_v29 = vcombine.low %v1976_v27, %v1991_v15  ;;  %vm8726_vm5 = vcmask 556032   ;;  %v1934_v16 = vcombine.high %v1889_v22, %v1921_v38 }
 0x2ee   :  { %v4939_v39 = vpop.permute.xlu0 %4938  ;;  %5166 = vrot.lane.b32.xlu1 %v1930_v46, %s6330_s7  ;;  %v1933_v46 = vcombine.low %v1889_v22, %v1921_v38  ;;  %v1999_v55 = vcombine.low %v1945_v49, %v1961_v25  ;;  %v1983_v40 = vrot.slane %v1969_v63, %v6739_v14 }
 0x2ef   :  { %v5904_v56 = vsel %vm8725_vm6, %v5902_v36, %v4939_v39  ;;  %v1954_v39 = vcombine.high %v8944_v3, %v8943_v0  ;;  %v2039_v61 = vrot.slane %v2031_v29, %v6752_v37  ;;  %vm8728_vm6 = vcmask 621568   ;;  %v8947_v29 = vld [vmem:[#allocation23_spill] sm:$0xff] }
 0x2f0   :  { %v4943_v43 = vpop.permute.xlu1 %4942  ;;  %5170 = vrot.lane.b32.xlu0 %v1931_v32, %s6329_s6  ;;  %v2000_v32 = vcombine.high %v1945_v49, %v1961_v25  ;;  %v2007_v27 = vrot.slane %v1999_v55, %v6752_v37  ;;  %v2047_v15 = vcombine.low %v1983_v40, %v1998_v26  ;;  %v8946_v25 = vld [vmem:[#allocation68_spill] sm:$0xff] }
 0x2f1   :  { %v5906_v23 = vsel %vm8724_vm7, %v5904_v56, %v4943_v43  ;;  %v1896_v43 = vrot.slane %v1882_v62, %v6752_v37  ;;  %vm8729_vm7 = vcmask 588800   ;;  %v1968_v3 = vrot.slane %v1954_v39, %v6739_v14 }
 0x2f2   :  { %v4947_v34 = vpop.permute.xlu0 %4946  ;;  %5174 = vrot.lane.b32.xlu1 %v1932_v58, %s6331_s8  ;;  %v2046_v62 = vrot.slane %v2032_v53, %v6752_v37  ;;  %v2063_v24 = vcombine.low %v2007_v27, %v2039_v61  ;;  %v2071_v56 = vcombine.low %v8947_v29, %v8946_v25 }
 0x2f3   :  { %v5908_v2 = vsel %vm8727_vm8, %v5906_v23, %v4947_v34  ;;  %v1935_v28 = vcombine.low %v1896_v43, %v1928_v5  ;;  %v1952_v34 = vrot.slane %v1938_v17, %v6739_v14  ;;  %vm8730_vm8 = vcmask 687104   ;;  %v8948_v23 = vld [vmem:[#allocation91_spill] sm:$0xff] }
 0x2f4   :  { %v4951_v35 = vpop.permute.xlu1 %4950  ;;  %5178 = vrot.lane.b32.xlu0 %v1933_v46, %s6332_s9  ;;  %v8949_v46 = vld [vmem:[#allocation45_spill] sm:$0xff]  ;;  %v2125_v17 = vrot.slane %v7004_v10, %v6739_v14 }
 0x2f5   :  { %v5910_v36 = vsel %vm8726_vm5, %v5908_v2, %v4951_v35  ;;  %v1936_v35 = vcombine.high %v1896_v43, %v1928_v5  ;;  %vm8731_vm5 = vcmask 654336   ;;  %v2015_v58 = vcombine.low %v1952_v34, %v1968_v3 }
 0x2f6   :  { %v4955_v44 = vpop.permute.xlu0 %4954  ;;  %5182 = vrot.lane.b32.xlu1 %v1934_v16, %s6333_s10  ;;  %v2087_v63 = vcombine.low %v8949_v46, %v8948_v23  ;;  %v2048_v5 = vcombine.high %v1983_v40, %v1998_v26  ;;  %v2064_v43 = vcombine.high %v2007_v27, %v2039_v61  ;;  %v2055_v16 = vrot.slane %v2047_v15, %v6752_v37 }
 0x2f7   :  { %v5912_v38 = vsel %vm8729_vm7, %v5910_v36, %v4955_v44  ;;  %v2014_v44 = vrot.slane %v2000_v32, %v6752_v37  ;;  %vm8732_vm7 = vcmask 752640   ;;  %v2079_v26 = vrot.slane %v2071_v56, %v6739_v14 }
 0x2f8   :  { %v4959_v50 = vpop.permute.xlu1 %4958  ;;  %5186 = vrot.lane.b32.xlu0 %v1935_v28, %s6334_s11  ;;  %v2016_v28 = vcombine.high %v1952_v34, %v1968_v3  ;;  %v2095_v40 = vrot.slane %v2087_v63, %v6739_v14  ;;  %v2023_v61 = vrot.slane %v2015_v58, %v6752_v37  ;;  %v2062_v3 = vrot.slane %v2048_v5, %v6752_v37 }
 0x2f9   :  { %v5914_v22 = vsel %vm8728_vm6, %v5912_v38, %v4959_v50  ;;  %v2065_v2 = vcombine.low %v2014_v44, %v2046_v62  ;;  %vm8733_vm6 = vcmask 719872   ;;  %v8950_v50 = vld [vmem:[#allocation111_spill] sm:$0xff]  ;;  %v2072_v34 = vcombine.high %v8947_v29, %v8946_v25 }
 0x2fa   :  { %v4963_v0 = vpop.permute.xlu0 %4962  ;;  %5190 = vrot.lane.b32.xlu1 %v1936_v35, %s6335_s12  ;;  %v2110_v36 = vrot.slane %v8950_v50, %v6739_v14  ;;  %v2066_v35 = vcombine.high %v2014_v44, %v2046_v62  ;;  %v2103_v56 = vcombine.high %v8950_v50, %v8871_v19  ;;  %v2030_v62 = vrot.slane %v2016_v28, %v6752_v37 }
 0x2fb   :  { %v5916_v55 = vsel %vm8731_vm5, %v5914_v22, %v4963_v0  ;;  %v2118_v0 = vcombine.high %v7004_v10, %v8871_v19  ;;  %vm8734_vm5 = vcmask 818176   ;;  %v2088_v10 = vcombine.high %v8949_v46, %v8948_v23 }
 0x2fc   :  { %v4967_v49 = vpop.permute.xlu1 %4966  ;;  %5194 = vrot.lane.b32.xlu0 %v2063_v24, %s6336_s13  ;;  %v2165_v32 = vcombine.low %v2110_v36, %v2125_v17  ;;  %v2067_v24 = vcombine.low %v2023_v61, %v2055_v16  ;;  %v2166_v63 = vcombine.high %v2110_v36, %v2125_v17  ;;  %v2068_v5 = vcombine.high %v2023_v61, %v2055_v16 }
 0x2fd   :  { %v5918_v53 = vsel %vm8730_vm8, %v5916_v55, %v4967_v49  ;;  %vm8735_vm8 = vcmask 785408   ;;  %v2133_v49 = vcombine.low %v2079_v26, %v2095_v40  ;;  %v2132_v58 = vrot.slane %v2118_v0, %v6739_v14 }
 0x2fe   :  { %v4971_v39 = vpop.permute.xlu0 %4970  ;;  %5198 = vrot.lane.b32.xlu1 %v2064_v43, %s6337_s14  ;;  %v2069_v46 = vcombine.low %v2030_v62, %v2062_v3  ;;  %v2102_v55 = vrot.slane %v2088_v10, %v6739_v14  ;;  %v2134_v43 = vcombine.high %v2079_v26, %v2095_v40  ;;  %v2180_v16 = vrot.slane %v2166_v63, %v6752_v37 }
 0x2ff   :  { %v5920_v15 = vsel %vm8733_vm6, %v5918_v53, %v4971_v39  ;;  %v2173_v39 = vrot.slane %v2165_v32, %v6752_v37  ;;  %vm8736_vm6 = vcmask 883712   ;;  %v2117_v53 = vrot.slane %v2103_v56, %v6739_v14 }
 0x300   :  { %5202 = vrot.lane.b32.xlu0 %v2065_v2, %s6338_s15  ;;  %v4975_v38 = vpop.permute.xlu1 %4974  ;;  %v2141_v17 = vrot.slane %v2133_v49, %v6752_v37  ;;  %v2086_v2 = vrot.slane %v2072_v34, %v6739_v14  ;;  %v2070_v28 = vcombine.high %v2030_v62, %v2062_v3  ;;  %v2148_v40 = vrot.slane %v2134_v43, %v6752_v37 }
 0x301   :  { %v5922_v22 = vsel %vm8732_vm7, %v5920_v15, %v4975_v38  ;;  %vm8737_vm7 = vcmask 850944   ;;  %v2181_v61 = vcombine.low %v2117_v53, %v2132_v58  ;;  %v2182_v15 = vcombine.high %v2117_v53, %v2132_v58 }
 0x302   :  { %v4979_v27 = vpop.permute.xlu0 %4978  ;;  %5206 = vrot.lane.b32.xlu1 %v2066_v35, %s8746_s16  ;;  %v2149_v26 = vcombine.low %v2086_v2, %v2102_v55  ;;  %v2199_v34 = vcombine.low %v2148_v40, %v2180_v16  ;;  %v2150_v49 = vcombine.high %v2086_v2, %v2102_v55  ;;  %v2252_v62 = vcombine.high %v7037_v8, %v8871_v19 }
 0x303   :  { %v5924_v25 = vsel %vm8735_vm8, %v5922_v22, %v4979_v27  ;;  %v2197_v27 = vcombine.low %v2141_v17, %v2173_v39  ;;  %vm8751_vm8 = vcmask 949248   ;;  %v2198_v22 = vcombine.high %v2141_v17, %v2173_v39 }
 0x304   :  { %5210 = vrot.lane.b32.xlu0 %v2067_v24, %s6340_s17  ;;  %v4983_v29 = vpop.permute.xlu1 %4982  ;;  %v2189_v10 = vrot.slane %v2181_v61, %v6752_v37  ;;  %v2157_v56 = vrot.slane %v2149_v26, %v6752_v37  ;;  %v2196_v39 = vrot.slane %v2182_v15, %v6752_v37  ;;  %v2206_v8 = vcombine.high %v6473_v11, %v6603_v60 }
 0x305   :  { %v5926_v23 = vsel %vm8734_vm5, %v5924_v25, %v4983_v29  ;;  %vm8752_vm5 = vcmask 916480   ;;  %v2164_v55 = vrot.slane %v2150_v49, %v6752_v37  ;;  %v2266_v43 = vrot.slane %v2252_v62, %v6739_v14  ;;  %v8960_v62 = vld [vmem:[#allocation138_spill] sm:$0xff] }
 0x306   :  { %v4987_v44 = vpop.permute.xlu0 %4986  ;;  %5214 = vrot.lane.b32.xlu1 %v2068_v5, %s8744_s18  ;;  %v2201_v5 = vcombine.low %v2157_v56, %v2189_v10  ;;  %v2300_v53 = vcombine.high %v7099_v13, %v7086_v30  ;;  %v2202_v17 = vcombine.high %v2157_v56, %v2189_v10  ;;  %v2220_v30 = vrot.slane %v2206_v8, %v6739_v14  ;;  %v8959_v10 = vld [vmem:[#allocation26_spill] sm:$0xff] }
 0x307   :  { %v5928_v50 = vsel %vm8737_vm7, %v5926_v23, %v4987_v44  ;;  %vm8749_vm7 = vcmask 1014784   ;;  %v2200_v44 = vcombine.high %v2148_v40, %v2180_v16  ;;  %v2222_v23 = vcombine.high %v6535_v52, %v6672_v9  ;;  %v8955_v40 = vld [vmem:[#allocation16_spill] sm:$0xff] }
 0x308   :  { %5218 = vrot.lane.b32.xlu0 %v2069_v46, %s6342_s19  ;;  %v4991_v36 = vpop.permute.xlu1 %4990  ;;  %v2237_v46 = vcombine.high %v6726_v20, %v8871_v19  ;;  %v8952_v9 = vcombine.low %v6957_v59, %v6948_v54  ;;  %v2203_v60 = vcombine.low %v2164_v55, %v2196_v39  ;;  %v2314_v54 = vrot.slane %v2300_v53, %v6752_v37 }
 0x309   :  { %v5930_v32 = vsel %vm8736_vm6, %v5928_v50, %v4991_v36  ;;  %vm8750_vm6 = vcmask 982016   ;;  %v2236_v11 = vrot.slane %v2222_v23, %v6739_v14  ;;  %v8953_v50 = vld [vmem:[#allocation139_spill] sm:$0xff]  ;;  %v8954_v36 = vld [vmem:[#allocation141_spill] sm:$0xff]  ;;  %v2332_v15 = vcombine.high %v8955_v40, %v7135_v42 }
 0x30a   :  { %v4995_v0 = vpop.permute.xlu0 %4994  ;;  %5222 = vrot.lane.b32.xlu1 %v2070_v28, %s6344_s22  ;;  %v2268_v28 = vcombine.high %v8954_v36, %v8953_v50  ;;  %v2251_v61 = vrot.slane %v2237_v46, %v6739_v14 }
 0x30b   :  { %v5932_v38 = vsel %vm8752_vm5, %v5930_v32, %v4995_v0  ;;  %v2204_v32 = vcombine.high %v2164_v55, %v2196_v39  ;;  %v2284_v46 = vcombine.high %v2220_v30, %v2236_v11  ;;  %v8961_v55 = vld [vmem:[#allocation113_spill] sm:$0xff] }
 0x30c   :  { %5226 = vrot.lane.b32.xlu0 %v2197_v27, %s8742_s21  ;;  %v4999_v35 = vpop.permute.xlu1 %4998  ;;  %v2315_v59 = vcombine.low %v2251_v61, %v2266_v43  ;;  %v2316_v56 = vcombine.high %v2251_v61, %v2266_v43  ;;  %v2378_v43 = vrot.slane %v8961_v55, %v6739_v14 }
 0x30d   :  { %v5934_v3 = vsel %vm8751_vm8, %v5932_v38, %v4999_v35  ;;  %v2283_v38 = vcombine.low %v2220_v30, %v2236_v11  ;;  %v8956_v35 = vld [vmem:[#allocation94_spill] sm:$0xff]  ;;  %v2371_v30 = vcombine.high %v8961_v55, %v8871_v19 }
 0x30e   :  { %v5003_v24 = vpop.permute.xlu0 %5002  ;;  %5230 = vrot.lane.b32.xlu1 %v2198_v22, %s6346_s24  ;;  %v8957_v22 = vld [vmem:[#allocation48_spill] sm:$0xff] }
 0x30f   :  { %v5936_v58 = vsel %vm8750_vm6, %v5934_v3, %v5003_v24  ;;  %v2355_v24 = vcombine.low %v8957_v22, %v8956_v35  ;;  %v2282_v3 = vrot.slane %v2268_v28, %v6752_v37  ;;  %v2291_v53 = vrot.slane %v2283_v38, %v6752_v37 }
 0x310   :  { %5234 = vrot.lane.b32.xlu0 %v2199_v34, %s8738_s23  ;;  %v5007_v63 = vpop.permute.xlu1 %5006  ;;  %s8951_s23 = smov 108   ;;  %v8958_v34 = vld [vmem:[#allocation71_spill] sm:$0xff]  ;;  %v2356_v28 = vcombine.high %v8957_v22, %v8956_v35 }
 0x311   :  { %v5938_v29 = vsel %vm8749_vm7, %v5936_v58, %v5007_v63  ;;  %v2339_v49 = vcombine.low %v8959_v10, %v8958_v34  ;;  %v2393_v58 = vrot.slane %v8960_v62, %v6739_v14  ;;  %v2334_v23 = vcombine.high %v2282_v3, %v2314_v54 }
 0x312   :  { %v5011_v25 = vpop.permute.xlu0 %5010  ;;  %6156 = vst [vmem:[#allocation5] sm:$0x3f] %v5938_v29  ;;  %5238 = vrot.lane.b32.xlu1 %v2200_v44, %s8951_s23  ;;  %v2323_v29 = vrot.slane %v2315_v59, %v6752_v37  ;;  %v2363_v8 = vrot.slane %v2355_v24, %v6739_v14  ;;  %v2340_v59 = vcombine.high %v8959_v10, %v8958_v34 }
 0x313   :  { %v5939_v20 = vsel %vm5877_vm9, %v8952_v9, %v5011_v25  ;;  %v2333_v25 = vcombine.low %v2282_v3, %v2314_v54  ;;  %v2347_v9 = vrot.slane %v2339_v49, %v6739_v14  ;;  %v2298_v54 = vrot.slane %v2284_v46, %v6752_v37  ;;  %v8963_v46 = vld [vmem:[#allocation50_spill] sm:$0xff] }
 0x314   :  { %5242 = vrot.lane.b32.xlu0 %v2201_v5, %s6348_s26  ;;  %v5015_v52 = vpop.permute.xlu1 %5014  ;;  %v2336_v36 = vcombine.high %v2291_v53, %v2323_v29  ;;  %v2370_v24 = vrot.slane %v2356_v28, %v6739_v14  ;;  %v2385_v34 = vrot.slane %v2371_v30, %v6739_v14  ;;  %v2354_v49 = vrot.slane %v2340_v59, %v6739_v14 }
 0x315   :  { %v5940_v16 = vsel %vm5879_vm10, %v5939_v20, %v5015_v52  ;;  %v2386_v20 = vcombine.high %v8960_v62, %v8871_v19  ;;  %v2433_v52 = vcombine.low %v2378_v43, %v2393_v58  ;;  %v2401_v61 = vcombine.low %v2347_v9, %v2363_v8 }
 0x316   :  { %v5019_v2 = vpop.permute.xlu0 %5018  ;;  %5246 = vrot.lane.b32.xlu1 %v2202_v17, %s8932_s25  ;;  %v2402_v3 = vcombine.high %v2347_v9, %v2363_v8 }
 0x317   :  { %v5941_v13 = vsel %vm5881_vm11, %v5940_v16, %v5019_v2  ;;  %v2335_v16 = vcombine.low %v2291_v53, %v2323_v29  ;;  %v2409_v10 = vrot.slane %v2401_v61, %v6752_v37  ;;  %v8965_v53 = vld [vmem:[#allocation28_spill] sm:$0xff]  ;;  %v2418_v61 = vcombine.high %v2354_v49, %v2370_v24 }
 0x318   :  { %5250 = vrot.lane.b32.xlu0 %v2203_v60, %s6350_s28  ;;  %v5023_v0 = vpop.permute.xlu1 %5022  ;;  %v2330_v60 = vrot.slane %v2316_v56, %v6752_v37  ;;  %v2416_v55 = vrot.slane %v2402_v3, %v6752_v37 }
 0x319   :  { %v5942_v26 = vsel %vm5883_vm12, %v5941_v13, %v5023_v0  ;;  %v2400_v13 = vrot.slane %v2386_v20, %v6739_v14  ;;  %v2434_v0 = vcombine.high %v2378_v43, %v2393_v58  ;;  %v8964_v43 = vld [vmem:[#allocation73_spill] sm:$0xff] }
 0x31a   :  { %v5027_v27 = vpop.permute.xlu0 %5026  ;;  %5254 = vrot.lane.b32.xlu1 %v2204_v32, %s6351_s27  ;;  %v2441_v32 = vrot.slane %v2433_v52, %v6752_v37  ;;  %v2338_v22 = vcombine.high %v2298_v54, %v2330_v60  ;;  %v2473_v9 = vcombine.low %v8965_v53, %v8964_v43  ;;  %v8966_v52 = vld [vmem:[#allocation142_spill] sm:$0xff] }
 0x31b   :  { %v5943_v63 = vsel %vm5885_vm13, %v5942_v26, %v5027_v27  ;;  %v2448_v56 = vrot.slane %v2434_v0, %v6752_v37  ;;  %v2449_v62 = vcombine.low %v2385_v34, %v2400_v13  ;;  %v2450_v20 = vcombine.high %v2385_v34, %v2400_v13 }
 0x31c   :  { %5258 = vrot.lane.b32.xlu0 %v2332_v15, %s6322_s0  ;;  %v5031_v44 = vpop.permute.xlu1 %5030  ;;  %v2337_v15 = vcombine.low %v2298_v54, %v2330_v60  ;;  %v8969_v54 = vld [vmem:[#allocation115_spill] sm:$0xff]  ;;  %v2481_v0 = vrot.slane %v2473_v9, %v6739_v14 }
 0x31d   :  { %v5944_v39 = vsel %vm5887_vm14, %v5943_v63, %v5031_v44  ;;  %v2465_v44 = vcombine.low %v2409_v10, %v2441_v32  ;;  %v2467_v60 = vcombine.low %v2416_v55, %v2448_v56  ;;  %v2468_v28 = vcombine.high %v2416_v55, %v2448_v56 }
 0x31e   :  { %v5035_v5 = vpop.permute.xlu0 %5034  ;;  %5262 = vrot.lane.b32.xlu1 %v2333_v25, %s6323_s1  ;;  %v2512_v59 = vrot.slane %v8969_v54, %v6739_v14  ;;  %v2432_v56 = vrot.slane %v2418_v61, %v6752_v37  ;;  %v8977_v61 = vld [vmem:[#allocation52_spill] sm:$0xff] }
 0x31f   :  { %v5945_v17 = vsel %vm5889_vm15, %v5944_v39, %v5035_v5  ;;  %v2466_v5 = vcombine.high %v2409_v10, %v2441_v32  ;;  %v2417_v39 = vcombine.low %v2354_v49, %v2370_v24  ;;  %v2520_v32 = vcombine.high %v8966_v52, %v8871_v19 }
 0x320   :  { %5266 = vrot.lane.b32.xlu0 %v2334_v23, %s6324_s29  ;;  %v5039_v2 = vpop.permute.xlu1 %5038  ;;  %v8962_v23 = vld [vmem:[#allocation96_spill] sm:$0xff]  ;;  %v2505_v49 = vcombine.high %v8969_v54, %v8871_v19 }
 0x321   :  { %v5946_v50 = vsel %vm5891_vm0, %v5945_v17, %v5039_v2  ;;  %v2489_v8 = vcombine.low %v8963_v46, %v8962_v23  ;;  %v2527_v17 = vrot.slane %v8966_v52, %v6739_v14  ;;  %v2425_v13 = vrot.slane %v2417_v39, %v6752_v37 }
 0x322   :  { %v5043_v11 = vpop.permute.xlu0 %5042  ;;  %5270 = vrot.lane.b32.xlu1 %v2335_v16, %s6317_s20  ;;  %v2490_v34 = vcombine.high %v8963_v46, %v8962_v23 }
 0x323   :  { %v5947_v27 = vsel %vm5893_vm1, %v5946_v50, %v5043_v11  ;;  %v2457_v11 = vrot.slane %v2449_v62, %v6752_v37  ;;  %v2497_v30 = vrot.slane %v2489_v8, %v6739_v14  ;;  %v2474_v62 = vcombine.high %v8965_v53, %v8964_v43 }
 0x324   :  { %5274 = vrot.lane.b32.xlu0 %v2336_v36, %s6325_s30  ;;  %v5047_v26 = vpop.permute.xlu1 %5046  ;;  %v2504_v8 = vrot.slane %v2490_v34, %v6739_v14  ;;  %v2519_v43 = vrot.slane %v2505_v49, %v6739_v14 }
 0x325   :  { %v5948_v35 = vsel %vm8748_vm2, %v5947_v27, %v5047_v26  ;;  %v2567_v27 = vcombine.low %v2512_v59, %v2527_v17  ;;  %v2470_v3 = vcombine.high %v2425_v13, %v2457_v11  ;;  %v2535_v10 = vcombine.low %v2481_v0, %v2497_v30 }
 0x326   :  { %v5051_v38 = vpop.permute.xlu0 %5050  ;;  %5278 = vrot.lane.b32.xlu1 %v2337_v15, %s6326_s3  ;;  %v2536_v55 = vcombine.high %v2481_v0, %v2497_v30  ;;  %v2488_v9 = vrot.slane %v2474_v62, %v6739_v14 }
 0x327   :  { %v5949_v58 = vsel %vm8740_vm3, %v5948_v35, %v5051_v38  ;;  %vm8967_vm3 = vcmask 424960   ;;  %v2469_v38 = vcombine.low %v2425_v13, %v2457_v11  ;;  %v2464_v35 = vrot.slane %v2450_v20, %v6752_v37  ;;  %v8979_v13 = vld [vmem:[#allocation30_spill] sm:$0xff] }
 0x328   :  { %5282 = vrot.lane.b32.xlu0 %v2338_v22, %s6327_s4  ;;  %v5055_v63 = vpop.permute.xlu1 %5054  ;;  %v2543_v53 = vrot.slane %v2535_v10, %v6752_v37  ;;  %v2550_v54 = vrot.slane %v2536_v55, %v6752_v37  ;;  %v2552_v10 = vcombine.high %v2488_v9, %v2504_v8 }
 0x329   :  { %v5950_v29 = vsel %vm8741_vm4, %v5949_v58, %v5055_v63  ;;  %vm8968_vm4 = vcmask 457728   ;;  %v2534_v58 = vrot.slane %v2520_v32, %v6739_v14  ;;  %v2568_v63 = vcombine.high %v2512_v59, %v2527_v17  ;;  %v8978_v59 = vld [vmem:[#allocation75_spill] sm:$0xff]  ;;  %v8980_v32 = vld [vmem:[#allocation61_spill] sm:$0xff] }
 0x32a   :  { %v5059_v25 = vpop.permute.xlu0 %5058  ;;  %5286 = vrot.lane.b32.xlu1 %v2465_v44, %s6328_s5  ;;  %v2575_v44 = vrot.slane %v2567_v27, %v6752_v37  ;;  %v2472_v46 = vcombine.high %v2432_v56, %v2464_v35  ;;  %v2607_v0 = vcombine.low %v8979_v13, %v8978_v59  ;;  %v2661_v27 = vrot.slane %v8980_v32, %v6739_v14 }
 0x32b   :  { %v5951_v2 = vsel %vm8967_vm3, %v5950_v29, %v5059_v25  ;;  %vm8970_vm3 = vcmask 490496   ;;  %v2582_v20 = vrot.slane %v2568_v63, %v6752_v37  ;;  %v2583_v52 = vcombine.low %v2519_v43, %v2534_v58 }
 0x32c   :  { %5290 = vrot.lane.b32.xlu0 %v2466_v5, %s6330_s7  ;;  %v5063_v16 = vpop.permute.xlu1 %5062  ;;  %v2471_v5 = vcombine.low %v2432_v56, %v2464_v35  ;;  %v8983_v56 = vld [vmem:[#allocation116_spill] sm:$0xff]  ;;  %v2615_v63 = vrot.slane %v2607_v0, %v6739_v14 }
 0x32d   :  { %v5952_v36 = vsel %vm8968_vm4, %v5951_v2, %v5063_v16  ;;  %vm8971_vm4 = vcmask 523264   ;;  %v2599_v16 = vcombine.low %v2543_v53, %v2575_v44  ;;  %v2601_v35 = vcombine.low %v2550_v54, %v2582_v20 }
 0x32e   :  { %v5067_v50 = vpop.permute.xlu0 %5066  ;;  %5294 = vrot.lane.b32.xlu1 %v2467_v60, %s6329_s6  ;;  %v2602_v34 = vcombine.high %v2550_v54, %v2582_v20  ;;  %v2646_v62 = vrot.slane %v8983_v56, %v6739_v14  ;;  %v2566_v20 = vrot.slane %v2552_v10, %v6752_v37 }
 0x32f   :  { %v5953_v26 = vsel %vm8970_vm3, %v5952_v36, %v5067_v50  ;;  %vm8972_vm3 = vcmask 556032   ;;  %v2600_v50 = vcombine.high %v2543_v53, %v2575_v44  ;;  %v2551_v36 = vcombine.low %v2488_v9, %v2504_v8 }
 0x330   :  { %5298 = vrot.lane.b32.xlu0 %v2468_v28, %s6331_s8  ;;  %v5071_v15 = vpop.permute.xlu1 %5070  ;;  %v8976_v28 = vld [vmem:[#allocation98_spill] sm:$0xff]  ;;  %v2654_v44 = vcombine.high %v8980_v32, %v8871_v19  ;;  %v2639_v9 = vcombine.high %v8983_v56, %v8871_v19 }
 0x331   :  { %v5954_v24 = vsel %vm8971_vm4, %v5953_v26, %v5071_v15  ;;  %vm8973_vm4 = vcmask 588800   ;;  %v2623_v30 = vcombine.low %v8977_v61, %v8976_v28  ;;  %v2584_v26 = vcombine.high %v2519_v43, %v2534_v58 }
 0x332   :  { %v5075_v22 = vpop.permute.xlu0 %5074  ;;  %5302 = vrot.lane.b32.xlu1 %v2469_v38, %s6332_s9  ;;  %v2559_v58 = vrot.slane %v2551_v36, %v6752_v37  ;;  %v2624_v43 = vcombine.high %v8977_v61, %v8976_v28 }
 0x333   :  { %v5955_v25 = vsel %vm8972_vm3, %v5954_v24, %v5075_v22  ;;  %vm8974_vm3 = vcmask 621568   ;;  %v2591_v22 = vrot.slane %v2583_v52, %v6752_v37  ;;  %v2631_v49 = vrot.slane %v2623_v30, %v6739_v14 }
 0x334   :  { %5306 = vrot.lane.b32.xlu0 %v2470_v3, %s6333_s10  ;;  %v5079_v29 = vpop.permute.xlu1 %5078  ;;  %v2608_v52 = vcombine.high %v8979_v13, %v8978_v59  ;;  %v2638_v30 = vrot.slane %v2624_v43, %v6739_v14  ;;  %v2653_v59 = vrot.slane %v2639_v9, %v6739_v14 }
 0x335   :  { %v5956_v23 = vsel %vm8973_vm4, %v5955_v25, %v5079_v29  ;;  %vm8975_vm4 = vcmask 654336   ;;  %v2701_v25 = vcombine.low %v2646_v62, %v2661_v27  ;;  %v2604_v55 = vcombine.high %v2559_v58, %v2591_v22 }
 0x336   :  { %v5083_v39 = vpop.permute.xlu0 %5082  ;;  %5310 = vrot.lane.b32.xlu1 %v2471_v5, %s6334_s11  ;;  %v2669_v53 = vcombine.low %v2615_v63, %v2631_v49  ;;  %v2670_v54 = vcombine.high %v2615_v63, %v2631_v49  ;;  %v2622_v0 = vrot.slane %v2608_v52, %v6739_v14  ;;  %v8989_v63 = vld [vmem:[#allocation125_spill] sm:$0xff]  ;;  %v8995_v52 = vld [vmem:[#allocation8_spill] sm:$0xff] }
 0x337   :  { %v5957_v17 = vsel %vm8974_vm3, %v5956_v23, %v5083_v39  ;;  %vm8981_vm3 = vcmask 687104   ;;  %v2603_v39 = vcombine.low %v2559_v58, %v2591_v22  ;;  %v2598_v23 = vrot.slane %v2584_v26, %v6752_v37 }
 0x338   :  { %5314 = vrot.lane.b32.xlu0 %v2472_v46, %s6335_s12  ;;  %v5087_v2 = vpop.permute.xlu1 %5086  ;;  %v2677_v13 = vrot.slane %v2669_v53, %v6752_v37  ;;  %v8993_v53 = vld [vmem:[#allocation100_spill] sm:$0xff] }
 0x339   :  { %v5958_v11 = vsel %vm8975_vm4, %v5957_v17, %v5087_v2  ;;  %vm8982_vm4 = vcmask 719872   ;;  %v2668_v17 = vrot.slane %v2654_v44, %v6739_v14  ;;  %v2702_v2 = vcombine.high %v2646_v62, %v2661_v27 }
 0x33a   :  { %v5091_v60 = vpop.permute.xlu0 %5090  ;;  %5318 = vrot.lane.b32.xlu1 %v2599_v16, %s6336_s13  ;;  %v2709_v16 = vrot.slane %v2701_v25, %v6752_v37  ;;  %v2606_v61 = vcombine.high %v2566_v20, %v2598_v23  ;;  %v2788_v44 = vcombine.high %v8989_v63, %v8871_v19  ;;  %v2773_v9 = vcombine.high %v8993_v53, %v8871_v19  ;;  %v9003_v63 = vld [vmem:[#allocation9_spill] sm:$0xff] }
 0x33b   :  { %v5959_v15 = vsel %vm8981_vm3, %v5958_v11, %v5091_v60  ;;  %vm8984_vm3 = vcmask 752640   ;;  %v2716_v32 = vrot.slane %v2702_v2, %v6752_v37  ;;  %v2717_v27 = vcombine.low %v2653_v59, %v2668_v17 }
 0x33c   :  { %5322 = vrot.lane.b32.xlu0 %v2600_v50, %s6337_s14  ;;  %v5095_v38 = vpop.permute.xlu1 %5094  ;;  %v2605_v50 = vcombine.low %v2566_v20, %v2598_v23  ;;  %v2718_v10 = vcombine.high %v2653_v59, %v2668_v17  ;;  %v8994_v20 = vld [vmem:[#allocation54_spill] sm:$0xff] }
 0x33d   :  { %v5960_v3 = vsel %vm8982_vm4, %v5959_v15, %v5095_v38  ;;  %vm8985_vm4 = vcmask 785408   ;;  %v2733_v38 = vcombine.low %v2677_v13, %v2709_v16  ;;  %v2725_v58 = vrot.slane %v2717_v27, %v6752_v37 }
 0x33e   :  { %v5099_v24 = vpop.permute.xlu0 %5098  ;;  %5326 = vrot.lane.b32.xlu1 %v2601_v35, %s6338_s15  ;;  %v2742_v17 = vcombine.high %v8995_v52, %v8994_v20  ;;  %v9005_v52 = vld [vmem:[#allocation101_spill] sm:$0xff] }
 0x33f   :  { %v5961_v29 = vsel %vm8984_vm3, %v5960_v3, %v5099_v24  ;;  %vm8986_vm3 = vcmask 818176   ;;  %v2734_v24 = vcombine.high %v2677_v13, %v2709_v16  ;;  %v2685_v3 = vcombine.low %v2622_v0, %v2638_v30 }
 0x340   :  { %5330 = vrot.lane.b32.xlu0 %v2602_v34, %s8746_s16  ;;  %v5103_v5 = vpop.permute.xlu1 %5102  ;;  %v2684_v34 = vrot.slane %v2670_v54, %v6752_v37 }
 0x341   :  { %v5962_v8 = vsel %vm8985_vm4, %v5961_v29, %v5103_v5  ;;  %vm8987_vm4 = vcmask 850944  }
 0x342   :  { %v5107_v46 = vpop.permute.xlu0 %5106  ;;  %5334 = vrot.lane.b32.xlu1 %v2603_v39, %s6340_s17  ;;  %v2735_v62 = vcombine.low %v2684_v34, %v2716_v32  ;;  %v2736_v5 = vcombine.high %v2684_v34, %v2716_v32  ;;  %v2686_v39 = vcombine.high %v2622_v0, %v2638_v30  ;;  %v8998_v0 = vld [vmem:[#allocation105_spill] sm:$0xff]  ;;  %v8999_v32 = vld [vmem:[#allocation84_spill] sm:$0xff] }
 0x343   :  { %v5963_v60 = vsel %vm8986_vm3, %v5962_v8, %v5107_v46  ;;  %vm8988_vm3 = vcmask 883712   ;;  %v2693_v46 = vrot.slane %v2685_v3, %v6752_v37  ;;  %v8991_v8 = vld [vmem:[#allocation77_spill] sm:$0xff]  ;;  %v2804_v27 = vcombine.high %v8999_v32, %v8998_v0 }
 0x344   :  { %5338 = vrot.lane.b32.xlu0 %v2604_v55, %s8744_s18  ;;  %v5111_v11 = vpop.permute.xlu1 %5110  ;;  %v8992_v55 = vld [vmem:[#allocation31_spill] sm:$0xff]  ;;  %v2700_v59 = vrot.slane %v2686_v39, %v6752_v37  ;;  %v2868_v39 = vcombine.high %v7249_v41, %v7229_v48  ;;  %v2907_v32 = vcombine.high %v9005_v52, %v8871_v19 }
 0x345   :  { %v5964_v28 = vsel %vm8987_vm4, %v5963_v60, %v5111_v11  ;;  %v2758_v43 = vcombine.high %v8992_v55, %v8991_v8  ;;  %v2737_v16 = vcombine.low %v2693_v46, %v2725_v58  ;;  %v2732_v60 = vrot.slane %v2718_v10, %v6752_v37  ;;  %v9000_v10 = vld [vmem:[#allocation78_spill] sm:$0xff] }
 0x346   :  { %v5115_v36 = vpop.permute.xlu0 %5114  ;;  %5342 = vrot.lane.b32.xlu1 %v2605_v50, %s6342_s19  ;;  %v2802_v11 = vrot.slane %v2788_v44, %v6739_v14  ;;  %v8996_v50 = vld [vmem:[#allocation143_spill] sm:$0xff]  ;;  %v2738_v54 = vcombine.high %v2693_v46, %v2725_v58  ;;  %vm9006_vm4 = vcmask 359424  }
 0x347   :  { %v5965_v26 = vsel %vm8988_vm3, %v5964_v28, %v5115_v36  ;;  %v2836_v36 = vcombine.high %v8996_v50, %v7160_v1  ;;  %v2772_v13 = vrot.slane %v2758_v43, %v6739_v14  ;;  %v2756_v1 = vrot.slane %v2742_v17, %v6739_v14  ;;  %v9002_v58 = vld [vmem:[#allocation55_spill] sm:$0xff] }
 0x348   :  { %5346 = vrot.lane.b32.xlu0 %v2606_v61, %s6344_s22  ;;  %v5119_v15 = vpop.permute.xlu1 %5118  ;;  %v8997_v61 = vcombine.low %v7081_v33, %v7068_v7  ;;  %v2740_v3 = vcombine.high %v2700_v59, %v2732_v60  ;;  %v2875_v44 = vcombine.low %v9003_v63, %v9002_v58  ;;  %v2914_v17 = vrot.slane %v9005_v52, %v6739_v14 }
 0x349   :  { %v5966_v22 = vsel %vm8752_vm5, %v5965_v26, %v5119_v15  ;;  %v2787_v26 = vrot.slane %v2773_v9, %v6739_v14  ;;  %v2739_v15 = vcombine.low %v2700_v59, %v2732_v60  ;;  %v2819_v34 = vcombine.low %v2756_v1, %v2772_v13 }
 0x34a   :  { %v5123_v35 = vpop.permute.xlu0 %5122  ;;  %5350 = vrot.lane.b32.xlu1 %v2733_v38, %s8742_s21  ;;  %s8990_s21 = smov 104   ;;  %v2850_v38 = vrot.slane %v2836_v36, %v6752_v37  ;;  %v2820_v9 = vcombine.high %v2756_v1, %v2772_v13  ;;  %vm9011_vm3 = vcmask 392192  }
 0x34b   :  { %v5967_v49 = vsel %vm8751_vm8, %v5966_v22, %v5123_v35  ;;  %v2851_v35 = vcombine.low %v2787_v26, %v2802_v11 }
 0x34c   :  { %5354 = vrot.lane.b32.xlu0 %v2734_v24, %s6346_s24  ;;  %v5127_v56 = vpop.permute.xlu1 %5126 }
 0x34d   :  { %v5968_v29 = vsel %vm8750_vm6, %v5967_v49, %v5127_v56  ;;  %v9001_v49 = vld [vmem:[#allocation32_spill] sm:$0xff]  ;;  %v2859_v53 = vrot.slane %v2851_v35, %v6752_v37 }
 0x34e   :  { %v5131_v25 = vpop.permute.xlu0 %5130  ;;  %5358 = vrot.lane.b32.xlu1 %v2735_v62, %s8990_s21  ;;  %v2891_v56 = vcombine.low %v9001_v49, %v9000_v10  ;;  %v2818_v62 = vrot.slane %v2804_v27, %v6752_v37  ;;  %v2892_v13 = vcombine.high %v9001_v49, %v9000_v10  ;;  %v2834_v27 = vrot.slane %v2820_v9, %v6752_v37  ;;  %v9009_v9 = vld [vmem:[#allocation56_spill] sm:$0xff] }
 0x34f   :  { %v5969_v23 = vsel %vm8749_vm7, %v5968_v29, %v5131_v25  ;;  %v2852_v25 = vcombine.high %v2787_v26, %v2802_v11  ;;  %v2876_v26 = vcombine.high %v9003_v63, %v9002_v58  ;;  %v2921_v49 = vrot.slane %v2907_v32, %v6739_v14 }
 0x350   :  { %6157 = vst [vmem:[#allocation5 + $0x8] sm:$0x3f] %v5969_v23  ;;  %5362 = vrot.lane.b32.xlu0 %v2736_v5, %s8951_s23  ;;  %v5135_v2 = vpop.permute.xlu1 %5134  ;;  %v9004_v23 = vld [vmem:[#allocation126_spill] sm:$0xff]  ;;  %v2869_v43 = vcombine.low %v2818_v62, %v2850_v38  ;;  %v2899_v20 = vrot.slane %v2891_v56, %v6739_v14  ;;  %v2870_v36 = vcombine.high %v2818_v62, %v2850_v38 }
 0x351   :  { %v5970_v30 = vsel %vm5877_vm9, %v8997_v61, %v5135_v2  ;;  %v2929_v46 = vrot.slane %v9004_v23, %v6739_v14  ;;  %v2827_v2 = vrot.slane %v2819_v34, %v6752_v37  ;;  %v2922_v60 = vcombine.high %v9004_v23, %v8871_v19 }
 0x352   :  { %v5139_v28 = vpop.permute.xlu0 %5138  ;;  %5366 = vrot.lane.b32.xlu1 %v2737_v16, %s6348_s26  ;;  %v2883_v16 = vrot.slane %v2875_v44, %v6739_v14  ;;  %v2866_v59 = vrot.slane %v2852_v25, %v6752_v37  ;;  %v2906_v34 = vrot.slane %v2892_v13, %v6739_v14  ;;  %v2890_v62 = vrot.slane %v2876_v26, %v6739_v14  ;;  %v9014_v13 = vld [vmem:[#allocation102_spill] sm:$0xff] }
 0x353   :  { %v5971_v7 = vsel %vm5879_vm10, %v5970_v30, %v5139_v28  ;;  %v2969_v28 = vcombine.low %v2914_v17, %v2929_v46  ;;  %v2936_v1 = vrot.slane %v2922_v60, %v6739_v14  ;;  %v2970_v38 = vcombine.high %v2914_v17, %v2929_v46 }
 0x354   :  { %5370 = vrot.lane.b32.xlu0 %v2738_v54, %s8932_s25  ;;  %v5143_v33 = vpop.permute.xlu1 %5142  ;;  %v2871_v54 = vcombine.low %v2827_v2, %v2859_v53  ;;  %v2937_v0 = vcombine.low %v2883_v16, %v2899_v20  ;;  %v2938_v10 = vcombine.high %v2883_v16, %v2899_v20  ;;  %v2874_v44 = vcombine.high %v2834_v27, %v2866_v59  ;;  %v9010_v20 = vld [vmem:[#allocation10_spill] sm:$0xff] }
 0x355   :  { %v5972_v24 = vsel %vm5881_vm11, %v5971_v7, %v5143_v33  ;;  %v2977_v35 = vrot.slane %v2969_v28, %v6752_v37  ;;  %v2984_v25 = vrot.slane %v2970_v38, %v6752_v37  ;;  %v2953_v46 = vcombine.low %v2890_v62, %v2906_v34 }
 0x356   :  { %v5147_v22 = vpop.permute.xlu0 %5146  ;;  %5374 = vrot.lane.b32.xlu1 %v2739_v15, %s6350_s28  ;;  %v2872_v15 = vcombine.high %v2827_v2, %v2859_v53  ;;  %v2945_v56 = vrot.slane %v2937_v0, %v6752_v37  ;;  %v2952_v53 = vrot.slane %v2938_v10, %v6752_v37  ;;  %v3009_v52 = vcombine.low %v9010_v20, %v9009_v9 }
 0x357   :  { %v5973_v29 = vsel %vm5883_vm12, %v5972_v24, %v5147_v22  ;;  %v2986_v17 = vcombine.high %v2921_v49, %v2936_v1  ;;  %v3048_v0 = vrot.slane %v9014_v13, %v6739_v14  ;;  %v2961_v32 = vrot.slane %v2953_v46, %v6752_v37 }
 0x358   :  { %5378 = vrot.lane.b32.xlu0 %v2740_v3, %s6351_s27  ;;  %v5151_v5 = vpop.permute.xlu1 %5150  ;;  %v2873_v3 = vcombine.low %v2834_v27, %v2866_v59  ;;  %v3001_v23 = vcombine.low %v2945_v56, %v2977_v35  ;;  %v3002_v60 = vcombine.high %v2945_v56, %v2977_v35  ;;  %v3017_v27 = vrot.slane %v3009_v52, %v6739_v14 }
 0x359   :  { %v5974_v55 = vsel %vm5885_vm13, %v5973_v29, %v5151_v5  ;;  %v2985_v29 = vcombine.low %v2921_v49, %v2936_v1  ;;  %v3041_v10 = vcombine.high %v9014_v13, %v8871_v19  ;;  %v3010_v56 = vcombine.high %v9010_v20, %v9009_v9 }
 0x35a   :  { %v5155_v8 = vpop.permute.xlu0 %5154  ;;  %5382 = vrot.lane.b32.xlu1 %v2868_v39, %s6322_s0 }
 0x35b   :  { %v5975_v11 = vsel %vm5887_vm14, %v5974_v55, %v5155_v8  ;;  %v9007_v8 = vld [vmem:[#allocation79_spill] sm:$0xff]  ;;  %v9008_v55 = vld [vmem:[#allocation33_spill] sm:$0xff] }
 0x35c   :  { %5386 = vrot.lane.b32.xlu0 %v2869_v43, %s6323_s1  ;;  %v5159_v50 = vpop.permute.xlu1 %5158  ;;  %v3025_v43 = vcombine.low %v9008_v55, %v9007_v8 }
 0x35d   :  { %v5976_v30 = vsel %vm5889_vm15, %v5975_v11, %v5159_v50  ;;  %v9012_v11 = vld [vmem:[#allocation127_spill] sm:$0xff] }
 0x35e   :  { %v5163_v61 = vpop.permute.xlu0 %5162  ;;  %5390 = vrot.lane.b32.xlu1 %v2870_v36, %s6324_s29  ;;  %v3063_v50 = vrot.slane %v9012_v11, %v6739_v14  ;;  %v3033_v59 = vrot.slane %v3025_v43, %v6739_v14  ;;  %v3056_v26 = vcombine.high %v9012_v11, %v8871_v19 }
 0x35f   :  { %v5977_v7 = vsel %vm5891_vm0, %v5976_v30, %v5163_v61  ;;  %v3003_v61 = vcombine.low %v2952_v53, %v2984_v25  ;;  %v2993_v30 = vrot.slane %v2985_v29, %v6752_v37 }
 0x360   :  { %5394 = vrot.lane.b32.xlu0 %v2871_v54, %s6317_s20  ;;  %v5167_v33 = vpop.permute.xlu1 %5166  ;;  %v2954_v54 = vcombine.high %v2890_v62, %v2906_v34  ;;  %v3071_v34 = vcombine.low %v3017_v27, %v3033_v59  ;;  %v3070_v62 = vrot.slane %v3056_v26, %v6739_v14 }
 0x361   :  { %v5978_v24 = vsel %vm5893_vm1, %v5977_v7, %v5167_v33  ;;  %v3004_v33 = vcombine.high %v2952_v53, %v2984_v25  ;;  %v3104_v25 = vcombine.high %v3048_v0, %v3063_v50  ;;  %v3024_v53 = vrot.slane %v3010_v56, %v6739_v14 }
 0x362   :  { %v5171_v22 = vpop.permute.xlu0 %5170  ;;  %5398 = vrot.lane.b32.xlu1 %v2872_v15, %s6325_s30  ;;  %v3103_v15 = vcombine.low %v3048_v0, %v3063_v50  ;;  %v2968_v49 = vrot.slane %v2954_v54, %v6752_v37  ;;  %v3079_v43 = vrot.slane %v3071_v34, %v6752_v37  ;;  %v9023_v54 = vld [vmem:[#allocation57_spill] sm:$0xff]  ;;  %v9025_v0 = vld [vmem:[#allocation128_spill] sm:$0xff] }
 0x363   :  { %v5979_v58 = vsel %vm8748_vm2, %v5978_v24, %v5171_v22  ;;  %v3005_v22 = vcombine.low %v2961_v32, %v2993_v30  ;;  %v3000_v24 = vrot.slane %v2986_v17, %v6752_v37  ;;  %v3118_v17 = vrot.slane %v3104_v25, %v6752_v37 }
 0x364   :  { %5402 = vrot.lane.b32.xlu0 %v2873_v3, %s6326_s3  ;;  %v5175_v63 = vpop.permute.xlu1 %5174  ;;  %v3026_v3 = vcombine.high %v9008_v55, %v9007_v8  ;;  %v3111_v29 = vrot.slane %v3103_v15, %v6752_v37  ;;  %v3072_v8 = vcombine.high %v3017_v27, %v3033_v59  ;;  %v3055_v55 = vrot.slane %v3041_v10, %v6739_v14  ;;  %v9024_v59 = vld [vmem:[#allocation11_spill] sm:$0xff] }
 0x365   :  { %v5980_v39 = vsel %vm9006_vm4, %v5979_v58, %v5175_v63  ;;  %vm9013_vm4 = vcmask 424960   ;;  %v3008_v52 = vcombine.high %v2968_v49, %v3000_v24  ;;  %v3143_v13 = vcombine.low %v9024_v59, %v9023_v54 }
 0x366   :  { %v5179_v5 = vpop.permute.xlu0 %5178  ;;  %5406 = vrot.lane.b32.xlu1 %v2874_v44, %s6327_s4  ;;  %v3006_v44 = vcombine.high %v2961_v32, %v2993_v30  ;;  %v3040_v46 = vrot.slane %v3026_v3, %v6739_v14  ;;  %v3135_v11 = vcombine.low %v3079_v43, %v3111_v29  ;;  %v3086_v30 = vrot.slane %v3072_v8, %v6752_v37  ;;  %v9028_v3 = vld [vmem:[#allocation103_spill] sm:$0xff] }
 0x367   :  { %v5981_v2 = vsel %vm9011_vm3, %v5980_v39, %v5179_v5  ;;  %vm9015_vm3 = vcmask 457728   ;;  %v3197_v32 = vrot.slane %v9025_v0, %v6739_v14  ;;  %v3182_v34 = vrot.slane %v9028_v3, %v6739_v14 }
 0x368   :  { %5410 = vrot.lane.b32.xlu0 %v3001_v23, %s6328_s5  ;;  %v5183_v16 = vpop.permute.xlu1 %5182  ;;  %v3007_v23 = vcombine.low %v2968_v49, %v3000_v24  ;;  %v3087_v50 = vcombine.low %v3024_v53, %v3040_v46  ;;  %v3151_v49 = vrot.slane %v3143_v13, %v6739_v14  ;;  %v3190_v56 = vcombine.high %v9025_v0, %v8871_v19 }
 0x369   :  { %v5982_v28 = vsel %vm9013_vm4, %v5981_v2, %v5183_v16  ;;  %vm9016_vm4 = vcmask 490496   ;;  %v3119_v2 = vcombine.low %v3055_v55, %v3070_v62  ;;  %v3175_v8 = vcombine.high %v9028_v3, %v8871_v19 }
 0x36a   :  { %v5187_v36 = vpop.permute.xlu0 %5186  ;;  %5414 = vrot.lane.b32.xlu1 %v3002_v60, %s6330_s7  ;;  %v3095_v10 = vrot.slane %v3087_v50, %v6752_v37 }
 0x36b   :  { %v5983_v1 = vsel %vm9015_vm3, %v5982_v28, %v5187_v36  ;;  %vm9017_vm3 = vcmask 523264   ;;  %v9021_v36 = vld [vmem:[#allocation80_spill] sm:$0xff]  ;;  %v9022_v28 = vld [vmem:[#allocation34_spill] sm:$0xff] }
 0x36c   :  { %5418 = vrot.lane.b32.xlu0 %v3003_v61, %s6329_s6  ;;  %v5191_v7 = vpop.permute.xlu1 %5190  ;;  %v3159_v61 = vcombine.low %v9022_v28, %v9021_v36 }
 0x36d   :  { %v5984_v35 = vsel %vm9016_vm4, %v5983_v1, %v5191_v7  ;;  %vm9018_vm4 = vcmask 556032   ;;  %v3136_v1 = vcombine.high %v3079_v43, %v3111_v29  ;;  %v3120_v7 = vcombine.high %v3055_v55, %v3070_v62 }
 0x36e   :  { %v5195_v38 = vpop.permute.xlu0 %5194  ;;  %5422 = vrot.lane.b32.xlu1 %v3004_v33, %s6331_s8  ;;  %v3167_v24 = vrot.slane %v3159_v61, %v6739_v14  ;;  %v3144_v43 = vcombine.high %v9024_v59, %v9023_v54 }
 0x36f   :  { %v5985_v58 = vsel %vm9017_vm3, %v5984_v35, %v5195_v38  ;;  %vm9019_vm3 = vcmask 588800   ;;  %v3137_v38 = vcombine.low %v3086_v30, %v3118_v17  ;;  %v3127_v35 = vrot.slane %v3119_v2, %v6752_v37 }
 0x370   :  { %5426 = vrot.lane.b32.xlu0 %v3005_v22, %s6332_s9  ;;  %v5199_v63 = vpop.permute.xlu1 %5198  ;;  %v3088_v22 = vcombine.high %v3024_v53, %v3040_v46  ;;  %v3205_v46 = vcombine.low %v3151_v49, %v3167_v24  ;;  %v3204_v53 = vrot.slane %v3190_v56, %v6739_v14 }
 0x371   :  { %v5986_v39 = vsel %vm9018_vm4, %v5985_v58, %v5199_v63  ;;  %vm9020_vm4 = vcmask 621568   ;;  %v3138_v63 = vcombine.high %v3086_v30, %v3118_v17  ;;  %v3238_v17 = vcombine.high %v3182_v34, %v3197_v32 }
 0x372   :  { %v5203_v5 = vpop.permute.xlu0 %5202  ;;  %5430 = vrot.lane.b32.xlu1 %v3006_v44, %s6333_s10  ;;  %v3237_v44 = vcombine.low %v3182_v34, %v3197_v32  ;;  %v3102_v55 = vrot.slane %v3088_v22, %v6752_v37  ;;  %v3213_v61 = vrot.slane %v3205_v46, %v6752_v37  ;;  %v3158_v30 = vrot.slane %v3144_v43, %v6739_v14  ;;  %v9037_v46 = vld [vmem:[#allocation81_spill] sm:$0xff]  ;;  %v9039_v43 = vld [vmem:[#allocation104_spill] sm:$0xff] }
 0x373   :  { %v5987_v9 = vsel %vm9019_vm3, %v5986_v39, %v5203_v5  ;;  %vm9026_vm3 = vcmask 654336   ;;  %v3139_v5 = vcombine.low %v3095_v10, %v3127_v35  ;;  %v3134_v39 = vrot.slane %v3120_v7, %v6752_v37 }
 0x374   :  { %5434 = vrot.lane.b32.xlu0 %v3007_v23, %s6334_s11  ;;  %v5207_v20 = vpop.permute.xlu1 %5206  ;;  %v3160_v23 = vcombine.high %v9022_v28, %v9021_v36  ;;  %v3245_v2 = vrot.slane %v3237_v44, %v6752_v37  ;;  %v3206_v36 = vcombine.high %v3151_v49, %v3167_v24  ;;  %v3189_v28 = vrot.slane %v3175_v8, %v6739_v14  ;;  %v9038_v8 = vld [vmem:[#allocation35_spill] sm:$0xff] }
 0x375   :  { %v5988_v60 = vsel %vm9020_vm4, %v5987_v9, %v5207_v20  ;;  %vm9027_vm4 = vcmask 687104   ;;  %v3142_v13 = vcombine.high %v3102_v55, %v3134_v39  ;;  %v3252_v0 = vrot.slane %v3238_v17, %v6752_v37 }
 0x376   :  { %v5211_v16 = vpop.permute.xlu0 %5210  ;;  %5438 = vrot.lane.b32.xlu1 %v3008_v52, %s6335_s12  ;;  %v3140_v52 = vcombine.high %v3095_v10, %v3127_v35  ;;  %v3174_v50 = vrot.slane %v3160_v23, %v6739_v14  ;;  %v3253_v32 = vcombine.low %v3189_v28, %v3204_v53  ;;  %v3270_v35 = vcombine.high %v3213_v61, %v3245_v2 }
 0x377   :  { %v5989_v27 = vsel %vm9026_vm3, %v5988_v60, %v5211_v16  ;;  %vm9029_vm3 = vcmask 719872   ;;  %v3254_v22 = vcombine.high %v3189_v28, %v3204_v53  ;;  %v3309_v53 = vcombine.high %v9039_v43, %v8871_v19 }
 0x378   :  { %5442 = vrot.lane.b32.xlu0 %v3135_v11, %s6336_s13  ;;  %v5215_v26 = vpop.permute.xlu1 %5214  ;;  %v3141_v11 = vcombine.low %v3102_v55, %v3134_v39  ;;  %v3221_v7 = vcombine.low %v3158_v30, %v3174_v50  ;;  %v3261_v10 = vrot.slane %v3253_v32, %v6752_v37  ;;  %v3222_v49 = vcombine.high %v3158_v30, %v3174_v50  ;;  %v9046_v32 = vld [vmem:[#allocation144_spill] sm:$0xff] }
 0x379   :  { %v5990_v15 = vsel %vm9027_vm4, %v5989_v27, %v5215_v26  ;;  %vm9030_vm4 = vcmask 752640   ;;  %v3268_v23 = vrot.slane %v3254_v22, %v6752_v37  ;;  %v3294_v55 = vcombine.high %v9038_v8, %v9037_v46 }
 0x37a   :  { %v5219_v33 = vpop.permute.xlu0 %5218  ;;  %5446 = vrot.lane.b32.xlu1 %v3136_v1, %s6337_s14  ;;  %v3269_v1 = vcombine.low %v3213_v61, %v3245_v2  ;;  %v3229_v56 = vrot.slane %v3221_v7, %v6752_v37  ;;  %v3236_v17 = vrot.slane %v3222_v49, %v6752_v37  ;;  %v9044_v50 = vcombine.low %v8955_v40, %v7135_v42 }
 0x37b   :  { %v5991_v62 = vsel %vm9029_vm3, %v5990_v15, %v5219_v33  ;;  %vm9031_vm3 = vcmask 785408   ;;  %v3220_v33 = vrot.slane %v3206_v36, %v6752_v37  ;;  %v3404_v22 = vcombine.high %v7318_v47, %v7305_v12 }
 0x37c   :  { %5450 = vrot.lane.b32.xlu0 %v3137_v38, %s6338_s15  ;;  %v5223_v58 = vpop.permute.xlu1 %5222  ;;  %v3273_v39 = vcombine.low %v3229_v56, %v3261_v10  ;;  %v3274_v61 = vcombine.high %v3229_v56, %v3261_v10  ;;  %v9049_v56 = vld [vmem:[#allocation59_spill] sm:$0xff] }
 0x37d   :  { %v5992_v29 = vsel %vm9030_vm4, %v5991_v62, %v5223_v58  ;;  %vm9032_vm4 = vcmask 818176   ;;  %v3271_v34 = vcombine.low %v3220_v33, %v3252_v0  ;;  %v9036_v62 = vld [vmem:[#allocation129_spill] sm:$0xff] }
 0x37e   :  { %v5227_v25 = vpop.permute.xlu0 %5226  ;;  %5454 = vrot.lane.b32.xlu1 %v3138_v63, %s8746_s16  ;;  %v3324_v58 = vcombine.high %v9036_v62, %v8871_v19  ;;  %v9050_v62 = vld [vmem:[#allocation13_spill] sm:$0xff] }
 0x37f   :  { %v5993_v9 = vsel %vm9031_vm3, %v5992_v29, %v5227_v25  ;;  %vm9033_vm3 = vcmask 850944   ;;  %v3272_v25 = vcombine.high %v3220_v33, %v3252_v0  ;;  %v9045_v0 = vld [vmem:[#allocation64_spill] sm:$0xff] }
 0x380   :  { %5458 = vrot.lane.b32.xlu0 %v3139_v5, %s6340_s17  ;;  %v5231_v20 = vpop.permute.xlu1 %5230  ;;  %v3338_v2 = vrot.slane %v3324_v58, %v6739_v14  ;;  %v3411_v58 = vcombine.low %v9050_v62, %v9049_v56 }
 0x381   :  { %v5994_v60 = vsel %vm9032_vm4, %v5993_v9, %v5231_v20  ;;  %vm9034_vm4 = vcmask 883712   ;;  %v9040_v9 = vld [vmem:[#allocation58_spill] sm:$0xff]  ;;  %v9041_v20 = vld [vmem:[#allocation12_spill] sm:$0xff] }
 0x382   :  { %v5235_v16 = vpop.permute.xlu0 %5234  ;;  %5462 = vrot.lane.b32.xlu1 %v3140_v52, %s8744_s18  ;;  %s9035_s18 = smov 96   ;;  %v3278_v52 = vcombine.high %v9041_v20, %v9040_v9  ;;  %v9052_v9 = vld [vmem:[#allocation106_spill] sm:$0xff] }
 0x383   :  { %v5995_v54 = vsel %vm9033_vm3, %v5994_v60, %v5235_v16  ;;  %v9042_v16 = vld [vmem:[#allocation19_spill] sm:$0xff]  ;;  %v3450_v20 = vrot.slane %v9052_v9, %v6739_v14  ;;  %vm9053_vm3 = vcmask 359424  }
 0x384   :  { %5466 = vrot.lane.b32.xlu0 %v3141_v11, %s6342_s19  ;;  %v5239_v59 = vpop.permute.xlu1 %5238  ;;  %v9043_v60 = vld [vmem:[#allocation147_spill] sm:$0xff] }
 0x385   :  { %v5996_v26 = vsel %vm9034_vm4, %v5995_v54, %v5239_v59  ;;  %v3372_v11 = vcombine.high %v9043_v60, %v9042_v16  ;;  %v3275_v59 = vcombine.low %v3236_v17, %v3268_v23  ;;  %vm9054_vm4 = vcmask 392192  }
 0x386   :  { %v5243_v27 = vpop.permute.xlu0 %5242  ;;  %5470 = vrot.lane.b32.xlu1 %v3142_v13, %s6344_s22  ;;  %v3308_v13 = vrot.slane %v3294_v55, %v6739_v14 }
 0x387   :  { %v5997_v15 = vsel %vm8752_vm5, %v5996_v26, %v5243_v27  ;;  %v3340_v27 = vcombine.high %v9046_v32, %v9045_v0  ;;  %v3323_v26 = vrot.slane %v3309_v53, %v6739_v14  ;;  %v3386_v42 = vrot.slane %v3372_v11, %v6752_v37 }
 0x388   :  { %5474 = vrot.lane.b32.xlu0 %v3269_v1, %s9035_s18  ;;  %v5247_v38 = vpop.permute.xlu1 %5246  ;;  %v3292_v1 = vrot.slane %v3278_v52, %v6739_v14  ;;  %v3412_v32 = vcombine.high %v9050_v62, %v9049_v56 }
 0x389   :  { %v5998_v3 = vsel %vm8751_vm8, %v5997_v15, %v5247_v38  ;;  %v3387_v40 = vcombine.low %v3323_v26, %v3338_v2  ;;  %v3276_v15 = vcombine.high %v3236_v17, %v3268_v23  ;;  %v3354_v49 = vrot.slane %v3340_v27, %v6752_v37 }
 0x38a   :  { %v5251_v24 = vpop.permute.xlu0 %5250  ;;  %5478 = vrot.lane.b32.xlu1 %v3270_v35, %s6346_s24  ;;  %v3356_v43 = vcombine.high %v3292_v1, %v3308_v13  ;;  %v3419_v17 = vrot.slane %v3411_v58, %v6739_v14 }
 0x38b   :  { %v5999_v63 = vsel %vm8750_vm6, %v5998_v3, %v5251_v24  ;;  %v3355_v24 = vcombine.low %v3292_v1, %v3308_v13  ;;  %v9047_v3 = vld [vmem:[#allocation82_spill] sm:$0xff]  ;;  %v3395_v23 = vrot.slane %v3387_v40, %v6752_v37  ;;  %v3406_v55 = vcombine.high %v3354_v49, %v3386_v42 }
 0x38c   :  { %5482 = vrot.lane.b32.xlu0 %v3271_v34, %s8990_s21  ;;  %v5255_v44 = vpop.permute.xlu1 %5254  ;;  %v9048_v34 = vld [vmem:[#allocation36_spill] sm:$0xff]  ;;  %v3443_v13 = vcombine.high %v9052_v9, %v8871_v19  ;;  %v3370_v0 = vrot.slane %v3356_v43, %v6752_v37  ;;  %v9059_v9 = vld [vmem:[#allocation131_spill] sm:$0xff] }
 0x38d   :  { %v6000_v5 = vsel %vm8749_vm7, %v5999_v63, %v5255_v44  ;;  %v3427_v10 = vcombine.low %v9048_v34, %v9047_v3  ;;  %v3388_v63 = vcombine.high %v3323_v26, %v3338_v2  ;;  %v9051_v44 = vld [vmem:[#allocation130_spill] sm:$0xff]  ;;  %v3363_v52 = vrot.slane %v3355_v24, %v6752_v37 }
 0x38e   :  { %v5259_v29 = vpop.permute.xlu0 %5258  ;;  %6158 = vst [vmem:[#allocation5 + $0x10] sm:$0x3f] %v6000_v5  ;;  %5486 = vrot.lane.b32.xlu1 %v3272_v25, %s8951_s23  ;;  %v3465_v25 = vrot.slane %v9051_v44, %v6739_v14  ;;  %v3458_v2 = vcombine.high %v9051_v44, %v8871_v19  ;;  %v3457_v24 = vrot.slane %v3443_v13, %v6739_v14 }
 0x38f   :  { %v6001_v36 = vsel %vm5877_vm9, %v9044_v50, %v5259_v29  ;;  %v3435_v53 = vrot.slane %v3427_v10, %v6739_v14  ;;  %v3407_v50 = vcombine.low %v3363_v52, %v3395_v23  ;;  %v3592_v13 = vcombine.high %v9059_v9, %v8871_v19 }
 0x390   :  { %5490 = vrot.lane.b32.xlu0 %v3273_v39, %s6348_s26  ;;  %v5263_v28 = vpop.permute.xlu1 %5262  ;;  %v3405_v39 = vcombine.low %v3354_v49, %v3386_v42  ;;  %v3505_v16 = vcombine.low %v3450_v20, %v3465_v25  ;;  %v3472_v27 = vrot.slane %v3458_v2, %v6739_v14  ;;  %v3506_v26 = vcombine.high %v3450_v20, %v3465_v25 }
 0x391   :  { %v6002_v54 = vsel %vm5879_vm10, %v6001_v36, %v5263_v28  ;;  %v3402_v36 = vrot.slane %v3388_v63, %v6752_v37  ;;  %v3599_v20 = vrot.slane %v9059_v9, %v6739_v14 }
 0x392   :  { %v5267_v30 = vpop.permute.xlu0 %5266  ;;  %5494 = vrot.lane.b32.xlu1 %v3274_v61, %s8932_s25  ;;  %v3513_v1 = vrot.slane %v3505_v16, %v6752_v37  ;;  %v3520_v10 = vrot.slane %v3506_v26, %v6752_v37  ;;  %v3521_v49 = vcombine.low %v3457_v24, %v3472_v27 }
 0x393   :  { %v6003_v7 = vsel %vm5881_vm11, %v6002_v54, %v5267_v30  ;;  %v3408_v30 = vcombine.high %v3363_v52, %v3395_v23  ;;  %v3428_v54 = vcombine.high %v9048_v34, %v9047_v3  ;;  %v3426_v34 = vrot.slane %v3412_v32, %v6739_v14 }
 0x394   :  { %5498 = vrot.lane.b32.xlu0 %v3275_v59, %s6350_s28  ;;  %v5271_v33 = vpop.permute.xlu1 %5270  ;;  %v3473_v59 = vcombine.low %v3419_v17, %v3435_v53  ;;  %v3529_v16 = vrot.slane %v3521_v49, %v6752_v37 }
 0x395   :  { %v6004_v35 = vsel %vm5883_vm12, %v6003_v7, %v5271_v33  ;;  %v3409_v7 = vcombine.low %v3370_v0, %v3402_v36 }
 0x396   :  { %v5275_v38 = vpop.permute.xlu0 %5274  ;;  %5502 = vrot.lane.b32.xlu1 %v3276_v15, %s6351_s27  ;;  %v3481_v3 = vrot.slane %v3473_v59, %v6752_v37 }
 0x397   :  { %v6005_v29 = vsel %vm5885_vm13, %v6004_v35, %v5275_v38  ;;  %v3410_v38 = vcombine.high %v3370_v0, %v3402_v36  ;;  %v3442_v35 = vrot.slane %v3428_v54, %v6739_v14 }
 0x398   :  { %5506 = vrot.lane.b32.xlu0 %v3404_v22, %s6322_s0  ;;  %v5279_v5 = vpop.permute.xlu1 %5278  ;;  %v3474_v22 = vcombine.high %v3419_v17, %v3435_v53  ;;  %v3537_v58 = vcombine.low %v3481_v3, %v3513_v1  ;;  %v3538_v25 = vcombine.high %v3481_v3, %v3513_v1  ;;  %v3522_v53 = vcombine.high %v3457_v24, %v3472_v27 }
 0x399   :  { %v6006_v8 = vsel %vm5887_vm14, %v6005_v29, %v5279_v5  ;;  %v3489_v29 = vcombine.low %v3426_v34, %v3442_v35  ;;  %v9055_v5 = vld [vmem:[#allocation83_spill] sm:$0xff]  ;;  %v3490_v36 = vcombine.high %v3426_v34, %v3442_v35  ;;  %v3606_v24 = vrot.slane %v3592_v13, %v6739_v14 }
 0x39a   :  { %v5283_v46 = vpop.permute.xlu0 %5282  ;;  %5510 = vrot.lane.b32.xlu1 %v3405_v39, %s6323_s1  ;;  %v9056_v39 = vld [vmem:[#allocation37_spill] sm:$0xff]  ;;  %v3536_v1 = vrot.slane %v3522_v53, %v6752_v37 }
 0x39b   :  { %v6007_v60 = vsel %vm5889_vm15, %v6006_v8, %v5283_v46  ;;  %v3561_v23 = vcombine.low %v9056_v39, %v9055_v5  ;;  %v3488_v46 = vrot.slane %v3474_v22, %v6752_v37  ;;  %v9057_v8 = vld [vmem:[#allocation60_spill] sm:$0xff]  ;;  %v3497_v54 = vrot.slane %v3489_v29, %v6752_v37 }
 0x39c   :  { %5514 = vrot.lane.b32.xlu0 %v3406_v55, %s6324_s29  ;;  %v5287_v11 = vpop.permute.xlu1 %5286  ;;  %v9058_v55 = vld [vmem:[#allocation14_spill] sm:$0xff]  ;;  %v3504_v35 = vrot.slane %v3490_v36, %v6752_v37 }
 0x39d   :  { %v6008_v61 = vsel %vm5891_vm0, %v6007_v60, %v5287_v11  ;;  %v3545_v43 = vcombine.low %v9058_v55, %v9057_v8  ;;  %v3539_v2 = vcombine.low %v3488_v46, %v3520_v10  ;;  %v3541_v26 = vcombine.low %v3497_v54, %v3529_v16 }
 0x39e   :  { %v5291_v28 = vpop.permute.xlu0 %5290  ;;  %5518 = vrot.lane.b32.xlu1 %v3407_v50, %s6317_s20  ;;  %v3540_v50 = vcombine.high %v3488_v46, %v3520_v10  ;;  %v3546_v22 = vcombine.high %v9058_v55, %v9057_v8 }
 0x39f   :  { %v6009_v42 = vsel %vm5893_vm1, %v6008_v61, %v5291_v28  ;;  %v3569_v28 = vrot.slane %v3561_v23, %v6739_v14  ;;  %v9062_v61 = vld [vmem:[#allocation108_spill] sm:$0xff]  ;;  %v3553_v59 = vrot.slane %v3545_v43, %v6739_v14 }
 0x3a0   :  { %5522 = vrot.lane.b32.xlu0 %v3408_v30, %s6325_s30  ;;  %v5295_v40 = vpop.permute.xlu1 %5294  ;;  %v3584_v30 = vrot.slane %v9062_v61, %v6739_v14 }
 0x3a1   :  { %v6010_v15 = vsel %vm8748_vm2, %v6009_v42, %v5295_v40 }
 0x3a2   :  { %v5299_v33 = vpop.permute.xlu0 %5298  ;;  %5526 = vrot.lane.b32.xlu1 %v3409_v7, %s6326_s3  ;;  %v3639_v0 = vcombine.low %v3584_v30, %v3599_v20  ;;  %v3542_v7 = vcombine.high %v3497_v54, %v3529_v16  ;;  %v3640_v3 = vcombine.high %v3584_v30, %v3599_v20 }
 0x3a3   :  { %v6011_v56 = vsel %vm9053_vm3, %v6010_v15, %v5299_v33  ;;  %vm9060_vm3 = vcmask 424960   ;;  %v3562_v33 = vcombine.high %v9056_v39, %v9055_v5  ;;  %v3607_v15 = vcombine.low %v3553_v59, %v3569_v28 }
 0x3a4   :  { %5530 = vrot.lane.b32.xlu0 %v3410_v38, %s6327_s4  ;;  %v5303_v62 = vpop.permute.xlu1 %5302  ;;  %v3577_v38 = vcombine.high %v9062_v61, %v8871_v19  ;;  %v3647_v34 = vrot.slane %v3639_v0, %v6752_v37  ;;  %v3560_v39 = vrot.slane %v3546_v22, %v6739_v14  ;;  %v3654_v23 = vrot.slane %v3640_v3, %v6752_v37 }
 0x3a5   :  { %v6012_v44 = vsel %vm9054_vm4, %v6011_v56, %v5303_v62  ;;  %vm9061_vm4 = vcmask 457728   ;;  %v3543_v56 = vcombine.low %v3504_v35, %v3536_v1  ;;  %v3615_v5 = vrot.slane %v3607_v15, %v6752_v37 }
 0x3a6   :  { %v5307_v63 = vpop.permute.xlu0 %5306  ;;  %5534 = vrot.lane.b32.xlu1 %v3537_v58, %s6328_s5  ;;  %v3591_v29 = vrot.slane %v3577_v38, %v6739_v14 }
 0x3a7   :  { %v6013_v52 = vsel %vm9060_vm3, %v6012_v44, %v5307_v63  ;;  %vm9063_vm3 = vcmask 490496   ;;  %v3544_v63 = vcombine.high %v3504_v35, %v3536_v1  ;;  %v3576_v44 = vrot.slane %v3562_v33, %v6739_v14 }
 0x3a8   :  { %5538 = vrot.lane.b32.xlu0 %v3538_v25, %s6330_s7  ;;  %v5311_v17 = vpop.permute.xlu1 %5310  ;;  %v3608_v25 = vcombine.high %v3553_v59, %v3569_v28  ;;  %v3655_v46 = vcombine.low %v3591_v29, %v3606_v24  ;;  %v3671_v43 = vcombine.low %v3615_v5, %v3647_v34  ;;  %v3672_v20 = vcombine.high %v3615_v5, %v3647_v34  ;;  %v9073_v28 = vld [vmem:[#allocation132_spill] sm:$0xff] }
 0x3a9   :  { %v6014_v11 = vsel %vm9061_vm4, %v6013_v52, %v5311_v17  ;;  %vm9064_vm4 = vcmask 523264   ;;  %v3623_v52 = vcombine.low %v3560_v39, %v3576_v44  ;;  %v9069_v17 = vld [vmem:[#allocation85_spill] sm:$0xff]  ;;  %v3733_v61 = vrot.slane %v9073_v28, %v6739_v14 }
 0x3aa   :  { %v5315_v60 = vpop.permute.xlu0 %5314  ;;  %5542 = vrot.lane.b32.xlu1 %v3539_v2, %s6329_s6  ;;  %v9070_v2 = vld [vmem:[#allocation39_spill] sm:$0xff]  ;;  %v3656_v30 = vcombine.high %v3591_v29, %v3606_v24  ;;  %v3663_v0 = vrot.slane %v3655_v46, %v6752_v37  ;;  %v3624_v1 = vcombine.high %v3560_v39, %v3576_v44  ;;  %v3726_v38 = vcombine.high %v9073_v28, %v8871_v19 }
 0x3ab   :  { %v6015_v32 = vsel %vm9063_vm3, %v6014_v11, %v5315_v60  ;;  %vm9065_vm3 = vcmask 556032   ;;  %v3695_v16 = vcombine.low %v9070_v2, %v9069_v17  ;;  %v3622_v60 = vrot.slane %v3608_v25, %v6752_v37  ;;  %v9071_v11 = vld [vmem:[#allocation62_spill] sm:$0xff] }
 0x3ac   :  { %5546 = vrot.lane.b32.xlu0 %v3540_v50, %s6331_s8  ;;  %v5319_v27 = vpop.permute.xlu1 %5318  ;;  %v9072_v50 = vld [vmem:[#allocation15_spill] sm:$0xff]  ;;  %v3631_v33 = vrot.slane %v3623_v52, %v6752_v37  ;;  %v3670_v34 = vrot.slane %v3656_v30, %v6752_v37  ;;  %v3638_v44 = vrot.slane %v3624_v1, %v6752_v37  ;;  %v3740_v29 = vrot.slane %v3726_v38, %v6739_v14 }
 0x3ad   :  { %v6016_v40 = vsel %vm9064_vm4, %v6015_v32, %v5319_v27  ;;  %vm9066_vm4 = vcmask 588800   ;;  %v3679_v36 = vcombine.low %v9072_v50, %v9071_v11  ;;  %v3673_v13 = vcombine.low %v3622_v60, %v3654_v23 }
 0x3ae   :  { %v5323_v42 = vpop.permute.xlu0 %5322  ;;  %5550 = vrot.lane.b32.xlu1 %v3541_v26, %s6332_s9  ;;  %v3674_v26 = vcombine.high %v3622_v60, %v3654_v23  ;;  %v3675_v3 = vcombine.low %v3631_v33, %v3663_v0  ;;  %v3680_v25 = vcombine.high %v9072_v50, %v9071_v11  ;;  %v3860_v1 = vcombine.high %v6932_v57, %v8871_v19  ;;  %v9085_v57 = vld [vmem:[#allocation63_spill] sm:$0xff] }
 0x3af   :  { %v6017_v10 = vsel %vm9065_vm3, %v6016_v40, %v5323_v42  ;;  %vm9067_vm3 = vcmask 621568   ;;  %v3703_v42 = vrot.slane %v3695_v16, %v6739_v14  ;;  %v9076_v40 = vld [vmem:[#allocation110_spill] sm:$0xff]  ;;  %v3687_v15 = vrot.slane %v3679_v36, %v6739_v14 }
 0x3b0   :  { %5554 = vrot.lane.b32.xlu0 %v3542_v7, %s6333_s10  ;;  %v5327_v49 = vpop.permute.xlu1 %5326  ;;  %v3718_v7 = vrot.slane %v9076_v40, %v6739_v14 }
 0x3b1   :  { %v6018_v58 = vsel %vm9066_vm4, %v6017_v10, %v5327_v49  ;;  %vm9068_vm4 = vcmask 654336  }
 0x3b2   :  { %v5331_v62 = vpop.permute.xlu0 %5330  ;;  %5558 = vrot.lane.b32.xlu1 %v3543_v56, %s6334_s11  ;;  %v3773_v35 = vcombine.low %v3718_v7, %v3733_v61  ;;  %v3676_v56 = vcombine.high %v3631_v33, %v3663_v0  ;;  %v3774_v5 = vcombine.high %v3718_v7, %v3733_v61 }
 0x3b3   :  { %v6019_v8 = vsel %vm9067_vm3, %v6018_v58, %v5331_v62  ;;  %vm9074_vm3 = vcmask 687104   ;;  %v3696_v62 = vcombine.high %v9070_v2, %v9069_v17  ;;  %v3741_v58 = vcombine.low %v3687_v15, %v3703_v42 }
 0x3b4   :  { %5562 = vrot.lane.b32.xlu0 %v3544_v63, %s6335_s12  ;;  %v5335_v55 = vpop.permute.xlu1 %5334  ;;  %v3711_v63 = vcombine.high %v9076_v40, %v8871_v19  ;;  %v3781_v39 = vrot.slane %v3773_v35, %v6752_v37  ;;  %v3694_v2 = vrot.slane %v3680_v25, %v6739_v14  ;;  %v3788_v16 = vrot.slane %v3774_v5, %v6752_v37  ;;  %v9083_v35 = vld [vmem:[#allocation86_spill] sm:$0xff] }
 0x3b5   :  { %v6020_v9 = vsel %vm9068_vm4, %v6019_v8, %v5335_v55  ;;  %vm9075_vm4 = vcmask 719872   ;;  %v3677_v8 = vcombine.low %v3638_v44, %v3670_v34  ;;  %v3749_v17 = vrot.slane %v3741_v58, %v6752_v37 }
 0x3b6   :  { %v5339_v53 = vpop.permute.xlu0 %5338  ;;  %5566 = vrot.lane.b32.xlu1 %v3671_v43, %s6336_s13  ;;  %v3725_v52 = vrot.slane %v3711_v63, %v6739_v14  ;;  %v3874_v58 = vrot.slane %v3860_v1, %v6739_v14  ;;  %v9087_v63 = vld [vmem:[#allocation87_spill] sm:$0xff] }
 0x3b7   :  { %v6021_v54 = vsel %vm9074_vm3, %v6020_v9, %v5339_v53  ;;  %vm9077_vm3 = vcmask 752640   ;;  %v3678_v53 = vcombine.high %v3638_v44, %v3670_v34  ;;  %v3710_v9 = vrot.slane %v3696_v62, %v6739_v14  ;;  %v9086_v34 = vld [vmem:[#allocation17_spill] sm:$0xff] }
 0x3b8   :  { %5570 = vrot.lane.b32.xlu0 %v3672_v20, %s6337_s14  ;;  %v5343_v59 = vpop.permute.xlu1 %5342  ;;  %v3742_v20 = vcombine.high %v3687_v15, %v3703_v42  ;;  %v3789_v60 = vcombine.low %v3725_v52, %v3740_v29  ;;  %v3805_v36 = vcombine.low %v3749_v17, %v3781_v39  ;;  %v3806_v30 = vcombine.high %v3749_v17, %v3781_v39 }
 0x3b9   :  { %v6022_v27 = vsel %vm9075_vm4, %v6021_v54, %v5343_v59  ;;  %vm9078_vm4 = vcmask 785408   ;;  %v3757_v54 = vcombine.low %v3694_v2, %v3710_v9  ;;  %v3758_v33 = vcombine.high %v3694_v2, %v3710_v9 }
 0x3ba   :  { %v5347_v32 = vpop.permute.xlu0 %5346  ;;  %5574 = vrot.lane.b32.xlu1 %v3673_v13, %s6338_s15  ;;  %v3756_v59 = vrot.slane %v3742_v20, %v6752_v37  ;;  %v3790_v13 = vcombine.high %v3725_v52, %v3740_v29  ;;  %v3908_v44 = vcombine.high %v9087_v63, %v7323_v21  ;;  %v9088_v29 = vcombine.low %v7249_v41, %v7229_v48 }
 0x3bb   :  { %v6023_v22 = vsel %vm9077_vm3, %v6022_v27, %v5347_v32  ;;  %vm9080_vm3 = vcmask 818176   ;;  %v3765_v38 = vrot.slane %v3757_v54, %v6752_v37  ;;  %v3772_v39 = vrot.slane %v3758_v33, %v6752_v37 }
 0x3bc   :  { %5578 = vrot.lane.b32.xlu0 %v3674_v26, %s8746_s16  ;;  %v5351_v24 = vpop.permute.xlu1 %5350  ;;  %s9079_s16 = smov 84   ;;  %v3807_v27 = vcombine.low %v3756_v59, %v3788_v16  ;;  %v3797_v26 = vrot.slane %v3789_v60, %v6752_v37  ;;  %v3808_v7 = vcombine.high %v3756_v59, %v3788_v16  ;;  %v3804_v62 = vrot.slane %v3790_v13, %v6752_v37  ;;  %v9091_v60 = vld [vmem:[#allocation88_spill] sm:$0xff] }
 0x3bd   :  { %v6024_v49 = vsel %vm9078_vm4, %v6023_v22, %v5351_v24  ;;  %vm9081_vm4 = vcmask 850944   ;;  %v9084_v22 = vld [vmem:[#allocation40_spill] sm:$0xff]  ;;  %v3922_v9 = vrot.slane %v3908_v44, %v6752_v37 }
 0x3be   :  { %v5355_v10 = vpop.permute.xlu0 %5354  ;;  %5582 = vrot.lane.b32.xlu1 %v3675_v3, %s6340_s17  ;;  %v3830_v24 = vcombine.high %v9084_v22, %v9083_v35  ;;  %v3845_v3 = vcombine.high %v8933_v51, %v8871_v19  ;;  %v3810_v5 = vcombine.high %v3765_v38, %v3797_v26  ;;  %v3812_v2 = vcombine.high %v3772_v39, %v3804_v62 }
 0x3bf   :  { %v6025_v23 = vsel %vm9080_vm3, %v6024_v49, %v5355_v10  ;;  %vm9082_vm3 = vcmask 883712   ;;  %v3814_v10 = vcombine.high %v9086_v34, %v9085_v57 }
 0x3c0   :  { %5586 = vrot.lane.b32.xlu0 %v3676_v56, %s9079_s16  ;;  %v5359_v46 = vpop.permute.xlu1 %5358  ;;  %v3809_v56 = vcombine.low %v3765_v38, %v3797_v26 }
 0x3c1   :  { %v6026_v43 = vsel %vm9081_vm4, %v6025_v23, %v5359_v46  ;;  %v3844_v23 = vrot.slane %v3830_v24, %v6739_v14  ;;  %v9089_v46 = vld [vmem:[#allocation148_spill] sm:$0xff]  ;;  %v3828_v21 = vrot.slane %v3814_v10, %v6739_v14  ;;  %vm9097_vm4 = vcmask 359424  }
 0x3c2   :  { %v5363_v55 = vpop.permute.xlu0 %5362  ;;  %5590 = vrot.lane.b32.xlu1 %v3677_v8, %s6342_s19  ;;  %v9090_v8 = vld [vmem:[#allocation145_spill] sm:$0xff] }
 0x3c3   :  { %v6027_v11 = vsel %vm9082_vm3, %v6026_v43, %v5363_v55  ;;  %v3876_v55 = vcombine.high %v9090_v8, %v9089_v46  ;;  %v3859_v43 = vrot.slane %v3845_v3, %v6739_v14  ;;  %v3891_v16 = vcombine.low %v3828_v21, %v3844_v23 }
 0x3c4   :  { %5594 = vrot.lane.b32.xlu0 %v3678_v53, %s6344_s22  ;;  %v5367_v50 = vpop.permute.xlu1 %5366  ;;  %v3811_v53 = vcombine.low %v3772_v39, %v3804_v62  ;;  %vm9102_vm3 = vcmask 392192  }
 0x3c5   :  { %v6028_v61 = vsel %vm8752_vm5, %v6027_v11, %v5367_v50  ;;  %v3923_v20 = vcombine.low %v3859_v43, %v3874_v58  ;;  %v9092_v11 = vld [vmem:[#allocation42_spill] sm:$0xff]  ;;  %v3924_v54 = vcombine.high %v3859_v43, %v3874_v58  ;;  %v3899_v35 = vrot.slane %v3891_v16, %v6752_v37 }
 0x3c6   :  { %v5371_v28 = vpop.permute.xlu0 %5370  ;;  %5598 = vrot.lane.b32.xlu1 %v3805_v36, %s9035_s18  ;;  %v3963_v50 = vcombine.low %v9092_v11, %v9091_v60  ;;  %v3890_v36 = vrot.slane %v3876_v55, %v6752_v37  ;;  %v3964_v63 = vcombine.high %v9092_v11, %v9091_v60 }
 0x3c7   :  { %v6029_v0 = vsel %vm8751_vm8, %v6028_v61, %v5371_v28  ;;  %v9093_v28 = vld [vmem:[#allocation65_spill] sm:$0xff]  ;;  %v9094_v61 = vld [vmem:[#allocation18_spill] sm:$0xff]  ;;  %v3938_v58 = vrot.slane %v3924_v54, %v6752_v37  ;;  %v9099_v54 = vld [vmem:[#allocation44_spill] sm:$0xff] }
 0x3c8   :  { %5602 = vrot.lane.b32.xlu0 %v3806_v30, %s6346_s24  ;;  %v5375_v32 = vpop.permute.xlu1 %5374  ;;  %v3947_v30 = vcombine.low %v9094_v61, %v9093_v28  ;;  %v3971_v33 = vrot.slane %v3963_v50, %v6739_v14  ;;  %v3942_v34 = vcombine.high %v3890_v36, %v3922_v9 }
 0x3c9   :  { %v6030_v40 = vsel %vm8750_vm6, %v6029_v0, %v5375_v32  ;;  %v3940_v0 = vcombine.high %v7397_v45, %v7377_v4  ;;  %v9095_v32 = vld [vmem:[#allocation133_spill] sm:$0xff] }
 0x3ca   :  { %v5379_v42 = vpop.permute.xlu0 %5378  ;;  %5606 = vrot.lane.b32.xlu1 %v3807_v27, %s8990_s21  ;;  %v4001_v27 = vrot.slane %v9095_v32, %v6739_v14  ;;  %v3955_v22 = vrot.slane %v3947_v30, %v6739_v14  ;;  %v3994_v24 = vcombine.high %v9095_v32, %v8871_v19  ;;  %v9098_v30 = vld [vmem:[#allocation90_spill] sm:$0xff]  ;;  %v9101_v32 = vld [vmem:[#allocation20_spill] sm:$0xff] }
 0x3cb   :  { %v6031_v15 = vsel %vm8749_vm7, %v6030_v40, %v5379_v42  ;;  %v3941_v42 = vcombine.low %v3890_v36, %v3922_v9  ;;  %v3931_v40 = vrot.slane %v3923_v20, %v6752_v37 }
 0x3cc   :  { %6159 = vst [vmem:[#allocation5 + $0x18] sm:$0x3f] %v6031_v15  ;;  %5610 = vrot.lane.b32.xlu0 %v3808_v7, %s8951_s23  ;;  %v5383_v49 = vpop.permute.xlu1 %5382  ;;  %v3892_v7 = vcombine.high %v3828_v21, %v3844_v23  ;;  %v9096_v15 = vld [vmem:[#allocation114_spill] sm:$0xff]  ;;  %v4009_v44 = vcombine.low %v3955_v22, %v3971_v33 }
 0x3cd   :  { %v6032_v51 = vsel %vm5877_vm9, %v9088_v29, %v5383_v49  ;;  %v3986_v38 = vrot.slane %v9096_v15, %v6739_v14  ;;  %v3943_v62 = vcombine.low %v3899_v35, %v3931_v40  ;;  %v3944_v46 = vcombine.high %v3899_v35, %v3931_v40 }
 0x3ce   :  { %v5387_v25 = vpop.permute.xlu0 %5386  ;;  %5614 = vrot.lane.b32.xlu1 %v3809_v56, %s6348_s26  ;;  %v3906_v29 = vrot.slane %v3892_v7, %v6752_v37  ;;  %v4017_v20 = vrot.slane %v4009_v44, %v6752_v37  ;;  %v9103_v7 = vld [vmem:[#allocation134_spill] sm:$0xff] }
 0x3cf   :  { %v6033_v48 = vsel %vm5879_vm10, %v6032_v51, %v5387_v25  ;;  %v4041_v10 = vcombine.low %v3986_v38, %v4001_v27  ;;  %v3979_v25 = vcombine.high %v9096_v15, %v8871_v19  ;;  %v3948_v51 = vcombine.high %v9094_v61, %v9093_v28 }
 0x3d0   :  { %5618 = vrot.lane.b32.xlu0 %v3810_v5, %s8932_s25  ;;  %v5391_v41 = vpop.permute.xlu1 %5390  ;;  %v4008_v5 = vrot.slane %v3994_v24, %v6739_v14  ;;  %v4042_v8 = vcombine.high %v3986_v38, %v4001_v27  ;;  %v3946_v16 = vcombine.high %v3906_v29, %v3938_v58 }
 0x3d1   :  { %v6034_v17 = vsel %vm5881_vm11, %v6033_v48, %v5391_v41  ;;  %v4049_v55 = vrot.slane %v4041_v10, %v6752_v37  ;;  %v3945_v48 = vcombine.low %v3906_v29, %v3938_v58  ;;  %v3978_v41 = vrot.slane %v3964_v63, %v6739_v14 }
 0x3d2   :  { %v5395_v52 = vpop.permute.xlu0 %5394  ;;  %5622 = vrot.lane.b32.xlu1 %v3811_v53, %s6350_s28  ;;  %v4010_v53 = vcombine.high %v3955_v22, %v3971_v33  ;;  %v3993_v9 = vrot.slane %v3979_v25, %v6739_v14  ;;  %v4056_v60 = vrot.slane %v4042_v8, %v6752_v37  ;;  %v8155_v33 = vrot.slane %v9103_v7, %v6739_v14 }
 0x3d3   :  { %v6035_v59 = vsel %vm5883_vm12, %v6034_v17, %v5395_v52  ;;  %v3962_v52 = vrot.slane %v3948_v51, %v6739_v14  ;;  %v4073_v28 = vcombine.low %v4017_v20, %v4049_v55  ;;  %v4074_v40 = vcombine.high %v4017_v20, %v4049_v55  ;;  %v9112_v20 = vld [vmem:[#allocation47_spill] sm:$0xff] }
 0x3d4   :  { %5626 = vrot.lane.b32.xlu0 %v3812_v2, %s6351_s27  ;;  %v5399_v13 = vpop.permute.xlu1 %5398  ;;  %v4057_v11 = vcombine.low %v3993_v9, %v4008_v5 }
 0x3d5   :  { %v6036_v1 = vsel %vm5885_vm13, %v6035_v59, %v5399_v13  ;;  %v4025_v61 = vcombine.low %v3962_v52, %v3978_v41  ;;  %v4097_v59 = vcombine.low %v9099_v54, %v9098_v30  ;;  %v4024_v13 = vrot.slane %v4010_v53, %v6752_v37 }
 0x3d6   :  { %v5403_v26 = vpop.permute.xlu0 %5402  ;;  %5630 = vrot.lane.b32.xlu1 %v3940_v0, %s6322_s0  ;;  %v9100_v0 = vld [vmem:[#allocation67_spill] sm:$0xff]  ;;  %v4065_v22 = vrot.slane %v4057_v11, %v6752_v37  ;;  %v4026_v24 = vcombine.high %v3962_v52, %v3978_v41 }
 0x3d7   :  { %v6037_v3 = vsel %vm5887_vm14, %v6036_v1, %v5403_v26  ;;  %v4081_v27 = vcombine.low %v9101_v32, %v9100_v0  ;;  %v4058_v26 = vcombine.high %v3993_v9, %v4008_v5  ;;  %v4075_v35 = vcombine.low %v4024_v13, %v4056_v60  ;;  %v9111_v9 = vld [vmem:[#allocation93_spill] sm:$0xff] }
 0x3d8   :  { %5634 = vrot.lane.b32.xlu0 %v3941_v42, %s6323_s1  ;;  %v5407_v57 = vpop.permute.xlu1 %5406  ;;  %v4033_v10 = vrot.slane %v4025_v61, %v6752_v37  ;;  %v4076_v58 = vcombine.high %v4024_v13, %v4056_v60  ;;  %v4366_v52 = vcombine.high %v9112_v20, %v9111_v9  ;;  %v9115_v60 = vld [vmem:[#allocation24_spill] sm:$0xff]  ;;  %v9117_v61 = vld [vmem:[#allocation119_spill] sm:$0xff] }
 0x3d9   :  { %v6038_v56 = vsel %vm5889_vm15, %v6037_v3, %v5407_v57  ;;  %v8161_v3 = vrot.slane %v4097_v59, %v6739_v14  ;;  %v9105_v57 = vld [vmem:[#allocation117_spill] sm:$0xff]  ;;  %v4072_v51 = vrot.slane %v4058_v26, %v6752_v37 }
 0x3da   :  { %v5411_v49 = vpop.permute.xlu0 %5410  ;;  %5638 = vrot.lane.b32.xlu1 %v3942_v34, %s6324_s29  ;;  %v8165_v34 = vrot.slane %v9105_v57, %v6739_v14  ;;  %v4077_v29 = vcombine.low %v4033_v10, %v4065_v22 }
 0x3db   :  { %v6039_v39 = vsel %vm5891_vm0, %v6038_v56, %v5411_v49  ;;  %v8170_v49 = vrot.slane %v4081_v27, %v6739_v14 }
 0x3dc   :  { %5642 = vrot.lane.b32.xlu0 %v3943_v62, %s6317_s20  ;;  %v5415_v23 = vpop.permute.xlu1 %5414  ;;  %v4175_v63 = vcombine.low %v8165_v34, %v8155_v33 }
 0x3dd   :  { %v6040_v21 = vsel %vm5893_vm1, %v6039_v39, %v5415_v23  ;;  %v4143_v5 = vcombine.low %v8170_v49, %v8161_v3  ;;  %v4040_v39 = vrot.slane %v4026_v24, %v6752_v37  ;;  %v9108_v23 = vld [vmem:[#allocation136_spill] sm:$0xff] }
 0x3de   :  { %v5419_v43 = vpop.permute.xlu0 %5418  ;;  %5646 = vrot.lane.b32.xlu1 %v3944_v46, %s6325_s30  ;;  %v4396_v46 = vcombine.high %v9108_v23, %v8871_v19 }
 0x3df   :  { %v6041_v17 = vsel %vm8748_vm2, %v6040_v21, %v5419_v43  ;;  %v4078_v43 = vcombine.high %v4033_v10, %v4065_v22  ;;  %v4183_v21 = vrot.slane %v4175_v63, %v6752_v37  ;;  %v4079_v53 = vcombine.low %v4040_v39, %v4072_v51 }
 0x3e0   :  { %5650 = vrot.lane.b32.xlu0 %v3945_v48, %s6326_s3  ;;  %v5423_v2 = vpop.permute.xlu1 %5422  ;;  %v4080_v26 = vcombine.high %v4040_v39, %v4072_v51  ;;  %v9123_v51 = vld [vmem:[#allocation95_spill] sm:$0xff] }
 0x3e1   :  { %v6042_v36 = vsel %vm9097_vm4, %v6041_v17, %v5423_v2  ;;  %vm9104_vm4 = vcmask 424960   ;;  %v9113_v17 = vld [vmem:[#allocation121_spill] sm:$0xff] }
 0x3e2   :  { %v5427_v50 = vpop.permute.xlu0 %5426  ;;  %5654 = vrot.lane.b32.xlu1 %v3946_v16, %s6327_s4  ;;  %v4381_v2 = vcombine.high %v9113_v17, %v8871_v19  ;;  %v9114_v16 = vld [vmem:[#allocation70_spill] sm:$0xff] }
 0x3e3   :  { %v6043_v1 = vsel %vm9102_vm3, %v6042_v36, %v5427_v50  ;;  %vm9106_vm3 = vcmask 457728   ;;  %v4350_v11 = vcombine.high %v9115_v60, %v9114_v16  ;;  %v4151_v50 = vrot.slane %v4143_v5, %v6752_v37  ;;  %v9124_v5 = vld [vmem:[#allocation49_spill] sm:$0xff] }
 0x3e4   :  { %5658 = vrot.lane.b32.xlu0 %v4073_v28, %s6328_s5  ;;  %v5431_v42 = vpop.permute.xlu1 %5430  ;;  %v4410_v36 = vrot.slane %v4396_v46, %v6739_v14  ;;  %v9116_v28 = vld [vmem:[#allocation41_spill] sm:$0xff]  ;;  %v4395_v22 = vrot.slane %v4381_v2, %v6739_v14  ;;  %v4499_v39 = vcombine.low %v9124_v5, %v9123_v51  ;;  %v9125_v46 = vld [vmem:[#allocation72_spill] sm:$0xff] }
 0x3e5   :  { %v6044_v38 = vsel %vm9104_vm4, %v6043_v1, %v5431_v42  ;;  %vm9107_vm4 = vcmask 490496   ;;  %v4444_v59 = vcombine.high %v9117_v61, %v9116_v28  ;;  %v4364_v24 = vrot.slane %v4350_v11, %v6739_v14  ;;  %v9130_v11 = vld [vmem:[#allocation122_spill] sm:$0xff] }
 0x3e6   :  { %v5435_v15 = vpop.permute.xlu0 %5434  ;;  %5662 = vrot.lane.b32.xlu1 %v4074_v40, %s6330_s7  ;;  %v4207_v40 = vcombine.low %v4151_v50, %v4183_v21  ;;  %v4208_v63 = vcombine.high %v4151_v50, %v4183_v21  ;;  %v9127_v21 = vld [vmem:[#allocation137_spill] sm:$0xff]  ;;  %v4507_v60 = vrot.slane %v4499_v39, %v6739_v14  ;;  %v4522_v50 = vrot.slane %v9130_v11, %v6739_v14 }
 0x3e7   :  { %v6045_v56 = vsel %vm9106_vm3, %v6044_v38, %v5435_v15  ;;  %vm9109_vm3 = vcmask 523264   ;;  %v4380_v15 = vrot.slane %v4366_v52, %v6739_v14  ;;  %v9120_v38 = vld [vmem:[#allocation146_spill] sm:$0xff]  ;;  %v4458_v10 = vrot.slane %v4444_v59, %v6752_v37 }
 0x3e8   :  { %5666 = vrot.lane.b32.xlu0 %v4075_v35, %s6329_s6  ;;  %v5439_v62 = vpop.permute.xlu1 %5438  ;;  %v4412_v35 = vcombine.high %v9120_v38, %v7341_v31  ;;  %v4476_v31 = vcombine.high %v7400_v6, %v7386_v18  ;;  %v4530_v61 = vcombine.high %v9127_v21, %v8871_v19  ;;  %v4500_v38 = vcombine.high %v9124_v5, %v9123_v51 }
 0x3e9   :  { %v6046_v25 = vsel %vm9107_vm4, %v6045_v56, %v5439_v62  ;;  %vm9110_vm4 = vcmask 556032   ;;  %v4459_v56 = vcombine.low %v4395_v22, %v4410_v36  ;;  %v4428_v16 = vcombine.high %v4364_v24, %v4380_v15 }
 0x3ea   :  { %v5443_v44 = vpop.permute.xlu0 %5442  ;;  %5670 = vrot.lane.b32.xlu1 %v4076_v58, %s6331_s8  ;;  %v4426_v23 = vrot.slane %v4412_v35, %v6752_v37  ;;  %v4514_v5 = vrot.slane %v4500_v38, %v6739_v14 }
 0x3eb   :  { %v6047_v8 = vsel %vm9109_vm3, %v6046_v25, %v5443_v44  ;;  %vm9118_vm3 = vcmask 588800   ;;  %v4467_v20 = vrot.slane %v4459_v56, %v6752_v37  ;;  %v4544_v56 = vrot.slane %v4530_v61, %v6739_v14  ;;  %v9139_v61 = vld [vmem:[#allocation140_spill] sm:$0xff] }
 0x3ec   :  { %5674 = vrot.lane.b32.xlu0 %v4077_v29, %s6332_s9  ;;  %v5447_v55 = vpop.permute.xlu1 %5446  ;;  %v4427_v29 = vcombine.low %v4364_v24, %v4380_v15  ;;  %v4477_v9 = vcombine.low %v4426_v23, %v4458_v10  ;;  %v4478_v2 = vcombine.high %v4426_v23, %v4458_v10  ;;  %v4442_v24 = vrot.slane %v4428_v16, %v6752_v37 }
 0x3ed   :  { %v6048_v41 = vsel %vm9110_vm4, %v6047_v8, %v5447_v55  ;;  %vm9119_vm4 = vcmask 621568   ;;  %v9126_v8 = vld [vmem:[#allocation25_spill] sm:$0xff] }
 0x3ee   :  { %v5451_v48 = vpop.permute.xlu0 %5450  ;;  %5678 = vrot.lane.b32.xlu1 %v4078_v43, %s6333_s10  ;;  %v4483_v55 = vcombine.low %v9126_v8, %v9125_v46  ;;  %v4460_v43 = vcombine.high %v4395_v22, %v4410_v36  ;;  %v4435_v36 = vrot.slane %v4427_v29, %v6752_v37  ;;  %v4515_v22 = vcombine.high %v9130_v11, %v8871_v19  ;;  %v9137_v11 = vld [vmem:[#allocation74_spill] sm:$0xff] }
 0x3ef   :  { %v6049_v13 = vsel %vm9118_vm3, %v6048_v41, %v5451_v48  ;;  %vm9121_vm3 = vcmask 654336   ;;  %v4537_v48 = vrot.slane %v9127_v21, %v6739_v14  ;;  %v4484_v10 = vcombine.high %v9126_v8, %v9125_v46 }
 0x3f0   :  { %5682 = vrot.lane.b32.xlu0 %v4079_v53, %s6334_s11  ;;  %v5455_v27 = vpop.permute.xlu1 %5454  ;;  %v4491_v28 = vrot.slane %v4483_v55, %v6739_v14  ;;  %v4480_v15 = vcombine.high %v4435_v36, %v4467_v20  ;;  %v4529_v23 = vrot.slane %v4515_v22, %v6739_v14  ;;  %v9140_v22 = vld [vmem:[#allocation123_spill] sm:$0xff] }
 0x3f1   :  { %v6050_v42 = vsel %vm9119_vm4, %v6049_v13, %v5455_v27  ;;  %vm9122_vm4 = vcmask 687104   ;;  %v4577_v59 = vcombine.low %v4522_v50, %v4537_v48  ;;  %v4498_v8 = vrot.slane %v4484_v10, %v6739_v14 }
 0x3f2   :  { %v5459_v1 = vpop.permute.xlu0 %5458  ;;  %5686 = vrot.lane.b32.xlu1 %v4080_v26, %s6335_s12  ;;  %v4479_v26 = vcombine.low %v4435_v36, %v4467_v20  ;;  %v4545_v35 = vcombine.low %v4491_v28, %v4507_v60  ;;  %v4546_v39 = vcombine.high %v4491_v28, %v4507_v60  ;;  %v4594_v28 = vcombine.high %v4529_v23, %v4544_v56 }
 0x3f3   :  { %v6051_v62 = vsel %vm9121_vm3, %v6050_v42, %v5459_v1  ;;  %vm9128_vm3 = vcmask 719872   ;;  %v4474_v1 = vrot.slane %v4460_v43, %v6752_v37  ;;  %v4593_v43 = vcombine.low %v4529_v23, %v4544_v56 }
 0x3f4   :  { %5690 = vrot.lane.b32.xlu0 %v4207_v40, %s6336_s13  ;;  %v5463_v58 = vpop.permute.xlu1 %5462  ;;  %v4553_v46 = vrot.slane %v4545_v35, %v6752_v37  ;;  %v4560_v60 = vrot.slane %v4546_v39, %v6752_v37  ;;  %v4562_v38 = vcombine.high %v4498_v8, %v4514_v5 }
 0x3f5   :  { %v6052_v25 = vsel %vm9122_vm4, %v6051_v62, %v5463_v58  ;;  %vm9129_vm4 = vcmask 752640   ;;  %v4578_v62 = vcombine.high %v4522_v50, %v4537_v48  ;;  %v4585_v58 = vrot.slane %v4577_v59, %v6752_v37  ;;  %v9138_v50 = vld [vmem:[#allocation27_spill] sm:$0xff] }
 0x3f6   :  { %v5467_v44 = vpop.permute.xlu0 %5466  ;;  %5694 = vrot.lane.b32.xlu1 %v4208_v63, %s6337_s14  ;;  %v4482_v51 = vcombine.high %v4442_v24, %v4474_v1  ;;  %v4617_v36 = vcombine.low %v9138_v50, %v9137_v11  ;;  %v4671_v59 = vrot.slane %v9139_v61, %v6739_v14  ;;  %v4576_v23 = vrot.slane %v4562_v38, %v6752_v37 }
 0x3f7   :  { %v6053_v41 = vsel %vm9128_vm3, %v6052_v25, %v5467_v44  ;;  %vm9131_vm3 = vcmask 785408   ;;  %v4481_v25 = vcombine.low %v4442_v24, %v4474_v1  ;;  %v4592_v55 = vrot.slane %v4578_v62, %v6752_v37 }
 0x3f8   :  { %5754 = vrot.lane.b32.xlu0 %v4476_v31, %s6322_s0  ;;  %v5471_v53 = vpop.permute.xlu1 %5470  ;;  %v4610_v20 = vcombine.high %v4553_v46, %v4585_v58  ;;  %v4601_v1 = vrot.slane %v4593_v43, %v6752_v37  ;;  %v4656_v24 = vrot.slane %v9140_v22, %v6739_v14  ;;  %v4625_v56 = vrot.slane %v4617_v36, %v6739_v14  ;;  %s6352_s0 = smov [#allocation5]  }
 0x3f9   :  { %v6054_v17 = vsel %vm9129_vm4, %v6053_v41, %v5471_v53  ;;  %vm9132_vm4 = vcmask 818176   ;;  %v4609_v41 = vcombine.low %v4553_v46, %v4585_v58  ;;  %v9141_v58 = vcombine.low %v7318_v47, %v7305_v12 }
 0x3fa   :  { %v5475_v52 = vpop.permute.xlu0 %5474  ;;  %5758 = vrot.lane.b32.xlu1 %v4477_v9, %s6323_s1  ;;  %v4711_v62 = vcombine.low %v4656_v24, %v4671_v59  ;;  %v4082_v46 = vcombine.high %v9101_v32, %v9100_v0  ;;  %v4128_v12 = vcombine.high %v9103_v7, %v8871_v19  ;;  %v4176_v47 = vcombine.high %v8165_v34, %v8155_v33  ;;  %s6170_s1 = sshll.u32 %s6352_s0, 4  ;;  %s6171_s1 = int_to_ptr.vmem [resolvable:$true] %s6170_s1 }
 0x3fb   :  { %v6055_v13 = vsel %vm9131_vm3, %v6054_v17, %v5475_v52  ;;  %vm9133_vm3 = vcmask 850944   ;;  %v4561_v52 = vcombine.low %v4498_v8, %v4514_v5  ;;  %v9135_v17 = vld [vmem:[#allocation97_spill] sm:$0xff]  ;;  %v4098_v7 = vcombine.high %v9099_v54, %v9098_v30  ;;  %p6294_p9 = scmp.lt.s32.totalorder %s6171_s1, %s6171_s1 }
 0x3fc   :  { %5762 = vrot.lane.b32.xlu0 %v4478_v2, %s6324_s29  ;;  %v5479_v27 = vpop.permute.xlu1 %5478  ;;  %v9136_v2 = vld [vmem:[#allocation51_spill] sm:$0xff]  ;;  %v4719_v8 = vrot.slane %v4711_v62, %v6752_v37  ;;  %v4144_v33 = vcombine.high %v8170_v49, %v8161_v3  ;;  %v4113_v34 = vcombine.high %v9105_v57, %v8871_v19  ;;  %v4649_v30 = vcombine.high %v9140_v22, %v8871_v19  ;;  %s6289_s29 = scalar_lea.vmem %s6171_s1, 1024 }
 0x3fd   :  { %v6056_v40 = vsel %vm9132_vm4, %v6055_v13, %v5479_v27  ;;  %vm9134_vm4 = vcmask 883712   ;;  %v4633_v16 = vcombine.low %v9136_v2, %v9135_v17  ;;  %v4569_v10 = vrot.slane %v4561_v52, %v6752_v37  ;;  %p6290_p8 = scmp.ne.s32.totalorder %s6171_s1, %s6289_s29  ;;  %p6295_p10 = scmp.lt.s32.totalorder %s6289_s29, %s6289_s29 }
 0x3fe   :  { %v5483_v42 = vpop.permute.xlu0 %5482  ;;  %5766 = vrot.lane.b32.xlu1 %v4479_v26, %s6317_s20  ;;  %v4611_v26 = vcombine.low %v4560_v60, %v4592_v55  ;;  %v4634_v52 = vcombine.high %v9136_v2, %v9135_v17  ;;  %v8314_v54 = vrot.slane %v4128_v12, %v6739_v14  ;;  %v4190_v3 = vrot.slane %v4176_v47, %v6752_v37  ;;  %s9142_s20 = smov 76  }
 0x3ff   :  { %v6057_v63 = vsel %vm9133_vm3, %v6056_v40, %v5483_v42  ;;  %v4641_v35 = vrot.slane %v4633_v16, %v6739_v14  ;;  %v4614_v5 = vcombine.high %v4569_v10, %v4601_v1  ;;  %vm9143_vm3 = vcmask 359424   ;;  %p6296_p11 = por %p6295_p10, %p6294_p9 }
 0x400   :  { %5770 = vrot.lane.b32.xlu0 %v4480_v15, %s6325_s30  ;;  %v5487_v44 = vpop.permute.xlu1 %5486  ;;  %v4612_v15 = vcombine.high %v4560_v60, %v4592_v55 }
 0x401   :  { %v6058_v29 = vsel %vm9134_vm4, %v6057_v63, %v5487_v44  ;;  %v4679_v39 = vcombine.low %v4625_v56, %v4641_v35  ;;  %v4680_v16 = vcombine.high %v4625_v56, %v4641_v35  ;;  %vm9144_vm4 = vcmask 392192   ;;  %p6297_p12 = pnand %p6296_p11, %p6290_p8 }
 0x402   :  { %v5491_v31 = vpop.permute.xlu0 %5490  ;;  %5774 = vrot.lane.b32.xlu1 %v4481_v25, %s6326_s3  ;;  %v4613_v25 = vcombine.low %v4569_v10, %v4601_v1  ;;  %v4096_v1 = vrot.slane %v4082_v46, %v6739_v14 }
 0x403   :  { %v6059_v21 = vsel %vm8752_vm5, %v6058_v29, %v5491_v31  ;;  %v4608_v31 = vrot.slane %v4594_v28, %v6752_v37  ;;  %v8324_v28 = vrot.slane %v4098_v7, %v6739_v14 }
 0x404   :  { %5778 = vrot.lane.b32.xlu0 %v4482_v51, %s6327_s4  ;;  %v5495_v48 = vpop.permute.xlu1 %5494 }
 0x405   :  { %v6060_v9 = vsel %vm8751_vm8, %v6059_v21, %v5495_v48  ;;  %v4615_v21 = vcombine.low %v4576_v23, %v4608_v31  ;;  %v4664_v48 = vcombine.high %v9139_v61, %v8871_v19  ;;  %v4616_v32 = vcombine.high %v4576_v23, %v4608_v31 }
 0x406   :  { %v5499_v53 = vpop.permute.xlu0 %5498  ;;  %5782 = vrot.lane.b32.xlu1 %v4609_v41, %s6328_s5  ;;  %v4712_v41 = vcombine.high %v4656_v24, %v4671_v59  ;;  %v4127_v61 = vrot.slane %v4113_v34, %v6739_v14  ;;  %v4158_v59 = vrot.slane %v4144_v33, %v6752_v37  ;;  %v4159_v62 = vcombine.low %v4096_v1, %v8324_v28  ;;  %v9147_v33 = vld [vmem:[#allocation69_spill] sm:$0xff]  ;;  %v9148_v34 = vld [vmem:[#allocation22_spill] sm:$0xff] }
 0x407   :  { %v6061_v13 = vsel %vm8750_vm6, %v6060_v9, %v5499_v53  ;;  %v4687_v9 = vrot.slane %v4679_v39, %v6752_v37 }
 0x408   :  { %5786 = vrot.lane.b32.xlu0 %v4610_v20, %s6330_s7  ;;  %v5503_v27 = vpop.permute.xlu1 %5502  ;;  %v4618_v20 = vcombine.high %v9138_v50, %v9137_v11  ;;  %v8319_v11 = vrot.slane %v4664_v48, %v6739_v14  ;;  %v4726_v17 = vrot.slane %v4712_v41, %v6752_v37  ;;  %v4209_v38 = vcombine.low %v4158_v59, %v4190_v3 }
 0x409   :  { %v6062_v40 = vsel %vm8749_vm7, %v6061_v13, %v5503_v27  ;;  %v4743_v60 = vcombine.low %v4687_v9, %v4719_v8  ;;  %v4744_v36 = vcombine.high %v4687_v9, %v4719_v8  ;;  %v8330_v13 = vrot.slane %v4634_v52, %v6739_v14  ;;  %v9150_v52 = vld [vmem:[#allocation29_spill] sm:$0xff] }
 0x40a   :  { %v5507_v42 = vpop.permute.xlu0 %5506  ;;  %6160 = vst [vmem:[#allocation5 + $0x20] sm:$0x3f] %v6062_v40  ;;  %5790 = vrot.lane.b32.xlu1 %v4611_v26, %s6329_s6  ;;  %v4663_v27 = vrot.slane %v4649_v30, %v6739_v14  ;;  %v4694_v26 = vrot.slane %v4680_v16, %v6752_v37  ;;  %v4632_v35 = vrot.slane %v4618_v20, %v6739_v14  ;;  %v9149_v20 = vld [vmem:[#allocation76_spill] sm:$0xff] }
 0x40b   :  { %v6063_v63 = vsel %vm5877_vm9, %v9141_v58, %v5507_v42  ;;  %v4191_v42 = vcombine.low %v4127_v61, %v8314_v54  ;;  %v4167_v23 = vrot.slane %v4159_v62, %v6752_v37  ;;  %v4192_v12 = vcombine.high %v4127_v61, %v8314_v54  ;;  %v9151_v54 = vld [vmem:[#allocation99_spill] sm:$0xff] }
 0x40c   :  { %5794 = vrot.lane.b32.xlu0 %v4612_v15, %s6331_s8  ;;  %v5511_v44 = vpop.permute.xlu1 %5510  ;;  %v4727_v22 = vcombine.low %v4663_v27, %v8319_v11  ;;  %v4745_v56 = vcombine.low %v4694_v26, %v4726_v17  ;;  %v4695_v58 = vcombine.low %v4632_v35, %v8330_v13  ;;  %v4215_v9 = vcombine.low %v9148_v34, %v9147_v33 }
 0x40d   :  { %v6064_v51 = vsel %vm5879_vm10, %v6063_v63, %v5511_v44  ;;  %v4199_v31 = vrot.slane %v4191_v42, %v6752_v37  ;;  %v4751_v16 = vcombine.low %v9150_v52, %v9149_v20  ;;  %v4696_v30 = vcombine.high %v4632_v35, %v8330_v13 }
 0x40e   :  { %v5515_v29 = vpop.permute.xlu0 %5514  ;;  %5798 = vrot.lane.b32.xlu1 %v4613_v25, %s6332_s9  ;;  %v4210_v25 = vcombine.high %v4158_v59, %v4190_v3  ;;  %v4735_v39 = vrot.slane %v4727_v22, %v6752_v37  ;;  %v4703_v46 = vrot.slane %v4695_v58, %v6752_v37  ;;  %v9152_v3 = vld [vmem:[#allocation53_spill] sm:$0xff] }
 0x40f   :  { %v6065_v55 = vsel %vm5881_vm11, %v6064_v51, %v5515_v29  ;;  %v4710_v22 = vrot.slane %v4696_v30, %v6752_v37 }
 0x410   :  { %5802 = vrot.lane.b32.xlu0 %v4614_v5, %s6333_s10  ;;  %v5519_v43 = vpop.permute.xlu1 %5518  ;;  %v4746_v5 = vcombine.high %v4694_v26, %v4726_v17  ;;  %v4747_v41 = vcombine.low %v4703_v46, %v4735_v39  ;;  %v4748_v13 = vcombine.high %v4703_v46, %v4735_v39 }
 0x411   :  { %v6066_v0 = vsel %vm5883_vm12, %v6065_v55, %v5519_v43  ;;  %v4211_v55 = vcombine.low %v4167_v23, %v4199_v31  ;;  %v4728_v43 = vcombine.high %v4663_v27, %v8319_v11 }
 0x412   :  { %v5523_v53 = vpop.permute.xlu0 %5522  ;;  %5806 = vrot.lane.b32.xlu1 %v4615_v21, %s6334_s11 }
 0x413   :  { %v6067_v57 = vsel %vm5885_vm13, %v6066_v0, %v5523_v53  ;;  %v4160_v53 = vcombine.high %v4096_v1, %v8324_v28  ;;  %v9145_v0 = vld [vmem:[#allocation92_spill] sm:$0xff]  ;;  %v4742_v27 = vrot.slane %v4728_v43, %v6752_v37  ;;  %v9157_v1 = vld [vmem:[#allocation118_spill] sm:$0xff] }
 0x414   :  { %5810 = vrot.lane.b32.xlu0 %v4616_v32, %s6335_s12  ;;  %v5527_v49 = vpop.permute.xlu1 %5526  ;;  %v9146_v32 = vld [vmem:[#allocation46_spill] sm:$0xff]  ;;  %v4254_v42 = vrot.slane %v9157_v1, %v6739_v14 }
 0x415   :  { %v6068_v50 = vsel %vm5887_vm14, %v6067_v57, %v5527_v49  ;;  %v4231_v7 = vcombine.low %v9146_v32, %v9145_v0  ;;  %v4767_v57 = vcombine.low %v9152_v3, %v9151_v54  ;;  %v9153_v49 = vld [vmem:[#allocation135_spill] sm:$0xff]  ;;  %v4750_v43 = vcombine.high %v4710_v22, %v4742_v27 }
 0x416   :  { %v5531_v2 = vpop.permute.xlu0 %5530  ;;  %5814 = vrot.lane.b32.xlu1 %v4743_v60, %s6336_s13  ;;  %v8371_v60 = vrot.slane %v9153_v49, %v6739_v14 }
 0x417   :  { %v6069_v40 = vsel %vm5889_vm15, %v6068_v50, %v5531_v2  ;;  %v4212_v2 = vcombine.high %v4167_v23, %v4199_v31  ;;  %v4206_v50 = vrot.slane %v4192_v12, %v6752_v37  ;;  %v8382_v26 = vrot.slane %v4231_v7, %v6739_v14 }
 0x418   :  { %5818 = vrot.lane.b32.xlu0 %v4744_v36, %s6337_s14  ;;  %v5535_v15 = vpop.permute.xlu1 %5534  ;;  %v9155_v36 = vld [vmem:[#allocation38_spill] sm:$0xff] }
 0x419   :  { %v6070_v10 = vsel %vm5891_vm0, %v6069_v40, %v5535_v15  ;;  %v8377_v28 = vrot.slane %v9155_v36, %v6739_v14  ;;  %v4174_v40 = vrot.slane %v4160_v53, %v6752_v37  ;;  %v8389_v15 = vrot.slane %v4767_v57, %v6739_v14 }
 0x41a   :  { %v5539_v24 = vpop.permute.xlu0 %5538  ;;  %5698 = vrot.lane.b32.xlu1 %v4209_v38, %s6338_s15  ;;  %v9158_v38 = vld [vmem:[#allocation124_spill] sm:$0xff]  ;;  %v4310_v53 = vcombine.high %v4254_v42, %v8371_v60  ;;  %v4798_v30 = vcombine.high %v9155_v36, %v8871_v19  ;;  %v4752_v36 = vcombine.high %v9150_v52, %v9149_v20 }
 0x41b   :  { %v6071_v63 = vsel %vm5893_vm1, %v6070_v10, %v5539_v24  ;;  %v4790_v35 = vrot.slane %v9158_v38, %v6739_v14  ;;  %v4223_v24 = vrot.slane %v4215_v9, %v6739_v14  ;;  %v4309_v10 = vcombine.low %v4254_v42, %v8371_v60 }
 0x41c   :  { %5822 = vrot.lane.b32.xlu0 %v4745_v56, %s6338_s15  ;;  %v5543_v44 = vpop.permute.xlu1 %5542  ;;  %v4213_v58 = vcombine.low %v4174_v40, %v4206_v50  ;;  %v4214_v12 = vcombine.high %v4174_v40, %v4206_v50  ;;  %v4216_v50 = vcombine.high %v9148_v34, %v9147_v33  ;;  %v4783_v33 = vcombine.high %v9158_v38, %v8871_v19 }
 0x41d   :  { %v6072_v51 = vsel %vm8748_vm2, %v6071_v63, %v5543_v44  ;;  %v4759_v63 = vrot.slane %v4751_v16, %v6739_v14  ;;  %v4845_v44 = vcombine.low %v4790_v35, %v8377_v28  ;;  %v4317_v39 = vrot.slane %v4309_v10, %v6752_v37 }
 0x41e   :  { %v5547_v29 = vpop.permute.xlu0 %5546  ;;  %5702 = vrot.lane.b32.xlu1 %v4210_v25, %s9142_s20  ;;  %vm9162_vm2 = vcmask 588800   ;;  %v4846_v57 = vcombine.high %v4790_v35, %v8377_v28  ;;  %v4278_v60 = vcombine.high %v4223_v24, %v8382_v26  ;;  %v4768_v28 = vcombine.high %v9152_v3, %v9151_v54 }
 0x41f   :  { %v6073_v47 = vsel %vm9143_vm3, %v6072_v51, %v5547_v29  ;;  %vm9154_vm3 = vcmask 424960   ;;  %v4749_v29 = vcombine.low %v4710_v22, %v4742_v27  ;;  %v4277_v51 = vcombine.low %v4223_v24, %v8382_v26 }
 0x420   :  { %5826 = vrot.lane.b32.xlu0 %v4746_v5, %s9142_s20  ;;  %v5551_v8 = vpop.permute.xlu1 %5550  ;;  %v4813_v5 = vcombine.low %v4759_v63, %v8389_v15  ;;  %v4812_v20 = vrot.slane %v4798_v30, %v6739_v14  ;;  %v4860_v52 = vrot.slane %v4846_v57, %v6752_v37  ;;  %v4292_v42 = vrot.slane %v4278_v60, %v6752_v37 }
 0x421   :  { %v6074_v48 = vsel %vm9144_vm4, %v6073_v47, %v5551_v8  ;;  %vm9156_vm4 = vcmask 457728   ;;  %v4853_v47 = vrot.slane %v4845_v44, %v6752_v37  ;;  %v4782_v40 = vrot.slane %v4768_v28, %v6739_v14 }
 0x422   :  { %v5555_v21 = vpop.permute.xlu0 %5554  ;;  %5706 = vrot.lane.b32.xlu1 %v4211_v55, %s6340_s17  ;;  %v4230_v35 = vrot.slane %v4216_v50, %v6739_v14 }
 0x423   :  { %v6075_v11 = vsel %vm9154_vm3, %v6074_v48, %v5555_v21  ;;  %vm9159_vm3 = vcmask 490496   ;;  %v4285_v21 = vrot.slane %v4277_v51, %v6752_v37  ;;  %v4821_v48 = vrot.slane %v4813_v5, %v6752_v37 }
 0x424   :  { %5830 = vrot.lane.b32.xlu0 %v4747_v41, %s6340_s17  ;;  %v5559_v17 = vpop.permute.xlu1 %5558  ;;  %v4262_v41 = vcombine.high %v9153_v49, %v8871_v19  ;;  %v4232_v49 = vcombine.high %v9146_v32, %v9145_v0  ;;  %v4324_v32 = vrot.slane %v4310_v53, %v6752_v37 }
 0x425   :  { %v6076_v59 = vsel %vm9156_vm4, %v6075_v11, %v5559_v17  ;;  %vm9160_vm4 = vcmask 523264   ;;  %v4341_v16 = vcombine.low %v4285_v21, %v4317_v39  ;;  %v4342_v27 = vcombine.high %v4285_v21, %v4317_v39 }
 0x426   :  { %v5563_v61 = vpop.permute.xlu0 %5562  ;;  %5710 = vrot.lane.b32.xlu1 %v4212_v2, %s9079_s16  ;;  %v4877_v2 = vcombine.low %v4821_v48, %v4853_v47  ;;  %v4276_v0 = vrot.slane %v4262_v41, %v6739_v14  ;;  %v4878_v26 = vcombine.high %v4821_v48, %v4853_v47  ;;  %v4344_v39 = vcombine.high %v4292_v42, %v4324_v32 }
 0x427   :  { %v6077_v56 = vsel %vm9159_vm3, %v6076_v59, %v5563_v61  ;;  %vm9161_vm3 = vcmask 556032   ;;  %v4247_v61 = vcombine.high %v9157_v1, %v8871_v19  ;;  %v4814_v59 = vcombine.high %v4759_v63, %v8389_v15 }
 0x428   :  { %5834 = vrot.lane.b32.xlu0 %v4748_v13, %s9079_s16  ;;  %v5567_v62 = vpop.permute.xlu1 %5566  ;;  %v4246_v19 = vrot.slane %v4232_v49, %v6739_v14  ;;  %v4797_v15 = vrot.slane %v4783_v33, %v6739_v14 }
 0x429   :  { %v6078_v31 = vsel %vm9160_vm4, %v6077_v56, %v5567_v62  ;;  %vm9163_vm4 = vcmask 621568   ;;  %v4261_v1 = vrot.slane %v4247_v61, %v6739_v14  ;;  %v4828_v38 = vrot.slane %v4814_v59, %v6752_v37 }
 0x42a   :  { %v5571_v25 = vpop.permute.xlu0 %5570  ;;  %5714 = vrot.lane.b32.xlu1 %v4213_v58, %s6342_s19  ;;  %v4343_v56 = vcombine.low %v4292_v42, %v4324_v32  ;;  %v4766_v62 = vrot.slane %v4752_v36, %v6739_v14  ;;  %v4861_v58 = vcombine.low %v4797_v15, %v4812_v20  ;;  %v4862_v53 = vcombine.high %v4797_v15, %v4812_v20 }
 0x42b   :  { %v6079_v23 = vsel %vm9161_vm3, %v6078_v31, %v5571_v25  ;;  %vm9165_vm3 = vcmask 687104   ;;  %v4325_v22 = vcombine.low %v4261_v1, %v4276_v0  ;;  %v4879_v25 = vcombine.low %v4828_v38, %v4860_v52 }
 0x42c   :  { %5838 = vrot.lane.b32.xlu0 %v4749_v29, %s6342_s19  ;;  %v5575_v46 = vpop.permute.xlu1 %5574  ;;  %v4293_v31 = vcombine.low %v4230_v35, %v4246_v19  ;;  %v4829_v29 = vcombine.low %v4766_v62, %v4782_v40  ;;  %v4869_v47 = vrot.slane %v4861_v58, %v6752_v37  ;;  %v4294_v30 = vcombine.high %v4230_v35, %v4246_v19 }
 0x42d   :  { %v6080_v55 = vsel %vm9162_vm2, %v6079_v23, %v5575_v46  ;;  %vm9164_vm2 = vcmask 654336   ;;  %v4333_v23 = vrot.slane %v4325_v22, %v6752_v37  ;;  %v4830_v57 = vcombine.high %v4766_v62, %v4782_v40 }
 0x42e   :  { %v5579_v8 = vpop.permute.xlu0 %5578  ;;  %5718 = vrot.lane.b32.xlu1 %v4214_v12, %s6344_s22  ;;  %v4880_v12 = vcombine.high %v4828_v38, %v4860_v52  ;;  %v4876_v36 = vrot.slane %v4862_v53, %v6752_v37  ;;  %v4308_v59 = vrot.slane %v4294_v30, %v6752_v37 }
 0x42f   :  { %v6081_v7 = vsel %vm9163_vm4, %v6080_v55, %v5579_v8  ;;  %vm9166_vm4 = vcmask 719872   ;;  %v4301_v8 = vrot.slane %v4293_v31, %v6752_v37  ;;  %v4837_v55 = vrot.slane %v4829_v29, %v6752_v37 }
 0x430   :  { %5842 = vrot.lane.b32.xlu0 %v4750_v43, %s6344_s22  ;;  %v5583_v9 = vpop.permute.xlu1 %5582  ;;  %v4326_v43 = vcombine.high %v4261_v1, %v4276_v0  ;;  %v4844_v33 = vrot.slane %v4830_v57, %v6752_v37 }
 0x431   :  { %v6082_v17 = vsel %vm9164_vm2, %v6081_v7, %v5583_v9  ;;  %vm9167_vm2 = vcmask 752640   ;;  %v4345_v41 = vcombine.low %v4301_v8, %v4333_v23  ;;  %v4882_v61 = vcombine.high %v4837_v55, %v4869_v47 }
 0x432   :  { %v5587_v11 = vpop.permute.xlu0 %5586  ;;  %5722 = vrot.lane.b32.xlu1 %v4341_v16, %s9035_s18  ;;  %v4881_v16 = vcombine.low %v4837_v55, %v4869_v47  ;;  %v4340_v50 = vrot.slane %v4326_v43, %v6752_v37  ;;  %v4883_v20 = vcombine.low %v4844_v33, %v4876_v36  ;;  %v4884_v19 = vcombine.high %v4844_v33, %v4876_v36 }
 0x433   :  { %v6083_v34 = vsel %vm9165_vm3, %v6082_v17, %v5587_v11  ;;  %vm9168_vm3 = vcmask 785408  }
 0x434   :  { %5846 = vrot.lane.b32.xlu0 %v4877_v2, %s9035_s18  ;;  %v5591_v13 = vpop.permute.xlu1 %5590  ;;  %v4346_v2 = vcombine.high %v4301_v8, %v4333_v23  ;;  %v4347_v32 = vcombine.low %v4308_v59, %v4340_v50 }
 0x435   :  { %v6084_v3 = vsel %vm9166_vm4, %v6083_v34, %v5591_v13  ;;  %vm9169_vm4 = vcmask 818176   ;;  %v9172_v13 = vcombine.low %v7397_v45, %v7377_v4 }
 0x436   :  { %v5595_v54 = vpop.permute.xlu0 %5594  ;;  %5726 = vrot.lane.b32.xlu1 %v4342_v27, %s6346_s24 }
 0x437   :  { %v6085_v24 = vsel %vm9167_vm2, %v6084_v3, %v5595_v54  ;;  %vm9170_vm2 = vcmask 850944   ;;  %v4348_v3 = vcombine.high %v4308_v59, %v4340_v50  ;;  %v9181_v59 = vcombine.low %v7400_v6, %v7386_v18 }
 0x438   :  { %5850 = vrot.lane.b32.xlu0 %v4878_v26, %s6346_s24  ;;  %v5599_v10 = vpop.permute.xlu1 %5598 }
 0x439   :  { %v6086_v44 = vsel %vm9168_vm3, %v6085_v24, %v5599_v10  ;;  %vm9171_vm3 = vcmask 883712  }
 0x43a   :  { %v5603_v63 = vpop.permute.xlu0 %5602  ;;  %5730 = vrot.lane.b32.xlu1 %v4343_v56, %s8990_s21 }
 0x43b   :  { %v6087_v51 = vsel %vm9169_vm4, %v6086_v44, %v5603_v63  ;;  %vm9173_vm4 = vcmask 326656  }
 0x43c   :  { %5854 = vrot.lane.b32.xlu0 %v4879_v25, %s8990_s21  ;;  %v5607_v5 = vpop.permute.xlu1 %5606 }
 0x43d   :  { %v6088_v14 = vsel %vm9170_vm2, %v6087_v51, %v5607_v5  ;;  %vm9174_vm2 = vcmask 359424  }
 0x43e   :  { %v5611_v46 = vpop.permute.xlu0 %5610  ;;  %5734 = vrot.lane.b32.xlu1 %v4344_v39, %s8951_s23 }
 0x43f   :  { %v6089_v21 = vsel %vm9171_vm3, %v6088_v14, %v5611_v46  ;;  %vm9175_vm3 = vcmask 392192  }
 0x440   :  { %5858 = vrot.lane.b32.xlu0 %v4880_v12, %s8951_s23  ;;  %v5615_v48 = vpop.permute.xlu1 %5614 }
 0x441   :  { %v6090_v9 = vsel %vm8752_vm5, %v6089_v21, %v5615_v48  ;;  %vm9179_vm5 = vcmask 523264  }
 0x442   :  { %v5619_v7 = vpop.permute.xlu0 %5618  ;;  %5738 = vrot.lane.b32.xlu1 %v4345_v41, %s6348_s26 }
 0x443   :  { %v6091_v11 = vsel %vm8751_vm8, %v6090_v9, %v5619_v7  ;;  %vm9178_vm8 = vcmask 490496  }
 0x444   :  { %5862 = vrot.lane.b32.xlu0 %v4881_v16, %s6348_s26  ;;  %v5623_v17 = vpop.permute.xlu1 %5622 }
 0x445   :  { %v6092_v60 = vsel %vm8750_vm6, %v6091_v11, %v5623_v17  ;;  %vm9177_vm6 = vcmask 457728  }
 0x446   :  { %v5627_v49 = vpop.permute.xlu0 %5626  ;;  %5742 = vrot.lane.b32.xlu1 %v4346_v2, %s8932_s25 }
 0x447   :  { %v6093_v28 = vsel %vm8749_vm7, %v6092_v60, %v5627_v49  ;;  %vm9176_vm7 = vcmask 424960  }
 0x448   :  { %6161 = vst [vmem:[#allocation5 + $0x28] sm:$0x3f] %v6093_v28  ;;  %5866 = vrot.lane.b32.xlu0 %v4882_v61, %s8932_s25  ;;  %v5631_v0 = vpop.permute.xlu1 %5630 }
 0x449   :  { %v6094_v27 = vsel %vm5877_vm9, %v9172_v13, %v5631_v0 }
 0x44a   :  { %v5635_v34 = vpop.permute.xlu0 %5634  ;;  %5746 = vrot.lane.b32.xlu1 %v4347_v32, %s6350_s28 }
 0x44b   :  { %v6095_v52 = vsel %vm5879_vm10, %v6094_v27, %v5635_v34 }
 0x44c   :  { %5870 = vrot.lane.b32.xlu0 %v4883_v20, %s6350_s28  ;;  %v5639_v54 = vpop.permute.xlu1 %5638 }
 0x44d   :  { %v6096_v37 = vsel %vm5881_vm11, %v6095_v52, %v5639_v54 }
 0x44e   :  { %v5643_v26 = vpop.permute.xlu0 %5642  ;;  %5750 = vrot.lane.b32.xlu1 %v4348_v3, %s6351_s27 }
 0x44f   :  { %v6097_v1 = vsel %vm5883_vm12, %v6096_v37, %v5643_v26 }
 0x450   :  { %5874 = vrot.lane.b32.xlu0 %v4884_v19, %s6351_s27  ;;  %v5647_v4 = vpop.permute.xlu1 %5646 }
 0x451   :  { %v6098_v42 = vsel %vm5885_vm13, %v6097_v1, %v5647_v4 }
 0x452   :  { %v5651_v45 = vpop.permute.xlu0 %5650 }
 0x453   :  { %v6099_v40 = vsel %vm5887_vm14, %v6098_v42, %v5651_v45 }
 0x454   :  { %v5655_v15 = vpop.permute.xlu1 %5654 }
 0x455   :  { %v6100_v35 = vsel %vm5889_vm15, %v6099_v40, %v5655_v15 }
 0x456   :  { %v5659_v38 = vpop.permute.xlu0 %5658 }
 0x457   :  { %v6101_v22 = vsel %vm5891_vm0, %v6100_v35, %v5659_v38 }
 0x458   :  { %v5663_v24 = vpop.permute.xlu1 %5662 }
 0x459   :  { %v6102_v56 = vsel %vm5893_vm1, %v6101_v22, %v5663_v24 }
 0x45a   :  { %v5667_v10 = vpop.permute.xlu0 %5666 }
 0x45b   :  { %v6103_v62 = vsel %vm9173_vm4, %v6102_v56, %v5667_v10  ;;  %vm9180_vm4 = vcmask 556032  }
 0x45c   :  { %v5671_v58 = vpop.permute.xlu1 %5670 }
 0x45d   :  { %v6104_v44 = vsel %vm9174_vm2, %v6103_v62, %v5671_v58 }
 0x45e   :  { %v5675_v63 = vpop.permute.xlu0 %5674 }
 0x45f   :  { %v6105_v25 = vsel %vm9175_vm3, %v6104_v44, %v5675_v63 }
 0x460   :  { %v5679_v31 = vpop.permute.xlu1 %5678 }
 0x461   :  { %v6106_v51 = vsel %vm9176_vm7, %v6105_v25, %v5679_v31 }
 0x462   :  { %v5683_v29 = vpop.permute.xlu0 %5682 }
 0x463   :  { %v6107_v5 = vsel %vm9177_vm6, %v6106_v51, %v5683_v29 }
 0x464   :  { %v5687_v39 = vpop.permute.xlu1 %5686 }
 0x465   :  { %v6108_v46 = vsel %vm9178_vm8, %v6107_v5, %v5687_v39 }
 0x466   :  { %v5691_v23 = vpop.permute.xlu0 %5690 }
 0x467   :  { %v6109_v14 = vsel %vm9179_vm5, %v6108_v46, %v5691_v23 }
 0x468   :  { %v5695_v12 = vpop.permute.xlu1 %5694 }
 0x469   :  { %v6110_v8 = vsel %vm9180_vm4, %v6109_v14, %v5695_v12 }
 0x46a   :  { %v5755_v47 = vpop.permute.xlu0 %5754 }
 0x46b   :  { %v6125_v33 = vsel %vm5877_vm9, %v9181_v59, %v5755_v47  ;;  %vm9182_vm9 = vcmask 326656  }
 0x46c   :  { %v5759_v55 = vpop.permute.xlu1 %5758 }
 0x46d   :  { %v6126_v32 = vsel %vm5879_vm10, %v6125_v33, %v5759_v55  ;;  %vm9183_vm10 = vmmov %vm9174_vm2 }
 0x46e   :  { %v5763_v43 = vpop.permute.xlu0 %5762 }
 0x46f   :  { %v6127_v13 = vsel %vm5881_vm11, %v6126_v32, %v5763_v43  ;;  %vm9184_vm11 = vmmov %vm9175_vm3  ;;  %vm9196_vm3 = vcmask 687104  }
 0x470   :  { %v5767_v21 = vpop.permute.xlu1 %5766 }
 0x471   :  { %v6128_v20 = vsel %vm5883_vm12, %v6127_v13, %v5767_v21  ;;  %vm9185_vm12 = vmmov %vm9176_vm7 }
 0x472   :  { %v5771_v48 = vpop.permute.xlu0 %5770 }
 0x473   :  { %v6129_v54 = vsel %vm5885_vm13, %v6128_v20, %v5771_v48  ;;  %vm9186_vm13 = vmmov %vm9177_vm6  ;;  %vm9192_vm6 = vcmask 621568  }
 0x474   :  { %v5775_v41 = vpop.permute.xlu1 %5774  ;;  %vm9193_vm7 = vmmov %vm9192_vm6 }
 0x475   :  { %v6130_v26 = vsel %vm5887_vm14, %v6129_v54, %v5775_v41  ;;  %vm9187_vm14 = vmmov %vm9178_vm8  ;;  %vm9194_vm8 = vcmask 654336  }
 0x476   :  { %v5779_v53 = vpop.permute.xlu0 %5778  ;;  %vm9195_vm2 = vmmov %vm9194_vm8 }
 0x477   :  { %v6131_v18 = vsel %vm5889_vm15, %v6130_v26, %v5779_v53  ;;  %vm9188_vm15 = vmmov %vm9179_vm5 }
 0x478   :  { %v5783_v7 = vpop.permute.xlu1 %5782 }
 0x479   :  { %v6132_v19 = vsel %vm5891_vm0, %v6131_v18, %v5783_v7  ;;  %vm9189_vm0 = vmmov %vm9180_vm4 }
 0x47a   :  { %v5787_v9 = vpop.permute.xlu0 %5786  ;;  %vm9197_vm4 = vmmov %vm9196_vm3 }
 0x47b   :  { %v6133_v4 = vsel %vm5893_vm1, %v6132_v19, %v5787_v9  ;;  %vm9190_vm1 = vcmask 588800  }
 0x47c   :  { %v5791_v16 = vpop.permute.xlu1 %5790  ;;  %vm9191_vm5 = vmmov %vm9190_vm1 }
 0x47d   :  { %v6134_v42 = vsel %vm9182_vm9, %v6133_v4, %v5791_v16  ;;  %vm9198_vm9 = vcmask 719872  }
 0x47e   :  { %v5795_v30 = vpop.permute.xlu0 %5794 }
 0x47f   :  { %v6135_v15 = vsel %vm9183_vm10, %v6134_v42, %v5795_v30  ;;  %vm9199_vm10 = vmmov %vm9198_vm9 }
 0x480   :  { %v5799_v57 = vpop.permute.xlu1 %5798 }
 0x481   :  { %v6136_v35 = vsel %vm9184_vm11, %v6135_v15, %v5799_v57  ;;  %vm9200_vm11 = vcmask 752640  }
 0x482   :  { %v5803_v11 = vpop.permute.xlu0 %5802 }
 0x483   :  { %v6137_v24 = vsel %vm9185_vm12, %v6136_v35, %v5803_v11  ;;  %vm9201_vm12 = vmmov %vm9200_vm11 }
 0x484   :  { %v5807_v17 = vpop.permute.xlu1 %5806 }
 0x485   :  { %v6138_v56 = vsel %vm9186_vm13, %v6137_v24, %v5807_v17  ;;  %vm9202_vm13 = vcmask 785408  }
 0x486   :  { %v5811_v2 = vpop.permute.xlu0 %5810 }
 0x487   :  { %v6139_v58 = vsel %vm9187_vm14, %v6138_v56, %v5811_v2  ;;  %vm9203_vm14 = vmmov %vm9202_vm13 }
 0x488   :  { %v5815_v50 = vpop.permute.xlu1 %5814 }
 0x489   :  { %v6140_v44 = vsel %vm9188_vm15, %v6139_v58, %v5815_v50  ;;  %vm9204_vm15 = vcmask 818176  }
 0x48a   :  { %v5819_v49 = vpop.permute.xlu0 %5818 }
 0x48b   :  { %v6141_v31 = vsel %vm9189_vm0, %v6140_v44, %v5819_v49  ;;  %vm9205_vm0 = vmmov %vm9204_vm15 }
 0x48c   :  { %v5699_v60 = vpop.permute.xlu1 %5698 }
 0x48d   :  { %v6111_v29 = vsel %vm9190_vm1, %v6110_v8, %v5699_v60  ;;  %vm9206_vm1 = vcmask 850944  }
 0x48e   :  { %v5823_v61 = vpop.permute.xlu0 %5822 }
 0x48f   :  { %v6142_v5 = vsel %vm9191_vm5, %v6141_v31, %v5823_v61  ;;  %vm9207_vm5 = vmmov %vm9206_vm1 }
 0x490   :  { %v5703_v36 = vpop.permute.xlu1 %5702 }
 0x491   :  { %v6112_v39 = vsel %vm9192_vm6, %v6111_v29, %v5703_v36  ;;  %vm9208_vm6 = vcmask 883712  }
 0x492   :  { %v5827_v28 = vpop.permute.xlu0 %5826 }
 0x493   :  { %v6143_v46 = vsel %vm9193_vm7, %v6142_v5, %v5827_v28  ;;  %vm9209_vm7 = vmmov %vm9208_vm6 }
 0x494   :  { %v5707_v0 = vpop.permute.xlu1 %5706 }
 0x495   :  { %v6113_v14 = vsel %vm9194_vm8, %v6112_v39, %v5707_v0  ;;  %vm9210_vm8 = vcmask 916480  }
 0x496   :  { %v5831_v34 = vpop.permute.xlu0 %5830 }
 0x497   :  { %v6144_v12 = vsel %vm9195_vm2, %v6143_v46, %v5831_v34  ;;  %vm9211_vm2 = vmmov %vm9210_vm8 }
 0x498   :  { %v5711_v27 = vpop.permute.xlu1 %5710 }
 0x499   :  { %v6114_v47 = vsel %vm9196_vm3, %v6113_v14, %v5711_v27  ;;  %vm9212_vm3 = vcmask 949248  }
 0x49a   :  { %v5835_v52 = vpop.permute.xlu0 %5834 }
 0x49b   :  { %v6145_v55 = vsel %vm9197_vm4, %v6144_v12, %v5835_v52  ;;  %vm9213_vm4 = vmmov %vm9212_vm3 }
 0x49c   :  { %v5715_v3 = vpop.permute.xlu1 %5714 }
 0x49d   :  { %v6115_v43 = vsel %vm9198_vm9, %v6114_v47, %v5715_v3  ;;  %vm9214_vm9 = vcmask 982016  }
 0x49e   :  { %v5839_v37 = vpop.permute.xlu0 %5838 }
 0x49f   :  { %v6146_v8 = vsel %vm9199_vm10, %v6145_v55, %v5839_v37  ;;  %vm9215_vm10 = vmmov %vm9214_vm9 }
 0x4a0   :  { %v5719_v6 = vpop.permute.xlu1 %5718 }
 0x4a1   :  { %v6116_v48 = vsel %vm9200_vm11, %v6115_v43, %v5719_v6  ;;  %vm9216_vm11 = vcmask 1014784  }
 0x4a2   :  { %v5843_v1 = vpop.permute.xlu0 %5842 }
 0x4a3   :  { %v6147_v53 = vsel %vm9201_vm12, %v6146_v8, %v5843_v1  ;;  %vm9217_vm12 = vmmov %vm9216_vm11 }
 0x4a4   :  { %v5723_v45 = vpop.permute.xlu1 %5722 }
 0x4a5   :  { %v6117_v7 = vsel %vm9202_vm13, %v6116_v48, %v5723_v45 }
 0x4a6   :  { %v5847_v40 = vpop.permute.xlu0 %5846 }
 0x4a7   :  { %v6148_v9 = vsel %vm9203_vm14, %v6147_v53, %v5847_v40 }
 0x4a8   :  { %v5727_v38 = vpop.permute.xlu1 %5726 }
 0x4a9   :  { %v6118_v16 = vsel %vm9204_vm15, %v6117_v7, %v5727_v38 }
 0x4aa   :  { %v5851_v22 = vpop.permute.xlu0 %5850 }
 0x4ab   :  { %v6149_v30 = vsel %vm9205_vm0, %v6148_v9, %v5851_v22 }
 0x4ac   :  { %v5731_v10 = vpop.permute.xlu1 %5730 }
 0x4ad   :  { %v6119_v57 = vsel %vm9206_vm1, %v6118_v16, %v5731_v10 }
 0x4ae   :  { %v5855_v62 = vpop.permute.xlu0 %5854 }
 0x4af   :  { %v6150_v17 = vsel %vm9207_vm5, %v6149_v30, %v5855_v62 }
 0x4b0   :  { %v5735_v63 = vpop.permute.xlu1 %5734 }
 0x4b1   :  { %v6120_v2 = vsel %vm9208_vm6, %v6119_v57, %v5735_v63 }
 0x4b2   :  { %v5859_v25 = vpop.permute.xlu0 %5858 }
 0x4b3   :  { %v6151_v49 = vsel %vm9209_vm7, %v6150_v17, %v5859_v25 }
 0x4b4   :  { %v5739_v51 = vpop.permute.xlu1 %5738 }
 0x4b5   :  { %v6121_v60 = vsel %vm9210_vm8, %v6120_v2, %v5739_v51 }
 0x4b6   :  { %v5863_v23 = vpop.permute.xlu0 %5862 }
 0x4b7   :  { %v6152_v61 = vsel %vm9211_vm2, %v6151_v49, %v5863_v23 }
 0x4b8   :  { %v5743_v21 = vpop.permute.xlu1 %5742 }
 0x4b9   :  { %v6122_v36 = vsel %vm9212_vm3, %v6121_v60, %v5743_v21 }
 0x4ba   :  { %v5867_v41 = vpop.permute.xlu0 %5866 }
 0x4bb   :  { %v6153_v28 = vsel %vm9213_vm4, %v6152_v61, %v5867_v41 }
 0x4bc   :  { %v5747_v11 = vpop.permute.xlu1 %5746 }
 0x4bd   :  { %v6123_v59 = vsel %vm9214_vm9, %v6122_v36, %v5747_v11 }
 0x4be   :  { %v5871_v50 = vpop.permute.xlu0 %5870 }
 0x4bf   :  { %v6154_v0 = vsel %vm9215_vm10, %v6153_v28, %v5871_v50 }
 0x4c0   :  { %v5751_v33 = vpop.permute.xlu1 %5750 }
 0x4c1   :  { %v6124_v34 = vsel %vm9216_vm11, %v6123_v59, %v5751_v33 }
 0x4c2   :  { %v5875_v32 = vpop.permute.xlu0 %5874  ;;  %6162 = vst [vmem:[#allocation5 + $0x30] sm:$0x3f] %v6124_v34 }
 0x4c3   :  { %v6155_v13 = vsel %vm9217_vm12, %v6154_v0, %v5875_v32 }
 0x4c4   :  { %6163 = vst [vmem:[#allocation5 + $0x38] sm:$0x3f] %v6155_v13 }
 0x4c5   :  { %6300 = shalt.err (!%p6297_p12)
}
 0x4c6   :  { %s6301_s4 = scalar_lea.hbm %s8564_s2, 1024 }
 0x4c7   :  { %p6302_p13 = scmp.ne.s32.totalorder %s8564_s2, %s6301_s4  ;;  %p6305_p0 = scmp.lt.u32.totalorder %s6301_s4, %s8564_s2 }
 0x4c9   :  { %p6307_p1 = pnand %p6305_p0, %p6302_p13 }
 0x4cb   :  { %6310 = shalt.err (!%p6307_p1)
}
 0x4cc   :  { %6173 = dma.vmem_to_hbm [thread:$0]  %s6171_s1, 1024, %s8564_s2, [#allocation4]  }
 0x4cd   :  { %6313 = dma.done.wait [#allocation4], 1024  }
 0x4ce   :  { %6314 = vsyncadd [#allocation4], 4294966272 }
 0x4cf   :  { %6177 = vsyncpa [#allocation3], 1 }
 0x4d0   :  { %6178 = vsyncpa [#allocation4], 1 }

// kernel: tpu_custom_call.1
= control target key start
LH: loop header
LB: loop body
LE: loop exit
PB: predicated region body
PF: predicated region fallthrough
CT: control target
= control target key end

     0   :  { %7 = vsyncpa [#allocation3], 0  ;;  %s368_s0 = inlined_call_operand.vmem [shape: f32[24,1], index: 0, kind: input, shape index: {}]   ;;  %s369_s1 = inlined_call_operand.hbm [shape: f32[24,256], index: 1, kind: input, shape index: {}]   ;;  %s370_s2 = inlined_call_operand.hbm [shape: f32[24,256], index: 2, kind: output, shape index: {}]  }
   0x1   :  { %8 = vsyncpa [#allocation4], 0  ;;  %s303_s9 = smov [#allocation2]   ;;  %s255_s13 = scalar_lea.hbm %s369_s1, 768 }
   0x2   :  { %s16_s10 = sshll.u32 %s303_s9, 4  ;;  %p256_p0 = scmp.ne.s32.totalorder %s369_s1, %s255_s13  ;;  %s17_s10 = int_to_ptr.vmem [resolvable:$true] %s16_s10 }
   0x3   :  { %p259_p1 = scmp.lt.u32.totalorder %s255_s13, %s369_s1 }
   0x5   :  { %p261_p2 = pnand %p259_p1, %p256_p0 }
   0x7   :  { %264 = shalt.err (!%p261_p2)
}
   0x8   :  { %s265_s18 = scalar_lea.vmem %s17_s10, 768  ;;  %p270_p4 = scmp.lt.s32.totalorder %s17_s10, %s17_s10 }
   0x9   :  { %p266_p3 = scmp.ne.s32.totalorder %s17_s10, %s265_s18  ;;  %p271_p5 = scmp.lt.s32.totalorder %s265_s18, %s265_s18 }
   0xb   :  { %p272_p6 = por %p271_p5, %p270_p4 }
   0xd   :  { %p273_p7 = pnand %p272_p6, %p266_p3 }
   0xf   :  { %276 = shalt.err (!%p273_p7)
}
  0x10   :  { %s304_s19 = smov 256   ;;  %s305_s20 = smov 16  }
  0x11   :  { %22 = dma.hbm_to_vmem [thread:$0]  %s369_s1, 768, %s17_s10, [#allocation3], %s304_s19, %s304_s19, %s305_s20  }
  0x12   :  { %299 = dma.done.wait [#allocation3], 768  }
  0x13   :  { %300 = vsyncadd [#allocation3], 4294966528  ;;  %v306_v0 = vmov 0   ;;  %v159_v1 = vld [vmem:[%s368_s0] sm:$0xff]  ;;  %v161_v2 = vld [vmem:[%s368_s0 + $0x10] sm:$0xff]  ;;  %v32_v4 = vlaneseq }
  0x14   :  { %217 = vset.pattern.permute.xlu0 %v306_v0  ;;  %218 = vset.pattern.permute.xlu1 %v306_v0  ;;  %v160_v3 = vld [vmem:[%s368_s0 + $0x8] sm:$0xff]  ;;  %v26_v5 = vld [vmem:[#allocation2] sm:$0xff]  ;;  %v28_v13 = vld [vmem:[#allocation2 + $0x10] sm:$0xff]  ;;  %s307_s0 = smov [#allocation5]  }
  0x15   :  { %164 = vperm.xlu0 %217, %v159_v1   ;;  %174 = vperm.xlu1 %218, %v161_v2   ;;  %v27_v6 = vld [vmem:[#allocation2 + $0x8] sm:$0xff]  ;;  %v206_v7 = vmul.f32 -1.442695, %v26_v5  ;;  %v30_v8 = vld [vmem:[#allocation2 + $0x20] sm:$0xff]  ;;  %v347_v9 = vand.u32 127, %v32_v4  ;;  %v29_v15 = vld [vmem:[#allocation2 + $0x18] sm:$0xff] }
  0x16   :  { %v207_v10 = vmul.f32 -1.442695, %v27_v6  ;;  %v31_v11 = vld [vmem:[#allocation2 + $0x28] sm:$0xff]  ;;  %v210_v12 = vmul.f32 -1.442695, %v30_v8  ;;  %v33_v35 = vshrl.u32 %v32_v4, 7 }
  0x17   :  { %219 = vpow2.f32 %v206_v7  ;;  %v211_v14 = vmul.f32 -1.442695, %v31_v11  ;;  %v41_v16 = vadd.s32 128, %v347_v9  ;;  %v208_v17 = vmul.f32 -1.442695, %v28_v13  ;;  %s194_s1 = sshll.u32 %s307_s0, 4  ;;  %s195_s1 = int_to_ptr.vmem [resolvable:$true] %s194_s1 }
  0x18   :  { %221 = vpow2.f32 %v207_v10  ;;  %v209_v18 = vmul.f32 -1.442695, %v29_v15  ;;  %v42_v19 = vcvt.s32.f32 %v347_v9  ;;  %v93_v23 = vmul.f32 1.442695, %v26_v5  ;;  %s277_s29 = scalar_lea.vmem %s195_s1, 768  ;;  %p282_p9 = scmp.lt.s32.totalorder %s195_s1, %s195_s1 }
  0x19   :  { %169 = vperm.xlu0 %217, %v160_v3   ;;  %223 = vpow2.f32 %v210_v12  ;;  %v43_v20 = vcvt.s32.f32 %v41_v16  ;;  %v95_v25 = vmul.f32 1.442695, %v27_v6  ;;  %v101_v27 = vmul.f32 1.442695, %v30_v8  ;;  %p278_p8 = scmp.ne.s32.totalorder %s195_s1, %s277_s29  ;;  %p283_p10 = scmp.lt.s32.totalorder %s277_s29, %s277_s29 }
  0x1a   :  { %225 = vpow2.f32 %v211_v14  ;;  %v44_v21 = vadd.f32 0.5, %v42_v19  ;;  %v103_v29 = vmul.f32 1.442695, %v31_v11  ;;  %v97_v36 = vmul.f32 1.442695, %v28_v13 }
  0x1b   :  { %227 = vpow2.f32 %v208_v17  ;;  %v45_v22 = vadd.f32 0.5, %v43_v20  ;;  %v35_v42 = vadd.s32 16, %v33_v35  ;;  %v99_v44 = vmul.f32 1.442695, %v29_v15  ;;  %p284_p11 = por %p283_p10, %p282_p9 }
  0x1c   :  { %229 = vpow2.f32 %v209_v18  ;;  %v46_v28 = vmul.f32 0.0625, %v44_v21  ;;  %v36_v46 = vand.u32 3, %v33_v35  ;;  %v34_v51 = vadd.s32 8, %v33_v35 }
  0x1d   :  { %v47_v31 = vmul.f32 0.0625, %v45_v22  ;;  %231 = vpow2.f32 %v93_v23  ;;  %v38_v50 = vand.u32 3, %v35_v42  ;;  %p285_p12 = pnand %p284_p11, %p278_p8 }
  0x1e   :  { %233 = vpow2.f32 %v95_v25  ;;  %v48_v38 = vfloor.f32 %v46_v28  ;;  %vm117_vm0 = vcmp.eq.s32.totalorder %v36_v46, 0  ;;  %vm132_vm1 = vcmp.eq.s32.totalorder %v36_v46, 1 }
  0x1f   :  { %235 = vpow2.f32 %v101_v27  ;;  %v49_v41 = vfloor.f32 %v47_v31  ;;  %vm119_vm2 = vcmp.eq.s32.totalorder %v38_v50, 0  ;;  %vm134_vm3 = vcmp.eq.s32.totalorder %v38_v50, 1 }
  0x20   :  { %237 = vpow2.f32 %v103_v29  ;;  %v50_v47 = vmul.f32 16.0, %v48_v38  ;;  %v37_v57 = vand.u32 3, %v34_v51  ;;  %v141_v60 = vsel %vm132_vm1, %v48_v38, 0.0 }
  0x21   :  { %v220_v24 = vpop.eup %219  ;;  %v51_v49 = vmul.f32 16.0, %v49_v41  ;;  %v142_v63 = vsel %vm132_vm1, %v49_v41, 0.0  ;;  %v145_v1 = vsel %vm134_vm3, %v48_v38, 0.0  ;;  %v146_v5 = vsel %vm134_vm3, %v49_v41, 0.0 }
  0x22   :  { %v222_v26 = vpop.eup %221  ;;  %v72_v32 = vadd.f32 1.0, %v220_v24  ;;  %v52_v54 = vsub.f32 %v42_v19, %v50_v47  ;;  %vm118_vm4 = vcmp.eq.s32.totalorder %v37_v57, 0  ;;  %vm90_vm5 = vcmp.eq.s32.totalorder %v36_v46, 2 }
  0x23   :  { %v224_v30 = vpop.eup %223  ;;  %v73_v34 = vadd.f32 1.0, %v222_v26  ;;  %v53_v56 = vsub.f32 %v43_v20, %v51_v49  ;;  %vm133_vm6 = vcmp.eq.s32.totalorder %v37_v57, 1  ;;  %vm92_vm7 = vcmp.eq.s32.totalorder %v38_v50, 2 }
  0x24   :  { %v226_v33 = vpop.eup %225  ;;  %v76_v39 = vadd.f32 1.0, %v224_v30  ;;  %239 = vrcp.f32 %v72_v32  ;;  %v126_v62 = vsel %vm117_vm0, %v52_v54, 0.0  ;;  %v130_v0 = vsel %vm119_vm2, %v52_v54, 0.0 }
  0x25   :  { %v228_v37 = vpop.eup %227  ;;  %v77_v43 = vadd.f32 1.0, %v226_v33  ;;  %241 = vrcp.f32 %v73_v34  ;;  %v127_v3 = vsel %vm117_vm0, %v53_v56, 0.0  ;;  %v131_v4 = vsel %vm119_vm2, %v53_v56, 0.0 }
  0x26   :  { %v230_v40 = vpop.eup %229  ;;  %v74_v45 = vadd.f32 1.0, %v228_v37  ;;  %243 = vpow2.f32 %v97_v36  ;;  %v147_v8 = vadd.f32 %v141_v60, %v126_v62  ;;  %v151_v9 = vadd.f32 %v145_v1, %v130_v0 }
  0x27   :  { %245 = vrcp.f32 %v76_v39  ;;  %v75_v48 = vadd.f32 1.0, %v230_v40  ;;  %v232_v52 = vpop.eup %231  ;;  %v148_v11 = vadd.f32 %v142_v63, %v127_v3  ;;  %v152_v12 = vadd.f32 %v146_v5, %v131_v4 }
  0x28   :  { %247 = vrcp.f32 %v77_v43  ;;  %v234_v53 = vpop.eup %233  ;;  %v128_v13 = vsel %vm118_vm4, %v52_v54, 0.0  ;;  %v129_v14 = vsel %vm118_vm4, %v53_v56, 0.0  ;;  %v143_v18 = vsel %vm133_vm6, %v48_v38, 0.0 }
  0x29   :  { %249 = vpow2.f32 %v99_v44  ;;  %v236_v55 = vpop.eup %235  ;;  %v144_v19 = vsel %vm133_vm6, %v49_v41, 0.0  ;;  %vm91_vm8 = vcmp.eq.s32.totalorder %v37_v57, 2  ;;  %v149_v25 = vadd.f32 %v143_v18, %v128_v13 }
  0x2a   :  { %251 = vrcp.f32 %v74_v45  ;;  %v238_v58 = vpop.eup %237  ;;  %v150_v26 = vadd.f32 %v144_v19, %v129_v14 }
  0x2b   :  { %253 = vrcp.f32 %v75_v48 }
  0x2e   :  { %v240_v59 = vpop.eup %239 }
  0x2f   :  { %v242_v61 = vpop.eup %241  ;;  %v111_v16 = vsel %vm90_vm5, %v232_v52, %v240_v59 }
  0x30   :  { %v244_v2 = vpop.eup %243  ;;  %v112_v17 = vsel %vm90_vm5, %v234_v53, %v242_v61  ;;  %v153_v23 = vadd.f32 %v147_v8, %v111_v16 }
  0x31   :  { %v246_v6 = vpop.eup %245  ;;  %v154_v24 = vadd.f32 %v148_v11, %v112_v17 }
  0x32   :  { %v248_v7 = vpop.eup %247  ;;  %v115_v21 = vsel %vm92_vm7, %v236_v55, %v246_v6 }
  0x33   :  { %v250_v10 = vpop.eup %249  ;;  %v116_v22 = vsel %vm92_vm7, %v238_v58, %v248_v7  ;;  %v157_v27 = vadd.f32 %v151_v9, %v115_v21 }
  0x34   :  { %v252_v15 = vpop.eup %251  ;;  %v158_v28 = vadd.f32 %v152_v12, %v116_v22 }
  0x35   :  { %v254_v20 = vpop.eup %253  ;;  %v113_v29 = vsel %vm91_vm8, %v244_v2, %v252_v15 }
  0x36   :  { %v114_v30 = vsel %vm91_vm8, %v250_v10, %v254_v20  ;;  %v155_v33 = vadd.f32 %v149_v25, %v113_v29 }
  0x37   :  { %v156_v34 = vadd.f32 %v150_v26, %v114_v30 }
  0x94   :  { %v165_v31 = vpop.permute.xlu0 %164  ;;  %v175_v32 = vpop.permute.xlu1 %174 }
  0x95   :  { %v177_v35 = vmul.f32 %v165_v31, %v153_v23  ;;  %v178_v36 = vmul.f32 %v165_v31, %v154_v24  ;;  %v181_v37 = vmul.f32 %v175_v32, %v157_v27  ;;  %v182_v38 = vmul.f32 %v175_v32, %v158_v28 }
  0x97   :  { %183 = vst [vmem:[#allocation5] sm:$0xff] %v177_v35  ;;  %184 = vst [vmem:[#allocation5 + $0x8] sm:$0xff] %v178_v36 }
  0x98   :  { %187 = vst [vmem:[#allocation5 + $0x20] sm:$0xff] %v181_v37  ;;  %188 = vst [vmem:[#allocation5 + $0x28] sm:$0xff] %v182_v38  ;;  %v170_v39 = vpop.permute.xlu0 %169 }
  0x99   :  { %v179_v40 = vmul.f32 %v170_v39, %v155_v33  ;;  %v180_v41 = vmul.f32 %v170_v39, %v156_v34 }
  0x9b   :  { %185 = vst [vmem:[#allocation5 + $0x10] sm:$0xff] %v179_v40  ;;  %186 = vst [vmem:[#allocation5 + $0x18] sm:$0xff] %v180_v41 }
  0x9c   :  { %288 = shalt.err (!%p285_p12)
}
  0x9d   :  { %s289_s4 = scalar_lea.hbm %s370_s2, 768 }
  0x9e   :  { %p290_p13 = scmp.ne.s32.totalorder %s370_s2, %s289_s4  ;;  %p293_p0 = scmp.lt.u32.totalorder %s289_s4, %s370_s2 }
  0xa0   :  { %p295_p1 = pnand %p293_p0, %p290_p13 }
  0xa2   :  { %298 = shalt.err (!%p295_p1)
}
  0xa3   :  { %200 = dma.vmem_to_hbm [thread:$0]  %s195_s1, 768, %s370_s2, [#allocation4], %s304_s19, %s304_s19, %s305_s20  }
  0xa4   :  { %301 = dma.done.wait [#allocation4], 768  }
  0xa5   :  { %302 = vsyncadd [#allocation4], 4294966528 }
  0xa6   :  { %204 = vsyncpa [#allocation3], 1 }
  0xa7   :  { %205 = vsyncpa [#allocation4], 1 }

</bundles_post_ra>
